<compile_context>
chip_gen: v6e
topology: v6e:2x2x1
jax: 0.10.0
libtpu: 0.0.40
codegen_flags: <defaults>
</compile_context>

<pallas_src>
import functools

import jax
import jax.numpy as jnp
from jax.experimental import pallas as pl
from jax.experimental.pallas import tpu as pltpu

INITRANGE = 0.04

# ---- small config consistent with the module defaults ----
SEQ_LEN = 16
C = 8
NUM_CLASSES = 4
LAYERS = 3
STEPS = 4
MULTIPLIER = 4
STEM_MULTIPLIER = 3
BATCH = 8
DECODER_DIM = 925
STEM_K = 13

# DARTS RNN genotype: genotype[4] = recurrent (name, pred), genotype[5] = concat
GENOTYPE_RECURRENT = (("tanh", 0), ("relu", 1), ("sigmoid", 1), ("identity", 2))
GENOTYPE_CONCAT = (1, 2, 3, 4)

# decoder N-tiling: 512-wide tiles, 925 padded to 1024 -> grid=(2,)
DEC_TN = 512
DEC_PAD = ((DECODER_DIM + DEC_TN - 1) // DEC_TN) * DEC_TN   # 925 -> 1024
NT = DEC_PAD // DEC_TN                                      # 2
NCLS_PAD = 128                                              # lane-dense classifier/logit
COLS_PAD = 64                                               # 4*13=52 -> 64 im2col K


# ----------------------------------------------------------------------------
# The fused forward kernel.
# grid=(NT,): step 0 runs the whole front end (stem, cells, DARTS RNN) and
# stashes the lane-dense RNN output in VMEM scratch; every step consumes one
# N-tile of the decoder weight and accumulates the classifier partial sum
# directly into the (VMEM-resident) logit output block.
# ----------------------------------------------------------------------------
def _fused_forward_kernel(
    # ---- inputs (weights bf16, biases f32) ----
    cols_ref,      # (T*B, COLS_PAD)  stem im2col patches at the surviving (t,b) rows
    stem_w_ref,    # (COLS_PAD, 3C)   stem conv weight, BN scale folded
    stem_b_ref,    # (1, 3C)          stem BN shift
    c0_w_ref,      # (3C, 4C)         cell0 fused pre-convs + skip combination
    c0_b_ref,      # (1, 4C)
    c1_wa_ref,     # (3C, 8C)         cell1 branch on s0 (stem)
    c1_wb_ref,     # (4C, 8C)         cell1 branch on s1 (cell0)
    c1_b_ref,      # (1, 8C)
    c2_wa_ref,     # (4C, 2*nhid)     cell2 branch on cell0, W0[:nhid] folded in
    c2_wb_ref,     # (8C, 2*nhid)     cell2 branch on cell1, W0[:nhid] folded in
    c2_b_ref,      # (1, 2*nhid)
    hinit_ref,     # (B, nhid)        initial RNN hidden state
    w0h_ref,       # (nhid, 2*nhid)   _W0[nhid:, :] (h-half only)
    ws0_ref,       # (nhid, 2*nhid)   _Ws[0]
    ws12_ref,      # (nhid, 4*nhid)   [_Ws[1] | _Ws[2]] (both pred=1 -> merged)
    ws3_ref,       # (nhid, 2*nhid)   _Ws[3]
    dec_w_ref,     # (T*nhid, DEC_TN) decoder weight N-tile (pipelined over grid)
    dec_b_ref,     # (NT, 1, DEC_TN)  decoder bias, full, indexed by grid id
    cls_w_ref,     # (NT, DEC_TN, NCLS_PAD) classifier weight, full, indexed by grid id
    cls_b_ref,     # (1, NCLS_PAD)
    # ---- outputs ----
    logit_ref,     # (B, NCLS_PAD)    classifier accumulator (constant block index)
    newh_ref,      # (B, nhid)
    # ---- scratch ----
    rnn_scr,       # (B, T*nhid) f32  lane-dense RNN hiddens (decoder input layout)
    *,
    batch, nhid, t_steps,
):
    i = pl.program_id(0)
    f32 = jnp.float32
    bf16 = jnp.bfloat16

    def mm(a, b):
        # bf16 MXU operands, f32 accumulation; element-wise math stays f32.
        return jnp.dot(a.astype(bf16), b.astype(bf16), preferred_element_type=f32)

    # -------------- front end: stem + cells + DARTS RNN (grid step 0) -------
    @pl.when(i == 0)
    def _frontend():
        # stem Conv1d(4, 3C, 13, pad=6, bias=False) + BatchNorm1d (eval, folded),
        # evaluated only at the (t, b) rows that survive the two reduction
        # strides — the stride/permute selections are folded into the
        # wrapper-side im2col since all stand-in cell ops are per-position.
        stem = mm(cols_ref[...], stem_w_ref[...]) + stem_b_ref[...]          # (T*B, 3C)
        r_stem = jnp.maximum(stem, 0.0)

        # TODO(synk): CNN_Cell_search / MixedOp depend on PRIMITIVES_cnn, OPS,
        # ReLUConvBN, FactorizedReduce, get_state_ind, get_w_pos (not in the
        # provided source).  The cells below are the shape-faithful stand-in:
        # ReLU -> 1x1 conv -> BN preprocessing with reduction strides,
        # skip-connect node sums, concat of the last `multiplier` states — with
        # BN scale and the skip combination pre-folded into the weights.

        # cell 0 (normal): s0 = s1 = stem -> single fused weight
        cell0 = mm(r_stem, c0_w_ref[...]) + c0_b_ref[...]                    # (T*B, 4C)
        r_c0 = jnp.maximum(cell0, 0.0)

        # cell 1 (reduction): inputs stem / cell0 at the same surviving rows
        cell1 = mm(r_stem, c1_wa_ref[...]) + mm(r_c0, c1_wb_ref[...]) + c1_b_ref[...]
        r_c1 = jnp.maximum(cell1, 0.0)                                       # (T*B, 8C)

        # cell 2 (reduction, reduction_prev) with the x-half of _W0 folded in:
        # row t*B + b of xw0 is already  x[t][b] @ W0[:nhid, :]
        xw0 = mm(r_c0, c2_wa_ref[...]) + mm(r_c1, c2_wb_ref[...]) + c2_b_ref[...]

        # DARTSCell recurrence (eval: no x_mask/h_mask), T steps unrolled.
        # genotype[4] = (tanh,0),(relu,1),(sigmoid,1),(identity,2); concat 1..4.
        h = hinit_ref[...]
        for t in range(t_steps):
            # _compute_init_state: ch = [x, h] @ W0 = (x @ W0x, hoisted) + h @ W0h
            ch = xw0[t * batch:(t + 1) * batch, :] + mm(h, w0h_ref[...])
            c0g = jax.nn.sigmoid(ch[:, :nhid])
            s0 = h + c0g * (jnp.tanh(ch[:, nhid:]) - h)

            # step 0: tanh, pred = states[0]
            ch0 = mm(s0, ws0_ref[...])
            cg = jax.nn.sigmoid(ch0[:, :nhid])
            s1 = s0 + cg * (jnp.tanh(ch0[:, nhid:]) - s0)

            # steps 1 & 2 share pred = states[1] -> one merged (nhid, 4*nhid) matmul
            ch12 = mm(s1, ws12_ref[...])
            c1g = jax.nn.sigmoid(ch12[:, :nhid])
            s2 = s1 + c1g * (jnp.maximum(ch12[:, nhid:2 * nhid], 0.0) - s1)      # relu
            c2g = jax.nn.sigmoid(ch12[:, 2 * nhid:3 * nhid])
            s3 = s1 + c2g * (jax.nn.sigmoid(ch12[:, 3 * nhid:]) - s1)            # sigmoid

            # step 3: identity, pred = states[2]
            ch3 = mm(s2, ws3_ref[...])
            c3g = jax.nn.sigmoid(ch3[:, :nhid])
            s4 = s2 + c3g * (ch3[:, nhid:] - s2)

            h = (s1 + s2 + s3 + s4) * 0.25
            # lane-dense layout == flatten(output.permute(1, 0, 2), start_dim=1)
            rnn_scr[:, t * nhid:(t + 1) * nhid] = h

        # newh's output block index is constant across the grid, so this single
        # write at i==0 is the value written back at the end of the kernel.
        newh_ref[...] = h
        # initialize the logit accumulator with the classifier bias
        logit_ref[...] = jnp.broadcast_to(cls_b_ref[...], logit_ref.shape)

    # -------- decoder Linear + ReLU (N-tiled) + classifier partial sum ------
    # (dropout_lin p=0.1 is identity in eval mode; final = nn.Identity())
    d = jnp.maximum(mm(rnn_scr[...], dec_w_ref[...]) + dec_b_ref[i], 0.0)
    logit_ref[...] += mm(d, cls_w_ref[i])


# ----------------------------------------------------------------------------
# Channel / reduction bookkeeping (mirrors RNNModel.__init__).
# ----------------------------------------------------------------------------
def build_cell_plan():
    c_curr = C
    c_prev_prev = c_prev = STEM_MULTIPLIER * C
    normal_cells = list(range(LAYERS))[::3]
    reduction_prev = False
    num_neurons = SEQ_LEN
    plan = []
    for i in range(LAYERS):
        if i not in normal_cells:
            c_curr *= 2
            reduction = True
            reduction_high = i == 5
            num_neurons = round(num_neurons / (3 if reduction_high else 2))
        else:
            reduction = False
            reduction_high = False
        plan.append(dict(c_prev_prev=c_prev_prev, c_prev=c_prev, c=c_curr,
                         reduction=reduction, reduction_prev=reduction_prev,
                         reduction_high=reduction_high))
        reduction_prev = reduction
        c_prev_prev, c_prev = c_prev, MULTIPLIER * c_curr
    out_channels = c_curr * STEPS
    return plan, out_channels, num_neurons


# ----------------------------------------------------------------------------
# Deterministic synthetic parameters (shapes follow the module __init__).
# ----------------------------------------------------------------------------
class KeyGen:
    def __init__(self, key):
        self.key = key

    def __call__(self):
        self.key, sub = jax.random.split(self.key)
        return sub


def bn_eval_params(kg, c):
    gamma = 1.0 + 0.1 * jax.random.normal(kg(), (c,), jnp.float32)
    beta = 0.1 * jax.random.normal(kg(), (c,), jnp.float32)
    mean = 0.1 * jax.random.normal(kg(), (c,), jnp.float32)
    var = jnp.abs(jax.random.normal(kg(), (c,), jnp.float32)) + 0.5
    scale = gamma / jnp.sqrt(var + 1e-5)
    return scale, beta - mean * scale


def init_params(kg, plan, out_channels, num_neurons):
    def u(shape, r=INITRANGE):
        return jax.random.uniform(kg(), shape, jnp.float32, -r, r)

    p = {}
    c_stem = STEM_MULTIPLIER * C
    p["stem_w"] = u((c_stem, 4, STEM_K), 0.2)
    p["stem_bn_scale"], p["stem_bn_shift"] = bn_eval_params(kg, c_stem)

    cells = []
    for cfg in plan:
        cp = {}
        cp["pre0_w"] = u((cfg["c_prev_prev"], cfg["c"]), 0.2)
        cp["pre0_scale"], cp["pre0_shift"] = bn_eval_params(kg, cfg["c"])
        cp["pre1_w"] = u((cfg["c_prev"], cfg["c"]), 0.2)
        cp["pre1_scale"], cp["pre1_shift"] = bn_eval_params(kg, cfg["c"])
        cells.append(cp)
    p["cells"] = cells

    # DARTSCell: _W0 (ninp+nhid, 2*nhid), _Ws list of (nhid, 2*nhid).
    ninp = nhid = out_channels
    p["w0"] = u((ninp + nhid, 2 * nhid))
    p["ws"] = jnp.stack([u((nhid, 2 * nhid)) for _ in range(len(GENOTYPE_RECURRENT))])

    # decoder Linear(num_neurons*out_channels, 925); init_weights -> bias 0.
    p["dec_w"] = u((num_neurons * out_channels, DECODER_DIM))
    p["dec_b"] = jnp.zeros((DECODER_DIM,), jnp.float32)
    # classifier Linear(925, num_classes)
    p["cls_w"] = u((DECODER_DIM, NUM_CLASSES), 0.03)
    p["cls_b"] = u((NUM_CLASSES,), 0.03)
    return p


# ----------------------------------------------------------------------------
# One-time weight prep: fold BN / skip-combination / W0's x-half into weights,
# pre-cast MXU operands to bf16, pad decoder-N, classes and im2col-K dims.
# ----------------------------------------------------------------------------
def prepare_kernel_inputs(params, plan, out_channels, num_neurons):
    f32, bf16 = jnp.float32, jnp.bfloat16
    nhid = out_channels

    # The fused kernel hard-codes this cell / genotype structure.
    assert LAYERS == 3 and len(plan) == 3
    assert (not plan[0]["reduction"]) and plan[1]["reduction"] and plan[2]["reduction"]
    assert (not plan[1]["reduction_prev"]) and plan[2]["reduction_prev"]
    assert not any(cfg["reduction_high"] for cfg in plan)
    assert GENOTYPE_RECURRENT == (("tanh", 0), ("relu", 1), ("sigmoid", 1), ("identity", 2))
    assert GENOTYPE_CONCAT == (1, 2, 3, 4)
    assert num_neurons * out_channels == params["dec_w"].shape[0]

    k = {}

    # stem: fold BN scale into the conv weight (im2col layout), pad K 52 -> 64.
    c_stem = STEM_MULTIPLIER * C
    wf = params["stem_w"].reshape(c_stem, 4 * STEM_K).T               # (Cin*K, 3C)
    wf = wf * params["stem_bn_scale"][None, :]
    k["stem_w"] = jnp.pad(wf, ((0, COLS_PAD - 4 * STEM_K), (0, 0))).astype(bf16)
    k["stem_b"] = params["stem_bn_shift"].reshape(1, -1).astype(f32)

    # stand-in cell: states = [h0, h1, h0+h1, ...]; output = concat of the last
    # MULTIPLIER states, each a*h0 + b*h1 with h0/h1 the two ReLU->1x1conv->BN
    # branches.  Fold BN scale and the (a, b) combination into the conv weights.
    coeffs = [(1.0, 0.0), (0.0, 1.0)]
    for _ in range(STEPS):
        coeffs.append((coeffs[-2][0] + coeffs[-1][0], coeffs[-2][1] + coeffs[-1][1]))
    combos = coeffs[-MULTIPLIER:]
    cell_w = []
    for cfg, cp in zip(plan, params["cells"]):
        c = cfg["c"]
        eye = jnp.eye(c, dtype=f32)
        m_a = jnp.concatenate([a * eye for a, _ in combos], axis=1)   # (c, mult*c)
        m_b = jnp.concatenate([b * eye for _, b in combos], axis=1)
        w_a = (cp["pre0_w"] * cp["pre0_scale"][None, :]) @ m_a        # (c_prev_prev, mult*c)
        w_b = (cp["pre1_w"] * cp["pre1_scale"][None, :]) @ m_b        # (c_prev, mult*c)
        bias = (cp["pre0_shift"] @ m_a + cp["pre1_shift"] @ m_b).reshape(1, -1)
        cell_w.append((w_a, w_b, bias))

    # cell 0: both inputs are the stem output -> a single fused weight.
    k["c0_w"] = (cell_w[0][0] + cell_w[0][1]).astype(bf16)
    k["c0_b"] = cell_w[0][2].astype(f32)
    k["c1_wa"], k["c1_wb"] = cell_w[1][0].astype(bf16), cell_w[1][1].astype(bf16)
    k["c1_b"] = cell_w[1][2].astype(f32)

    # cell 2 with the x-half of _W0 folded in (the RNN input x only ever feeds
    # the recurrence through x @ W0[:nhid, :]).
    w0x = params["w0"][:nhid, :]                                      # (nhid, 2*nhid)
    k["c2_wa"] = (cell_w[2][0] @ w0x).astype(bf16)                    # (4C, 2*nhid)
    k["c2_wb"] = (cell_w[2][1] @ w0x).astype(bf16)                    # (8C, 2*nhid)
    k["c2_b"] = (cell_w[2][2] @ w0x).astype(f32)                      # (1, 2*nhid)

    # DARTSCell weights (only the h-half of W0 stays in the recurrence;
    # genotype steps 1 & 2 share pred -> merged matmul).
    ws = params["ws"]
    k["w0h"] = params["w0"][nhid:, :].astype(bf16)
    k["ws0"] = ws[0].astype(bf16)
    k["ws12"] = jnp.concatenate([ws[1], ws[2]], axis=1).astype(bf16)
    k["ws3"] = ws[3].astype(bf16)

    # decoder / classifier; N padded 925 -> DEC_PAD, classes padded 4 -> 128
    # (zero padding keeps the result exact: relu(0)=0 and zero cls rows/cols).
    n_pad = DEC_PAD - DECODER_DIM
    k["dec_w"] = jnp.pad(params["dec_w"], ((0, 0), (0, n_pad))).astype(bf16)
    k["dec_b"] = jnp.pad(params["dec_b"], (0, n_pad)).reshape(NT, 1, DEC_TN).astype(f32)
    cls_w = jnp.pad(params["cls_w"], ((0, n_pad), (0, NCLS_PAD - NUM_CLASSES)))
    k["cls_w"] = cls_w.reshape(NT, DEC_TN, NCLS_PAD).astype(bf16)
    k["cls_b"] = jnp.pad(params["cls_b"], (0, NCLS_PAD - NUM_CLASSES)).reshape(1, -1).astype(f32)
    return k


# ----------------------------------------------------------------------------
# JAX glue: stem im2col (only at the rows that survive both reduction strides,
# already in (t, b) order) + the single fused pallas_call.
# ----------------------------------------------------------------------------
def im2col_stem_selected(x_ncl, t_steps):
    # PyTorch NCL Conv1d(4, 3C, 13, padding=6); after the two stride-2
    # reductions only positions p = 4*t are consumed, and the RNN wants rows in
    # (t, b) order (== x.permute(2, 0, 1)), so build exactly those patches.
    Bn, Cin, L = x_ncl.shape
    pad = (STEM_K - 1) // 2
    xp = jnp.pad(x_ncl, ((0, 0), (0, 0), (pad, pad)))
    cols = jnp.stack([xp[:, :, 4 * t:4 * t + STEM_K] for t in range(t_steps)],
                     axis=0)                                   # (T, B, Cin, K)
    cols = cols.reshape(t_steps * Bn, Cin * STEM_K)            # (T*B, 52)
    cols = jnp.pad(cols, ((0, 0), (0, COLS_PAD - Cin * STEM_K)))
    return cols.astype(jnp.bfloat16)


def rnn_model_forward(kin, x_ncl, hidden):
    """Full RNNModel forward (eval mode) in a single fused pallas_call."""
    Bn = x_ncl.shape[0]
    nhid = kin["w0h"].shape[0]
    t_steps = kin["dec_w"].shape[0] // nhid
    nt = kin["dec_w"].shape[1] // DEC_TN
    ncls_pad = kin["cls_b"].shape[1]

    cols = im2col_stem_selected(x_ncl, t_steps)
    h0 = hidden[0][0].astype(jnp.float32)     # DARTSCell.forward: hidden = hidden[0]

    def full(a):  # whole array, VMEM-resident, constant across the grid
        nd = a.ndim
        return pl.BlockSpec(a.shape, lambda i, _nd=nd: (0,) * _nd)

    front = (cols, kin["stem_w"], kin["stem_b"],
             kin["c0_w"], kin["c0_b"],
             kin["c1_wa"], kin["c1_wb"], kin["c1_b"],
             kin["c2_wa"], kin["c2_wb"], kin["c2_b"],
             h0, kin["w0h"], kin["ws0"], kin["ws12"], kin["ws3"])
    in_specs = [full(a) for a in front] + [
        pl.BlockSpec((t_steps * nhid, DEC_TN), lambda i: (0, i)),   # dec_w N-tile
        full(kin["dec_b"]),   # (NT,1,DEC_TN)   indexed by grid id in-kernel
        full(kin["cls_w"]),   # (NT,DEC_TN,NCLS_PAD)
        full(kin["cls_b"]),
    ]

    kern = functools.partial(_fused_forward_kernel,
                             batch=Bn, nhid=nhid, t_steps=t_steps)
    logit_pad, new_h = pl.pallas_call(
        kern,
        grid=(nt,),
        in_specs=in_specs,
        out_specs=(pl.BlockSpec((Bn, ncls_pad), lambda i: (0, 0)),
                   pl.BlockSpec((Bn, nhid), lambda i: (0, 0))),
        out_shape=(jax.ShapeDtypeStruct((Bn, ncls_pad), jnp.float32),
                   jax.ShapeDtypeStruct((Bn, nhid), jnp.float32)),
        scratch_shapes=[pltpu.VMEM((Bn, t_steps * nhid), jnp.float32)],  # rnn hiddens
        compiler_params=pltpu.CompilerParams(dimension_semantics=("arbitrary",)),
        cost_estimate=pl.CostEstimate(flops=25_000_000, transcendentals=25_000,
                                      bytes_accessed=2_200_000),
    )(*front, kin["dec_w"], kin["dec_b"], kin["cls_w"], kin["cls_b"])

    logit = logit_pad[:, :NUM_CLASSES]        # drop the lane-padding columns
    return logit, [new_h[None]]


if __name__ == "__main__":
    kg = KeyGen(jax.random.PRNGKey(0))
    plan, out_channels, num_neurons = build_cell_plan()
    params = init_params(kg, plan, out_channels, num_neurons)
    kin = prepare_kernel_inputs(params, plan, out_channels, num_neurons)

    # input: (B, 4, seq_len) NCL (DNA-style 4-channel 1-D signal)
    x = jax.random.normal(kg(), (BATCH, 4, SEQ_LEN), jnp.float32)
    # init_hidden: list of (1, B, nhid) zeros
    hidden = [jnp.zeros((1, BATCH, out_channels), jnp.float32)]

    fwd = jax.jit(rnn_model_forward)
    logit, new_hidden = fwd(kin, x, hidden)
    jax.block_until_ready(logit)

    assert logit.shape == (BATCH, NUM_CLASSES), logit.shape
    assert new_hidden[0].shape == (1, BATCH, out_channels), new_hidden[0].shape
    assert bool(jnp.all(jnp.isfinite(logit)))
    print("KERNEL_OK")
</pallas_src>

<mosaic_0001>
module attributes {stable_mosaic.version = 11 : i64} {
  func.func @_fused_forward_kernel(%arg0: i32, %arg1: memref<32x64xbf16, #tpu.memory_space<vmem>>, %arg2: memref<64x24xbf16, #tpu.memory_space<vmem>>, %arg3: memref<1x24xf32, #tpu.memory_space<vmem>>, %arg4: memref<24x32xbf16, #tpu.memory_space<vmem>>, %arg5: memref<1x32xf32, #tpu.memory_space<vmem>>, %arg6: memref<24x64xbf16, #tpu.memory_space<vmem>>, %arg7: memref<32x64xbf16, #tpu.memory_space<vmem>>, %arg8: memref<1x64xf32, #tpu.memory_space<vmem>>, %arg9: memref<32x256xbf16, #tpu.memory_space<vmem>>, %arg10: memref<64x256xbf16, #tpu.memory_space<vmem>>, %arg11: memref<1x256xf32, #tpu.memory_space<vmem>>, %arg12: memref<8x128xf32, #tpu.memory_space<vmem>>, %arg13: memref<128x256xbf16, #tpu.memory_space<vmem>>, %arg14: memref<128x256xbf16, #tpu.memory_space<vmem>>, %arg15: memref<128x512xbf16, #tpu.memory_space<vmem>>, %arg16: memref<128x256xbf16, #tpu.memory_space<vmem>>, %arg17: memref<512x512xbf16, #tpu.memory_space<vmem>>, %arg18: memref<2x1x512xf32, #tpu.memory_space<vmem>>, %arg19: memref<2x512x128xbf16, #tpu.memory_space<vmem>>, %arg20: memref<1x128xf32, #tpu.memory_space<vmem>>, %arg21: memref<8x128xf32, #tpu.memory_space<vmem>>, %arg22: memref<8x128xf32, #tpu.memory_space<vmem>>, %arg23: memref<8x512xf32, #tpu.memory_space<vmem>>) attributes {dimension_semantics = [#tpu.dimension_semantics<arbitrary>], iteration_bounds = array<i64: 2>, scalar_prefetch = 0 : i64, scratch_operands = 1 : i64, tpu.core_type = #tpu.core_type<tc>, window_params = [{pipeline_mode = #tpu.pipeline_mode<synchronous>, transform_indices = @transform_0, window_bounds = array<i64: 32, 64>}, {pipeline_mode = #tpu.pipeline_mode<synchronous>, transform_indices = @transform_1, window_bounds = array<i64: 64, 24>}, {pipeline_mode = #tpu.pipeline_mode<synchronous>, transform_indices = @transform_2, window_bounds = array<i64: 1, 24>}, {pipeline_mode = #tpu.pipeline_mode<synchronous>, transform_indices = @transform_3, window_bounds = array<i64: 24, 32>}, {pipeline_mode = #tpu.pipeline_mode<synchronous>, transform_indices = @transform_4, window_bounds = array<i64: 1, 32>}, {pipeline_mode = #tpu.pipeline_mode<synchronous>, transform_indices = @transform_5, window_bounds = array<i64: 24, 64>}, {pipeline_mode = #tpu.pipeline_mode<synchronous>, transform_indices = @transform_6, window_bounds = array<i64: 32, 64>}, {pipeline_mode = #tpu.pipeline_mode<synchronous>, transform_indices = @transform_7, window_bounds = array<i64: 1, 64>}, {pipeline_mode = #tpu.pipeline_mode<synchronous>, transform_indices = @transform_8, window_bounds = array<i64: 32, 256>}, {pipeline_mode = #tpu.pipeline_mode<synchronous>, transform_indices = @transform_9, window_bounds = array<i64: 64, 256>}, {pipeline_mode = #tpu.pipeline_mode<synchronous>, transform_indices = @transform_10, window_bounds = array<i64: 1, 256>}, {pipeline_mode = #tpu.pipeline_mode<synchronous>, transform_indices = @transform_11, window_bounds = array<i64: 8, 128>}, {pipeline_mode = #tpu.pipeline_mode<synchronous>, transform_indices = @transform_12, window_bounds = array<i64: 128, 256>}, {pipeline_mode = #tpu.pipeline_mode<synchronous>, transform_indices = @transform_13, window_bounds = array<i64: 128, 256>}, {pipeline_mode = #tpu.pipeline_mode<synchronous>, transform_indices = @transform_14, window_bounds = array<i64: 128, 512>}, {pipeline_mode = #tpu.pipeline_mode<synchronous>, transform_indices = @transform_15, window_bounds = array<i64: 128, 256>}, {transform_indices = @transform_16, window_bounds = array<i64: 512, 512>}, {pipeline_mode = #tpu.pipeline_mode<synchronous>, transform_indices = @transform_17, window_bounds = array<i64: 2, 1, 512>}, {pipeline_mode = #tpu.pipeline_mode<synchronous>, transform_indices = @transform_18, window_bounds = array<i64: 2, 512, 128>}, {pipeline_mode = #tpu.pipeline_mode<synchronous>, transform_indices = @transform_19, window_bounds = array<i64: 1, 128>}, {pipeline_mode = #tpu.pipeline_mode<synchronous>, transform_indices = @transform_20, window_bounds = array<i64: 8, 128>}, {pipeline_mode = #tpu.pipeline_mode<synchronous>, transform_indices = @transform_21, window_bounds = array<i64: 8, 128>}]} {
    %c0_i32 = arith.constant 0 : i32
    %0 = arith.cmpi eq, %arg0, %c0_i32 : i32
    %1 = arith.extui %0 : i1 to i32
    %c0_i32_0 = arith.constant 0 : i32
    %2 = arith.cmpi ne, %1, %c0_i32_0 : i32
    scf.if %2 {
      %c0_14 = arith.constant 0 : index
      %c0_15 = arith.constant 0 : index
      %22 = vector.load %arg1[%c0_14, %c0_15] : memref<32x64xbf16, #tpu.memory_space<vmem>>, vector<32x64xbf16>
      %c0_16 = arith.constant 0 : index
      %c0_17 = arith.constant 0 : index
      %23 = vector.load %arg2[%c0_16, %c0_17] : memref<64x24xbf16, #tpu.memory_space<vmem>>, vector<64x24xbf16>
      %cst_18 = arith.constant dense<0.000000e+00> : vector<32x24xf32>
      %24 = tpu.matmul %22, %23, %cst_18 {dimension_numbers = #tpu.dot_dimension_numbers<[1], [0], [0], [1], [0, 0, 1, 1], [], []>} : vector<32x64xbf16>, vector<64x24xbf16>, vector<32x24xf32> -> vector<32x24xf32>
      %c0_19 = arith.constant 0 : index
      %c0_20 = arith.constant 0 : index
      %25 = vector.load %arg3[%c0_19, %c0_20] : memref<1x24xf32, #tpu.memory_space<vmem>>, vector<1x24xf32>
      %26 = vector.broadcast %25 : vector<1x24xf32> to vector<32x24xf32>
      %27 = arith.addf %24, %26 : vector<32x24xf32>
      %cst_21 = arith.constant 0.000000e+00 : f32
      %28 = vector.broadcast %cst_21 : f32 to vector<32x24xf32>
      %29 = arith.maximumf %27, %28 : vector<32x24xf32>
      %c0_22 = arith.constant 0 : index
      %c0_23 = arith.constant 0 : index
      %30 = vector.load %arg4[%c0_22, %c0_23] : memref<24x32xbf16, #tpu.memory_space<vmem>>, vector<24x32xbf16>
      %31 = arith.truncf %29 : vector<32x24xf32> to vector<32x24xbf16>
      %cst_24 = arith.constant dense<0.000000e+00> : vector<32x32xf32>
      %32 = tpu.matmul %31, %30, %cst_24 {dimension_numbers = #tpu.dot_dimension_numbers<[1], [0], [0], [1], [0, 0, 1, 1], [], []>} : vector<32x24xbf16>, vector<24x32xbf16>, vector<32x32xf32> -> vector<32x32xf32>
      %c0_25 = arith.constant 0 : index
      %c0_26 = arith.constant 0 : index
      %33 = vector.load %arg5[%c0_25, %c0_26] : memref<1x32xf32, #tpu.memory_space<vmem>>, vector<1x32xf32>
      %34 = vector.broadcast %33 : vector<1x32xf32> to vector<32x32xf32>
      %35 = arith.addf %32, %34 : vector<32x32xf32>
      %cst_27 = arith.constant 0.000000e+00 : f32
      %36 = vector.broadcast %cst_27 : f32 to vector<32x32xf32>
      %37 = arith.maximumf %35, %36 : vector<32x32xf32>
      %c0_28 = arith.constant 0 : index
      %c0_29 = arith.constant 0 : index
      %38 = vector.load %arg6[%c0_28, %c0_29] : memref<24x64xbf16, #tpu.memory_space<vmem>>, vector<24x64xbf16>
      %39 = arith.truncf %29 : vector<32x24xf32> to vector<32x24xbf16>
      %cst_30 = arith.constant dense<0.000000e+00> : vector<32x64xf32>
      %40 = tpu.matmul %39, %38, %cst_30 {dimension_numbers = #tpu.dot_dimension_numbers<[1], [0], [0], [1], [0, 0, 1, 1], [], []>} : vector<32x24xbf16>, vector<24x64xbf16>, vector<32x64xf32> -> vector<32x64xf32>
      %c0_31 = arith.constant 0 : index
      %c0_32 = arith.constant 0 : index
      %41 = vector.load %arg7[%c0_31, %c0_32] : memref<32x64xbf16, #tpu.memory_space<vmem>>, vector<32x64xbf16>
      %42 = arith.truncf %37 : vector<32x32xf32> to vector<32x32xbf16>
      %cst_33 = arith.constant dense<0.000000e+00> : vector<32x64xf32>
      %43 = tpu.matmul %42, %41, %cst_33 {dimension_numbers = #tpu.dot_dimension_numbers<[1], [0], [0], [1], [0, 0, 1, 1], [], []>} : vector<32x32xbf16>, vector<32x64xbf16>, vector<32x64xf32> -> vector<32x64xf32>
      %44 = arith.addf %40, %43 : vector<32x64xf32>
      %c0_34 = arith.constant 0 : index
      %c0_35 = arith.constant 0 : index
      %45 = vector.load %arg8[%c0_34, %c0_35] : memref<1x64xf32, #tpu.memory_space<vmem>>, vector<1x64xf32>
      %46 = vector.broadcast %45 : vector<1x64xf32> to vector<32x64xf32>
      %47 = arith.addf %44, %46 : vector<32x64xf32>
      %cst_36 = arith.constant 0.000000e+00 : f32
      %48 = vector.broadcast %cst_36 : f32 to vector<32x64xf32>
      %49 = arith.maximumf %47, %48 : vector<32x64xf32>
      %c0_37 = arith.constant 0 : index
      %c0_38 = arith.constant 0 : index
      %50 = vector.load %arg9[%c0_37, %c0_38] : memref<32x256xbf16, #tpu.memory_space<vmem>>, vector<32x256xbf16>
      %51 = arith.truncf %37 : vector<32x32xf32> to vector<32x32xbf16>
      %cst_39 = arith.constant dense<0.000000e+00> : vector<32x256xf32>
      %52 = tpu.matmul %51, %50, %cst_39 {dimension_numbers = #tpu.dot_dimension_numbers<[1], [0], [0], [1], [0, 0, 1, 1], [], []>} : vector<32x32xbf16>, vector<32x256xbf16>, vector<32x256xf32> -> vector<32x256xf32>
      %c0_40 = arith.constant 0 : index
      %c0_41 = arith.constant 0 : index
      %53 = vector.load %arg10[%c0_40, %c0_41] : memref<64x256xbf16, #tpu.memory_space<vmem>>, vector<64x256xbf16>
      %54 = arith.truncf %49 : vector<32x64xf32> to vector<32x64xbf16>
      %cst_42 = arith.constant dense<0.000000e+00> : vector<32x256xf32>
      %55 = tpu.matmul %54, %53, %cst_42 {dimension_numbers = #tpu.dot_dimension_numbers<[1], [0], [0], [1], [0, 0, 1, 1], [], []>} : vector<32x64xbf16>, vector<64x256xbf16>, vector<32x256xf32> -> vector<32x256xf32>
      %56 = arith.addf %52, %55 : vector<32x256xf32>
      %c0_43 = arith.constant 0 : index
      %c0_44 = arith.constant 0 : index
      %57 = vector.load %arg11[%c0_43, %c0_44] : memref<1x256xf32, #tpu.memory_space<vmem>>, vector<1x256xf32>
      %58 = vector.broadcast %57 : vector<1x256xf32> to vector<32x256xf32>
      %59 = arith.addf %56, %58 : vector<32x256xf32>
      %c0_45 = arith.constant 0 : index
      %c0_46 = arith.constant 0 : index
      %60 = vector.load %arg12[%c0_45, %c0_46] : memref<8x128xf32, #tpu.memory_space<vmem>>, vector<8x128xf32>
      %61 = vector.extract_strided_slice %59 {offsets = [0, 0], sizes = [8, 256], strides = [1, 1]} : vector<32x256xf32> to vector<8x256xf32>
      %c0_47 = arith.constant 0 : index
      %c0_48 = arith.constant 0 : index
      %62 = vector.load %arg13[%c0_47, %c0_48] : memref<128x256xbf16, #tpu.memory_space<vmem>>, vector<128x256xbf16>
      %63 = arith.truncf %60 : vector<8x128xf32> to vector<8x128xbf16>
      %cst_49 = arith.constant dense<0.000000e+00> : vector<8x256xf32>
      %64 = tpu.matmul %63, %62, %cst_49 {dimension_numbers = #tpu.dot_dimension_numbers<[1], [0], [0], [1], [0, 0, 1, 1], [], []>} : vector<8x128xbf16>, vector<128x256xbf16>, vector<8x256xf32> -> vector<8x256xf32>
      %65 = arith.addf %61, %64 : vector<8x256xf32>
      %66 = vector.extract_strided_slice %65 {offsets = [0, 0], sizes = [8, 128], strides = [1, 1]} : vector<8x256xf32> to vector<8x128xf32>
      %67 = arith.negf %66 : vector<8x128xf32>
      %68 = math.exp %67 : vector<8x128xf32>
      %cst_50 = arith.constant 1.000000e+00 : f32
      %69 = vector.broadcast %cst_50 : f32 to vector<8x128xf32>
      %70 = arith.addf %69, %68 : vector<8x128xf32>
      %71 = arith.divf %69, %70 : vector<8x128xf32>
      %72 = vector.extract_strided_slice %65 {offsets = [0, 128], sizes = [8, 128], strides = [1, 1]} : vector<8x256xf32> to vector<8x128xf32>
      %73 = math.tanh %72 : vector<8x128xf32>
      %74 = arith.subf %73, %60 : vector<8x128xf32>
      %75 = arith.mulf %71, %74 : vector<8x128xf32>
      %76 = arith.addf %60, %75 : vector<8x128xf32>
      %c0_51 = arith.constant 0 : index
      %c0_52 = arith.constant 0 : index
      %77 = vector.load %arg14[%c0_51, %c0_52] : memref<128x256xbf16, #tpu.memory_space<vmem>>, vector<128x256xbf16>
      %78 = arith.truncf %76 : vector<8x128xf32> to vector<8x128xbf16>
      %cst_53 = arith.constant dense<0.000000e+00> : vector<8x256xf32>
      %79 = tpu.matmul %78, %77, %cst_53 {dimension_numbers = #tpu.dot_dimension_numbers<[1], [0], [0], [1], [0, 0, 1, 1], [], []>} : vector<8x128xbf16>, vector<128x256xbf16>, vector<8x256xf32> -> vector<8x256xf32>
      %80 = vector.extract_strided_slice %79 {offsets = [0, 0], sizes = [8, 128], strides = [1, 1]} : vector<8x256xf32> to vector<8x128xf32>
      %81 = arith.negf %80 : vector<8x128xf32>
      %82 = math.exp %81 : vector<8x128xf32>
      %cst_54 = arith.constant 1.000000e+00 : f32
      %83 = vector.broadcast %cst_54 : f32 to vector<8x128xf32>
      %84 = arith.addf %83, %82 : vector<8x128xf32>
      %85 = arith.divf %83, %84 : vector<8x128xf32>
      %86 = vector.extract_strided_slice %79 {offsets = [0, 128], sizes = [8, 128], strides = [1, 1]} : vector<8x256xf32> to vector<8x128xf32>
      %87 = math.tanh %86 : vector<8x128xf32>
      %88 = arith.subf %87, %76 : vector<8x128xf32>
      %89 = arith.mulf %85, %88 : vector<8x128xf32>
      %90 = arith.addf %76, %89 : vector<8x128xf32>
      %c0_55 = arith.constant 0 : index
      %c0_56 = arith.constant 0 : index
      %91 = vector.load %arg15[%c0_55, %c0_56] : memref<128x512xbf16, #tpu.memory_space<vmem>>, vector<128x512xbf16>
      %92 = arith.truncf %90 : vector<8x128xf32> to vector<8x128xbf16>
      %cst_57 = arith.constant dense<0.000000e+00> : vector<8x512xf32>
      %93 = tpu.matmul %92, %91, %cst_57 {dimension_numbers = #tpu.dot_dimension_numbers<[1], [0], [0], [1], [0, 0, 1, 1], [], []>} : vector<8x128xbf16>, vector<128x512xbf16>, vector<8x512xf32> -> vector<8x512xf32>
      %94 = vector.extract_strided_slice %93 {offsets = [0, 0], sizes = [8, 128], strides = [1, 1]} : vector<8x512xf32> to vector<8x128xf32>
      %95 = arith.negf %94 : vector<8x128xf32>
      %96 = math.exp %95 : vector<8x128xf32>
      %cst_58 = arith.constant 1.000000e+00 : f32
      %97 = vector.broadcast %cst_58 : f32 to vector<8x128xf32>
      %98 = arith.addf %97, %96 : vector<8x128xf32>
      %99 = arith.divf %97, %98 : vector<8x128xf32>
      %100 = vector.extract_strided_slice %93 {offsets = [0, 128], sizes = [8, 128], strides = [1, 1]} : vector<8x512xf32> to vector<8x128xf32>
      %cst_59 = arith.constant 0.000000e+00 : f32
      %101 = vector.broadcast %cst_59 : f32 to vector<8x128xf32>
      %102 = arith.maximumf %100, %101 : vector<8x128xf32>
      %103 = arith.subf %102, %90 : vector<8x128xf32>
      %104 = arith.mulf %99, %103 : vector<8x128xf32>
      %105 = arith.addf %90, %104 : vector<8x128xf32>
      %106 = vector.extract_strided_slice %93 {offsets = [0, 256], sizes = [8, 128], strides = [1, 1]} : vector<8x512xf32> to vector<8x128xf32>
      %107 = arith.negf %106 : vector<8x128xf32>
      %108 = math.exp %107 : vector<8x128xf32>
      %cst_60 = arith.constant 1.000000e+00 : f32
      %109 = vector.broadcast %cst_60 : f32 to vector<8x128xf32>
      %110 = arith.addf %109, %108 : vector<8x128xf32>
      %111 = arith.divf %109, %110 : vector<8x128xf32>
      %112 = vector.extract_strided_slice %93 {offsets = [0, 384], sizes = [8, 128], strides = [1, 1]} : vector<8x512xf32> to vector<8x128xf32>
      %113 = arith.negf %112 : vector<8x128xf32>
      %114 = math.exp %113 : vector<8x128xf32>
      %cst_61 = arith.constant 1.000000e+00 : f32
      %115 = vector.broadcast %cst_61 : f32 to vector<8x128xf32>
      %116 = arith.addf %115, %114 : vector<8x128xf32>
      %117 = arith.divf %115, %116 : vector<8x128xf32>
      %118 = arith.subf %117, %90 : vector<8x128xf32>
      %119 = arith.mulf %111, %118 : vector<8x128xf32>
      %120 = arith.addf %90, %119 : vector<8x128xf32>
      %c0_62 = arith.constant 0 : index
      %c0_63 = arith.constant 0 : index
      %121 = vector.load %arg16[%c0_62, %c0_63] : memref<128x256xbf16, #tpu.memory_space<vmem>>, vector<128x256xbf16>
      %122 = arith.truncf %105 : vector<8x128xf32> to vector<8x128xbf16>
      %cst_64 = arith.constant dense<0.000000e+00> : vector<8x256xf32>
      %123 = tpu.matmul %122, %121, %cst_64 {dimension_numbers = #tpu.dot_dimension_numbers<[1], [0], [0], [1], [0, 0, 1, 1], [], []>} : vector<8x128xbf16>, vector<128x256xbf16>, vector<8x256xf32> -> vector<8x256xf32>
      %124 = vector.extract_strided_slice %123 {offsets = [0, 0], sizes = [8, 128], strides = [1, 1]} : vector<8x256xf32> to vector<8x128xf32>
      %125 = arith.negf %124 : vector<8x128xf32>
      %126 = math.exp %125 : vector<8x128xf32>
      %cst_65 = arith.constant 1.000000e+00 : f32
      %127 = vector.broadcast %cst_65 : f32 to vector<8x128xf32>
      %128 = arith.addf %127, %126 : vector<8x128xf32>
      %129 = arith.divf %127, %128 : vector<8x128xf32>
      %130 = vector.extract_strided_slice %123 {offsets = [0, 128], sizes = [8, 128], strides = [1, 1]} : vector<8x256xf32> to vector<8x128xf32>
      %131 = arith.subf %130, %105 : vector<8x128xf32>
      %132 = arith.mulf %129, %131 : vector<8x128xf32>
      %133 = arith.addf %105, %132 : vector<8x128xf32>
      %134 = arith.addf %90, %105 : vector<8x128xf32>
      %135 = arith.addf %134, %120 : vector<8x128xf32>
      %136 = arith.addf %135, %133 : vector<8x128xf32>
      %cst_66 = arith.constant 2.500000e-01 : f32
      %137 = vector.broadcast %cst_66 : f32 to vector<8x128xf32>
      %138 = arith.mulf %136, %137 : vector<8x128xf32>
      %c0_67 = arith.constant 0 : index
      %c0_68 = arith.constant 0 : index
      %139 = vector.load %arg23[%c0_67, %c0_68] : memref<8x512xf32, #tpu.memory_space<vmem>>, vector<8x128xf32>
      tpu.vector_store %arg23[%c0_67, %c0_68], %138 {strides = array<i32>} : memref<8x512xf32, #tpu.memory_space<vmem>>, vector<8x128xf32>,
      %140 = vector.extract_strided_slice %59 {offsets = [8, 0], sizes = [8, 256], strides = [1, 1]} : vector<32x256xf32> to vector<8x256xf32>
      %c0_69 = arith.constant 0 : index
      %c0_70 = arith.constant 0 : index
      %141 = vector.load %arg13[%c0_69, %c0_70] : memref<128x256xbf16, #tpu.memory_space<vmem>>, vector<128x256xbf16>
      %142 = arith.truncf %138 : vector<8x128xf32> to vector<8x128xbf16>
      %cst_71 = arith.constant dense<0.000000e+00> : vector<8x256xf32>
      %143 = tpu.matmul %142, %141, %cst_71 {dimension_numbers = #tpu.dot_dimension_numbers<[1], [0], [0], [1], [0, 0, 1, 1], [], []>} : vector<8x128xbf16>, vector<128x256xbf16>, vector<8x256xf32> -> vector<8x256xf32>
      %144 = arith.addf %140, %143 : vector<8x256xf32>
      %145 = vector.extract_strided_slice %144 {offsets = [0, 0], sizes = [8, 128], strides = [1, 1]} : vector<8x256xf32> to vector<8x128xf32>
      %146 = arith.negf %145 : vector<8x128xf32>
      %147 = math.exp %146 : vector<8x128xf32>
      %cst_72 = arith.constant 1.000000e+00 : f32
      %148 = vector.broadcast %cst_72 : f32 to vector<8x128xf32>
      %149 = arith.addf %148, %147 : vector<8x128xf32>
      %150 = arith.divf %148, %149 : vector<8x128xf32>
      %151 = vector.extract_strided_slice %144 {offsets = [0, 128], sizes = [8, 128], strides = [1, 1]} : vector<8x256xf32> to vector<8x128xf32>
      %152 = math.tanh %151 : vector<8x128xf32>
      %153 = arith.subf %152, %138 : vector<8x128xf32>
      %154 = arith.mulf %150, %153 : vector<8x128xf32>
      %155 = arith.addf %138, %154 : vector<8x128xf32>
      %c0_73 = arith.constant 0 : index
      %c0_74 = arith.constant 0 : index
      %156 = vector.load %arg14[%c0_73, %c0_74] : memref<128x256xbf16, #tpu.memory_space<vmem>>, vector<128x256xbf16>
      %157 = arith.truncf %155 : vector<8x128xf32> to vector<8x128xbf16>
      %cst_75 = arith.constant dense<0.000000e+00> : vector<8x256xf32>
      %158 = tpu.matmul %157, %156, %cst_75 {dimension_numbers = #tpu.dot_dimension_numbers<[1], [0], [0], [1], [0, 0, 1, 1], [], []>} : vector<8x128xbf16>, vector<128x256xbf16>, vector<8x256xf32> -> vector<8x256xf32>
      %159 = vector.extract_strided_slice %158 {offsets = [0, 0], sizes = [8, 128], strides = [1, 1]} : vector<8x256xf32> to vector<8x128xf32>
      %160 = arith.negf %159 : vector<8x128xf32>
      %161 = math.exp %160 : vector<8x128xf32>
      %cst_76 = arith.constant 1.000000e+00 : f32
      %162 = vector.broadcast %cst_76 : f32 to vector<8x128xf32>
      %163 = arith.addf %162, %161 : vector<8x128xf32>
      %164 = arith.divf %162, %163 : vector<8x128xf32>
      %165 = vector.extract_strided_slice %158 {offsets = [0, 128], sizes = [8, 128], strides = [1, 1]} : vector<8x256xf32> to vector<8x128xf32>
      %166 = math.tanh %165 : vector<8x128xf32>
      %167 = arith.subf %166, %155 : vector<8x128xf32>
      %168 = arith.mulf %164, %167 : vector<8x128xf32>
      %169 = arith.addf %155, %168 : vector<8x128xf32>
      %c0_77 = arith.constant 0 : index
      %c0_78 = arith.constant 0 : index
      %170 = vector.load %arg15[%c0_77, %c0_78] : memref<128x512xbf16, #tpu.memory_space<vmem>>, vector<128x512xbf16>
      %171 = arith.truncf %169 : vector<8x128xf32> to vector<8x128xbf16>
      %cst_79 = arith.constant dense<0.000000e+00> : vector<8x512xf32>
      %172 = tpu.matmul %171, %170, %cst_79 {dimension_numbers = #tpu.dot_dimension_numbers<[1], [0], [0], [1], [0, 0, 1, 1], [], []>} : vector<8x128xbf16>, vector<128x512xbf16>, vector<8x512xf32> -> vector<8x512xf32>
      %173 = vector.extract_strided_slice %172 {offsets = [0, 0], sizes = [8, 128], strides = [1, 1]} : vector<8x512xf32> to vector<8x128xf32>
      %174 = arith.negf %173 : vector<8x128xf32>
      %175 = math.exp %174 : vector<8x128xf32>
      %cst_80 = arith.constant 1.000000e+00 : f32
      %176 = vector.broadcast %cst_80 : f32 to vector<8x128xf32>
      %177 = arith.addf %176, %175 : vector<8x128xf32>
      %178 = arith.divf %176, %177 : vector<8x128xf32>
      %179 = vector.extract_strided_slice %172 {offsets = [0, 128], sizes = [8, 128], strides = [1, 1]} : vector<8x512xf32> to vector<8x128xf32>
      %cst_81 = arith.constant 0.000000e+00 : f32
      %180 = vector.broadcast %cst_81 : f32 to vector<8x128xf32>
      %181 = arith.maximumf %179, %180 : vector<8x128xf32>
      %182 = arith.subf %181, %169 : vector<8x128xf32>
      %183 = arith.mulf %178, %182 : vector<8x128xf32>
      %184 = arith.addf %169, %183 : vector<8x128xf32>
      %185 = vector.extract_strided_slice %172 {offsets = [0, 256], sizes = [8, 128], strides = [1, 1]} : vector<8x512xf32> to vector<8x128xf32>
      %186 = arith.negf %185 : vector<8x128xf32>
      %187 = math.exp %186 : vector<8x128xf32>
      %cst_82 = arith.constant 1.000000e+00 : f32
      %188 = vector.broadcast %cst_82 : f32 to vector<8x128xf32>
      %189 = arith.addf %188, %187 : vector<8x128xf32>
      %190 = arith.divf %188, %189 : vector<8x128xf32>
      %191 = vector.extract_strided_slice %172 {offsets = [0, 384], sizes = [8, 128], strides = [1, 1]} : vector<8x512xf32> to vector<8x128xf32>
      %192 = arith.negf %191 : vector<8x128xf32>
      %193 = math.exp %192 : vector<8x128xf32>
      %cst_83 = arith.constant 1.000000e+00 : f32
      %194 = vector.broadcast %cst_83 : f32 to vector<8x128xf32>
      %195 = arith.addf %194, %193 : vector<8x128xf32>
      %196 = arith.divf %194, %195 : vector<8x128xf32>
      %197 = arith.subf %196, %169 : vector<8x128xf32>
      %198 = arith.mulf %190, %197 : vector<8x128xf32>
      %199 = arith.addf %169, %198 : vector<8x128xf32>
      %c0_84 = arith.constant 0 : index
      %c0_85 = arith.constant 0 : index
      %200 = vector.load %arg16[%c0_84, %c0_85] : memref<128x256xbf16, #tpu.memory_space<vmem>>, vector<128x256xbf16>
      %201 = arith.truncf %184 : vector<8x128xf32> to vector<8x128xbf16>
      %cst_86 = arith.constant dense<0.000000e+00> : vector<8x256xf32>
      %202 = tpu.matmul %201, %200, %cst_86 {dimension_numbers = #tpu.dot_dimension_numbers<[1], [0], [0], [1], [0, 0, 1, 1], [], []>} : vector<8x128xbf16>, vector<128x256xbf16>, vector<8x256xf32> -> vector<8x256xf32>
      %203 = vector.extract_strided_slice %202 {offsets = [0, 0], sizes = [8, 128], strides = [1, 1]} : vector<8x256xf32> to vector<8x128xf32>
      %204 = arith.negf %203 : vector<8x128xf32>
      %205 = math.exp %204 : vector<8x128xf32>
      %cst_87 = arith.constant 1.000000e+00 : f32
      %206 = vector.broadcast %cst_87 : f32 to vector<8x128xf32>
      %207 = arith.addf %206, %205 : vector<8x128xf32>
      %208 = arith.divf %206, %207 : vector<8x128xf32>
      %209 = vector.extract_strided_slice %202 {offsets = [0, 128], sizes = [8, 128], strides = [1, 1]} : vector<8x256xf32> to vector<8x128xf32>
      %210 = arith.subf %209, %184 : vector<8x128xf32>
      %211 = arith.mulf %208, %210 : vector<8x128xf32>
      %212 = arith.addf %184, %211 : vector<8x128xf32>
      %213 = arith.addf %169, %184 : vector<8x128xf32>
      %214 = arith.addf %213, %199 : vector<8x128xf32>
      %215 = arith.addf %214, %212 : vector<8x128xf32>
      %cst_88 = arith.constant 2.500000e-01 : f32
      %216 = vector.broadcast %cst_88 : f32 to vector<8x128xf32>
      %217 = arith.mulf %215, %216 : vector<8x128xf32>
      %c0_89 = arith.constant 0 : index
      %c128 = arith.constant 128 : index
      %218 = vector.load %arg23[%c0_89, %c128] : memref<8x512xf32, #tpu.memory_space<vmem>>, vector<8x128xf32>
      tpu.vector_store %arg23[%c0_89, %c128], %217 {strides = array<i32>} : memref<8x512xf32, #tpu.memory_space<vmem>>, vector<8x128xf32>,
      %219 = vector.extract_strided_slice %59 {offsets = [16, 0], sizes = [8, 256], strides = [1, 1]} : vector<32x256xf32> to vector<8x256xf32>
      %c0_90 = arith.constant 0 : index
      %c0_91 = arith.constant 0 : index
      %220 = vector.load %arg13[%c0_90, %c0_91] : memref<128x256xbf16, #tpu.memory_space<vmem>>, vector<128x256xbf16>
      %221 = arith.truncf %217 : vector<8x128xf32> to vector<8x128xbf16>
      %cst_92 = arith.constant dense<0.000000e+00> : vector<8x256xf32>
      %222 = tpu.matmul %221, %220, %cst_92 {dimension_numbers = #tpu.dot_dimension_numbers<[1], [0], [0], [1], [0, 0, 1, 1], [], []>} : vector<8x128xbf16>, vector<128x256xbf16>, vector<8x256xf32> -> vector<8x256xf32>
      %223 = arith.addf %219, %222 : vector<8x256xf32>
      %224 = vector.extract_strided_slice %223 {offsets = [0, 0], sizes = [8, 128], strides = [1, 1]} : vector<8x256xf32> to vector<8x128xf32>
      %225 = arith.negf %224 : vector<8x128xf32>
      %226 = math.exp %225 : vector<8x128xf32>
      %cst_93 = arith.constant 1.000000e+00 : f32
      %227 = vector.broadcast %cst_93 : f32 to vector<8x128xf32>
      %228 = arith.addf %227, %226 : vector<8x128xf32>
      %229 = arith.divf %227, %228 : vector<8x128xf32>
      %230 = vector.extract_strided_slice %223 {offsets = [0, 128], sizes = [8, 128], strides = [1, 1]} : vector<8x256xf32> to vector<8x128xf32>
      %231 = math.tanh %230 : vector<8x128xf32>
      %232 = arith.subf %231, %217 : vector<8x128xf32>
      %233 = arith.mulf %229, %232 : vector<8x128xf32>
      %234 = arith.addf %217, %233 : vector<8x128xf32>
      %c0_94 = arith.constant 0 : index
      %c0_95 = arith.constant 0 : index
      %235 = vector.load %arg14[%c0_94, %c0_95] : memref<128x256xbf16, #tpu.memory_space<vmem>>, vector<128x256xbf16>
      %236 = arith.truncf %234 : vector<8x128xf32> to vector<8x128xbf16>
      %cst_96 = arith.constant dense<0.000000e+00> : vector<8x256xf32>
      %237 = tpu.matmul %236, %235, %cst_96 {dimension_numbers = #tpu.dot_dimension_numbers<[1], [0], [0], [1], [0, 0, 1, 1], [], []>} : vector<8x128xbf16>, vector<128x256xbf16>, vector<8x256xf32> -> vector<8x256xf32>
      %238 = vector.extract_strided_slice %237 {offsets = [0, 0], sizes = [8, 128], strides = [1, 1]} : vector<8x256xf32> to vector<8x128xf32>
      %239 = arith.negf %238 : vector<8x128xf32>
      %240 = math.exp %239 : vector<8x128xf32>
      %cst_97 = arith.constant 1.000000e+00 : f32
      %241 = vector.broadcast %cst_97 : f32 to vector<8x128xf32>
      %242 = arith.addf %241, %240 : vector<8x128xf32>
      %243 = arith.divf %241, %242 : vector<8x128xf32>
      %244 = vector.extract_strided_slice %237 {offsets = [0, 128], sizes = [8, 128], strides = [1, 1]} : vector<8x256xf32> to vector<8x128xf32>
      %245 = math.tanh %244 : vector<8x128xf32>
      %246 = arith.subf %245, %234 : vector<8x128xf32>
      %247 = arith.mulf %243, %246 : vector<8x128xf32>
      %248 = arith.addf %234, %247 : vector<8x128xf32>
      %c0_98 = arith.constant 0 : index
      %c0_99 = arith.constant 0 : index
      %249 = vector.load %arg15[%c0_98, %c0_99] : memref<128x512xbf16, #tpu.memory_space<vmem>>, vector<128x512xbf16>
      %250 = arith.truncf %248 : vector<8x128xf32> to vector<8x128xbf16>
      %cst_100 = arith.constant dense<0.000000e+00> : vector<8x512xf32>
      %251 = tpu.matmul %250, %249, %cst_100 {dimension_numbers = #tpu.dot_dimension_numbers<[1], [0], [0], [1], [0, 0, 1, 1], [], []>} : vector<8x128xbf16>, vector<128x512xbf16>, vector<8x512xf32> -> vector<8x512xf32>
      %252 = vector.extract_strided_slice %251 {offsets = [0, 0], sizes = [8, 128], strides = [1, 1]} : vector<8x512xf32> to vector<8x128xf32>
      %253 = arith.negf %252 : vector<8x128xf32>
      %254 = math.exp %253 : vector<8x128xf32>
      %cst_101 = arith.constant 1.000000e+00 : f32
      %255 = vector.broadcast %cst_101 : f32 to vector<8x128xf32>
      %256 = arith.addf %255, %254 : vector<8x128xf32>
      %257 = arith.divf %255, %256 : vector<8x128xf32>
      %258 = vector.extract_strided_slice %251 {offsets = [0, 128], sizes = [8, 128], strides = [1, 1]} : vector<8x512xf32> to vector<8x128xf32>
      %cst_102 = arith.constant 0.000000e+00 : f32
      %259 = vector.broadcast %cst_102 : f32 to vector<8x128xf32>
      %260 = arith.maximumf %258, %259 : vector<8x128xf32>
      %261 = arith.subf %260, %248 : vector<8x128xf32>
      %262 = arith.mulf %257, %261 : vector<8x128xf32>
      %263 = arith.addf %248, %262 : vector<8x128xf32>
      %264 = vector.extract_strided_slice %251 {offsets = [0, 256], sizes = [8, 128], strides = [1, 1]} : vector<8x512xf32> to vector<8x128xf32>
      %265 = arith.negf %264 : vector<8x128xf32>
      %266 = math.exp %265 : vector<8x128xf32>
      %cst_103 = arith.constant 1.000000e+00 : f32
      %267 = vector.broadcast %cst_103 : f32 to vector<8x128xf32>
      %268 = arith.addf %267, %266 : vector<8x128xf32>
      %269 = arith.divf %267, %268 : vector<8x128xf32>
      %270 = vector.extract_strided_slice %251 {offsets = [0, 384], sizes = [8, 128], strides = [1, 1]} : vector<8x512xf32> to vector<8x128xf32>
      %271 = arith.negf %270 : vector<8x128xf32>
      %272 = math.exp %271 : vector<8x128xf32>
      %cst_104 = arith.constant 1.000000e+00 : f32
      %273 = vector.broadcast %cst_104 : f32 to vector<8x128xf32>
      %274 = arith.addf %273, %272 : vector<8x128xf32>
      %275 = arith.divf %273, %274 : vector<8x128xf32>
      %276 = arith.subf %275, %248 : vector<8x128xf32>
      %277 = arith.mulf %269, %276 : vector<8x128xf32>
      %278 = arith.addf %248, %277 : vector<8x128xf32>
      %c0_105 = arith.constant 0 : index
      %c0_106 = arith.constant 0 : index
      %279 = vector.load %arg16[%c0_105, %c0_106] : memref<128x256xbf16, #tpu.memory_space<vmem>>, vector<128x256xbf16>
      %280 = arith.truncf %263 : vector<8x128xf32> to vector<8x128xbf16>
      %cst_107 = arith.constant dense<0.000000e+00> : vector<8x256xf32>
      %281 = tpu.matmul %280, %279, %cst_107 {dimension_numbers = #tpu.dot_dimension_numbers<[1], [0], [0], [1], [0, 0, 1, 1], [], []>} : vector<8x128xbf16>, vector<128x256xbf16>, vector<8x256xf32> -> vector<8x256xf32>
      %282 = vector.extract_strided_slice %281 {offsets = [0, 0], sizes = [8, 128], strides = [1, 1]} : vector<8x256xf32> to vector<8x128xf32>
      %283 = arith.negf %282 : vector<8x128xf32>
      %284 = math.exp %283 : vector<8x128xf32>
      %cst_108 = arith.constant 1.000000e+00 : f32
      %285 = vector.broadcast %cst_108 : f32 to vector<8x128xf32>
      %286 = arith.addf %285, %284 : vector<8x128xf32>
      %287 = arith.divf %285, %286 : vector<8x128xf32>
      %288 = vector.extract_strided_slice %281 {offsets = [0, 128], sizes = [8, 128], strides = [1, 1]} : vector<8x256xf32> to vector<8x128xf32>
      %289 = arith.subf %288, %263 : vector<8x128xf32>
      %290 = arith.mulf %287, %289 : vector<8x128xf32>
      %291 = arith.addf %263, %290 : vector<8x128xf32>
      %292 = arith.addf %248, %263 : vector<8x128xf32>
      %293 = arith.addf %292, %278 : vector<8x128xf32>
      %294 = arith.addf %293, %291 : vector<8x128xf32>
      %cst_109 = arith.constant 2.500000e-01 : f32
      %295 = vector.broadcast %cst_109 : f32 to vector<8x128xf32>
      %296 = arith.mulf %294, %295 : vector<8x128xf32>
      %c0_110 = arith.constant 0 : index
      %c256 = arith.constant 256 : index
      %297 = vector.load %arg23[%c0_110, %c256] : memref<8x512xf32, #tpu.memory_space<vmem>>, vector<8x128xf32>
      tpu.vector_store %arg23[%c0_110, %c256], %296 {strides = array<i32>} : memref<8x512xf32, #tpu.memory_space<vmem>>, vector<8x128xf32>,
      %298 = vector.extract_strided_slice %59 {offsets = [24, 0], sizes = [8, 256], strides = [1, 1]} : vector<32x256xf32> to vector<8x256xf32>
      %c0_111 = arith.constant 0 : index
      %c0_112 = arith.constant 0 : index
      %299 = vector.load %arg13[%c0_111, %c0_112] : memref<128x256xbf16, #tpu.memory_space<vmem>>, vector<128x256xbf16>
      %300 = arith.truncf %296 : vector<8x128xf32> to vector<8x128xbf16>
      %cst_113 = arith.constant dense<0.000000e+00> : vector<8x256xf32>
      %301 = tpu.matmul %300, %299, %cst_113 {dimension_numbers = #tpu.dot_dimension_numbers<[1], [0], [0], [1], [0, 0, 1, 1], [], []>} : vector<8x128xbf16>, vector<128x256xbf16>, vector<8x256xf32> -> vector<8x256xf32>
      %302 = arith.addf %298, %301 : vector<8x256xf32>
      %303 = vector.extract_strided_slice %302 {offsets = [0, 0], sizes = [8, 128], strides = [1, 1]} : vector<8x256xf32> to vector<8x128xf32>
      %304 = arith.negf %303 : vector<8x128xf32>
      %305 = math.exp %304 : vector<8x128xf32>
      %cst_114 = arith.constant 1.000000e+00 : f32
      %306 = vector.broadcast %cst_114 : f32 to vector<8x128xf32>
      %307 = arith.addf %306, %305 : vector<8x128xf32>
      %308 = arith.divf %306, %307 : vector<8x128xf32>
      %309 = vector.extract_strided_slice %302 {offsets = [0, 128], sizes = [8, 128], strides = [1, 1]} : vector<8x256xf32> to vector<8x128xf32>
      %310 = math.tanh %309 : vector<8x128xf32>
      %311 = arith.subf %310, %296 : vector<8x128xf32>
      %312 = arith.mulf %308, %311 : vector<8x128xf32>
      %313 = arith.addf %296, %312 : vector<8x128xf32>
      %c0_115 = arith.constant 0 : index
      %c0_116 = arith.constant 0 : index
      %314 = vector.load %arg14[%c0_115, %c0_116] : memref<128x256xbf16, #tpu.memory_space<vmem>>, vector<128x256xbf16>
      %315 = arith.truncf %313 : vector<8x128xf32> to vector<8x128xbf16>
      %cst_117 = arith.constant dense<0.000000e+00> : vector<8x256xf32>
      %316 = tpu.matmul %315, %314, %cst_117 {dimension_numbers = #tpu.dot_dimension_numbers<[1], [0], [0], [1], [0, 0, 1, 1], [], []>} : vector<8x128xbf16>, vector<128x256xbf16>, vector<8x256xf32> -> vector<8x256xf32>
      %317 = vector.extract_strided_slice %316 {offsets = [0, 0], sizes = [8, 128], strides = [1, 1]} : vector<8x256xf32> to vector<8x128xf32>
      %318 = arith.negf %317 : vector<8x128xf32>
      %319 = math.exp %318 : vector<8x128xf32>
      %cst_118 = arith.constant 1.000000e+00 : f32
      %320 = vector.broadcast %cst_118 : f32 to vector<8x128xf32>
      %321 = arith.addf %320, %319 : vector<8x128xf32>
      %322 = arith.divf %320, %321 : vector<8x128xf32>
      %323 = vector.extract_strided_slice %316 {offsets = [0, 128], sizes = [8, 128], strides = [1, 1]} : vector<8x256xf32> to vector<8x128xf32>
      %324 = math.tanh %323 : vector<8x128xf32>
      %325 = arith.subf %324, %313 : vector<8x128xf32>
      %326 = arith.mulf %322, %325 : vector<8x128xf32>
      %327 = arith.addf %313, %326 : vector<8x128xf32>
      %c0_119 = arith.constant 0 : index
      %c0_120 = arith.constant 0 : index
      %328 = vector.load %arg15[%c0_119, %c0_120] : memref<128x512xbf16, #tpu.memory_space<vmem>>, vector<128x512xbf16>
      %329 = arith.truncf %327 : vector<8x128xf32> to vector<8x128xbf16>
      %cst_121 = arith.constant dense<0.000000e+00> : vector<8x512xf32>
      %330 = tpu.matmul %329, %328, %cst_121 {dimension_numbers = #tpu.dot_dimension_numbers<[1], [0], [0], [1], [0, 0, 1, 1], [], []>} : vector<8x128xbf16>, vector<128x512xbf16>, vector<8x512xf32> -> vector<8x512xf32>
      %331 = vector.extract_strided_slice %330 {offsets = [0, 0], sizes = [8, 128], strides = [1, 1]} : vector<8x512xf32> to vector<8x128xf32>
      %332 = arith.negf %331 : vector<8x128xf32>
      %333 = math.exp %332 : vector<8x128xf32>
      %cst_122 = arith.constant 1.000000e+00 : f32
      %334 = vector.broadcast %cst_122 : f32 to vector<8x128xf32>
      %335 = arith.addf %334, %333 : vector<8x128xf32>
      %336 = arith.divf %334, %335 : vector<8x128xf32>
      %337 = vector.extract_strided_slice %330 {offsets = [0, 128], sizes = [8, 128], strides = [1, 1]} : vector<8x512xf32> to vector<8x128xf32>
      %cst_123 = arith.constant 0.000000e+00 : f32
      %338 = vector.broadcast %cst_123 : f32 to vector<8x128xf32>
      %339 = arith.maximumf %337, %338 : vector<8x128xf32>
      %340 = arith.subf %339, %327 : vector<8x128xf32>
      %341 = arith.mulf %336, %340 : vector<8x128xf32>
      %342 = arith.addf %327, %341 : vector<8x128xf32>
      %343 = vector.extract_strided_slice %330 {offsets = [0, 256], sizes = [8, 128], strides = [1, 1]} : vector<8x512xf32> to vector<8x128xf32>
      %344 = arith.negf %343 : vector<8x128xf32>
      %345 = math.exp %344 : vector<8x128xf32>
      %cst_124 = arith.constant 1.000000e+00 : f32
      %346 = vector.broadcast %cst_124 : f32 to vector<8x128xf32>
      %347 = arith.addf %346, %345 : vector<8x128xf32>
      %348 = arith.divf %346, %347 : vector<8x128xf32>
      %349 = vector.extract_strided_slice %330 {offsets = [0, 384], sizes = [8, 128], strides = [1, 1]} : vector<8x512xf32> to vector<8x128xf32>
      %350 = arith.negf %349 : vector<8x128xf32>
      %351 = math.exp %350 : vector<8x128xf32>
      %cst_125 = arith.constant 1.000000e+00 : f32
      %352 = vector.broadcast %cst_125 : f32 to vector<8x128xf32>
      %353 = arith.addf %352, %351 : vector<8x128xf32>
      %354 = arith.divf %352, %353 : vector<8x128xf32>
      %355 = arith.subf %354, %327 : vector<8x128xf32>
      %356 = arith.mulf %348, %355 : vector<8x128xf32>
      %357 = arith.addf %327, %356 : vector<8x128xf32>
      %c0_126 = arith.constant 0 : index
      %c0_127 = arith.constant 0 : index
      %358 = vector.load %arg16[%c0_126, %c0_127] : memref<128x256xbf16, #tpu.memory_space<vmem>>, vector<128x256xbf16>
      %359 = arith.truncf %342 : vector<8x128xf32> to vector<8x128xbf16>
      %cst_128 = arith.constant dense<0.000000e+00> : vector<8x256xf32>
      %360 = tpu.matmul %359, %358, %cst_128 {dimension_numbers = #tpu.dot_dimension_numbers<[1], [0], [0], [1], [0, 0, 1, 1], [], []>} : vector<8x128xbf16>, vector<128x256xbf16>, vector<8x256xf32> -> vector<8x256xf32>
      %361 = vector.extract_strided_slice %360 {offsets = [0, 0], sizes = [8, 128], strides = [1, 1]} : vector<8x256xf32> to vector<8x128xf32>
      %362 = arith.negf %361 : vector<8x128xf32>
      %363 = math.exp %362 : vector<8x128xf32>
      %cst_129 = arith.constant 1.000000e+00 : f32
      %364 = vector.broadcast %cst_129 : f32 to vector<8x128xf32>
      %365 = arith.addf %364, %363 : vector<8x128xf32>
      %366 = arith.divf %364, %365 : vector<8x128xf32>
      %367 = vector.extract_strided_slice %360 {offsets = [0, 128], sizes = [8, 128], strides = [1, 1]} : vector<8x256xf32> to vector<8x128xf32>
      %368 = arith.subf %367, %342 : vector<8x128xf32>
      %369 = arith.mulf %366, %368 : vector<8x128xf32>
      %370 = arith.addf %342, %369 : vector<8x128xf32>
      %371 = arith.addf %327, %342 : vector<8x128xf32>
      %372 = arith.addf %371, %357 : vector<8x128xf32>
      %373 = arith.addf %372, %370 : vector<8x128xf32>
      %cst_130 = arith.constant 2.500000e-01 : f32
      %374 = vector.broadcast %cst_130 : f32 to vector<8x128xf32>
      %375 = arith.mulf %373, %374 : vector<8x128xf32>
      %c0_131 = arith.constant 0 : index
      %c384 = arith.constant 384 : index
      %376 = vector.load %arg23[%c0_131, %c384] : memref<8x512xf32, #tpu.memory_space<vmem>>, vector<8x128xf32>
      tpu.vector_store %arg23[%c0_131, %c384], %375 {strides = array<i32>} : memref<8x512xf32, #tpu.memory_space<vmem>>, vector<8x128xf32>,
      %c0_132 = arith.constant 0 : index
      %c0_133 = arith.constant 0 : index
      %377 = vector.load %arg22[%c0_132, %c0_133] : memref<8x128xf32, #tpu.memory_space<vmem>>, vector<8x128xf32>
      tpu.vector_store %arg22[%c0_132, %c0_133], %375 {strides = array<i32>} : memref<8x128xf32, #tpu.memory_space<vmem>>, vector<8x128xf32>,
      %c0_134 = arith.constant 0 : index
      %c0_135 = arith.constant 0 : index
      %378 = vector.load %arg20[%c0_134, %c0_135] : memref<1x128xf32, #tpu.memory_space<vmem>>, vector<1x128xf32>
      %379 = vector.shape_cast %378 : vector<1x128xf32> to vector<1x128xf32>
      %380 = vector.broadcast %379 : vector<1x128xf32> to vector<8x128xf32>
      %c0_136 = arith.constant 0 : index
      %c0_137 = arith.constant 0 : index
      %381 = vector.load %arg21[%c0_136, %c0_137] : memref<8x128xf32, #tpu.memory_space<vmem>>, vector<8x128xf32>
      tpu.vector_store %arg21[%c0_136, %c0_137], %380 {strides = array<i32>} : memref<8x128xf32, #tpu.memory_space<vmem>>, vector<8x128xf32>,
    } else {
    }
    %c0 = arith.constant 0 : index
    %c0_1 = arith.constant 0 : index
    %3 = vector.load %arg23[%c0, %c0_1] : memref<8x512xf32, #tpu.memory_space<vmem>>, vector<8x512xf32>
    %c0_2 = arith.constant 0 : index
    %c0_3 = arith.constant 0 : index
    %4 = vector.load %arg17[%c0_2, %c0_3] : memref<512x512xbf16, #tpu.memory_space<vmem>>, vector<512x512xbf16>
    %5 = arith.truncf %3 : vector<8x512xf32> to vector<8x512xbf16>
    %cst = arith.constant dense<0.000000e+00> : vector<8x512xf32>
    %6 = tpu.matmul %5, %4, %cst {dimension_numbers = #tpu.dot_dimension_numbers<[1], [0], [0], [1], [0, 0, 1, 1], [], []>} : vector<8x512xbf16>, vector<512x512xbf16>, vector<8x512xf32> -> vector<8x512xf32>
    %7 = arith.index_cast %arg0 : i32 to index
    %c0_4 = arith.constant 0 : index
    %c0_5 = arith.constant 0 : index
    %8 = vector.load %arg18[%7, %c0_4, %c0_5] : memref<2x1x512xf32, #tpu.memory_space<vmem>>, vector<1x1x512xf32>
    %9 = vector.shape_cast %8 : vector<1x1x512xf32> to vector<1x512xf32>
    %10 = vector.broadcast %9 : vector<1x512xf32> to vector<8x512xf32>
    %11 = arith.addf %6, %10 : vector<8x512xf32>
    %cst_6 = arith.constant 0.000000e+00 : f32
    %12 = vector.broadcast %cst_6 : f32 to vector<8x512xf32>
    %13 = arith.maximumf %11, %12 : vector<8x512xf32>
    %c0_7 = arith.constant 0 : index
    %c0_8 = arith.constant 0 : index
    %14 = vector.load %arg21[%c0_7, %c0_8] : memref<8x128xf32, #tpu.memory_space<vmem>>, vector<8x128xf32>
    %15 = arith.index_cast %arg0 : i32 to index
    %c0_9 = arith.constant 0 : index
    %c0_10 = arith.constant 0 : index
    %16 = vector.load %arg19[%15, %c0_9, %c0_10] : memref<2x512x128xbf16, #tpu.memory_space<vmem>>, vector<1x512x128xbf16>
    %17 = vector.shape_cast %16 : vector<1x512x128xbf16> to vector<512x128xbf16>
    %18 = arith.truncf %13 : vector<8x512xf32> to vector<8x512xbf16>
    %cst_11 = arith.constant dense<0.000000e+00> : vector<8x128xf32>
    %19 = tpu.matmul %18, %17, %cst_11 {dimension_numbers = #tpu.dot_dimension_numbers<[1], [0], [0], [1], [0, 0, 1, 1], [], []>} : vector<8x512xbf16>, vector<512x128xbf16>, vector<8x128xf32> -> vector<8x128xf32>
    %20 = arith.addf %14, %19 : vector<8x128xf32>
    %c0_12 = arith.constant 0 : index
    %c0_13 = arith.constant 0 : index
    %21 = vector.load %arg21[%c0_12, %c0_13] : memref<8x128xf32, #tpu.memory_space<vmem>>, vector<8x128xf32>
    tpu.vector_store %arg21[%c0_12, %c0_13], %20 {strides = array<i32>} : memref<8x128xf32, #tpu.memory_space<vmem>>, vector<8x128xf32>,
    return
  }
  func.func @transform_0(%arg0: i32) -> (i32, i32) {
    %c0_i32 = arith.constant 0 : i32
    %c0_i32_0 = arith.constant 0 : i32
    %c0_i32_1 = arith.constant 0 : i32
    return %c0_i32, %c0_i32_0 : i32, i32
  }
  func.func @transform_1(%arg0: i32) -> (i32, i32) {
    %c0_i32 = arith.constant 0 : i32
    %c0_i32_0 = arith.constant 0 : i32
    %c0_i32_1 = arith.constant 0 : i32
    return %c0_i32, %c0_i32_0 : i32, i32
  }
  func.func @transform_2(%arg0: i32) -> (i32, i32) {
    %c0_i32 = arith.constant 0 : i32
    %c0_i32_0 = arith.constant 0 : i32
    %c0_i32_1 = arith.constant 0 : i32
    return %c0_i32, %c0_i32_0 : i32, i32
  }
  func.func @transform_3(%arg0: i32) -> (i32, i32) {
    %c0_i32 = arith.constant 0 : i32
    %c0_i32_0 = arith.constant 0 : i32
    %c0_i32_1 = arith.constant 0 : i32
    return %c0_i32, %c0_i32_0 : i32, i32
  }
  func.func @transform_4(%arg0: i32) -> (i32, i32) {
    %c0_i32 = arith.constant 0 : i32
    %c0_i32_0 = arith.constant 0 : i32
    %c0_i32_1 = arith.constant 0 : i32
    return %c0_i32, %c0_i32_0 : i32, i32
  }
  func.func @transform_5(%arg0: i32) -> (i32, i32) {
    %c0_i32 = arith.constant 0 : i32
    %c0_i32_0 = arith.constant 0 : i32
    %c0_i32_1 = arith.constant 0 : i32
    return %c0_i32, %c0_i32_0 : i32, i32
  }
  func.func @transform_6(%arg0: i32) -> (i32, i32) {
    %c0_i32 = arith.constant 0 : i32
    %c0_i32_0 = arith.constant 0 : i32
    %c0_i32_1 = arith.constant 0 : i32
    return %c0_i32, %c0_i32_0 : i32, i32
  }
  func.func @transform_7(%arg0: i32) -> (i32, i32) {
    %c0_i32 = arith.constant 0 : i32
    %c0_i32_0 = arith.constant 0 : i32
    %c0_i32_1 = arith.constant 0 : i32
    return %c0_i32, %c0_i32_0 : i32, i32
  }
  func.func @transform_8(%arg0: i32) -> (i32, i32) {
    %c0_i32 = arith.constant 0 : i32
    %c0_i32_0 = arith.constant 0 : i32
    %c0_i32_1 = arith.constant 0 : i32
    return %c0_i32, %c0_i32_0 : i32, i32
  }
  func.func @transform_9(%arg0: i32) -> (i32, i32) {
    %c0_i32 = arith.constant 0 : i32
    %c0_i32_0 = arith.constant 0 : i32
    %c0_i32_1 = arith.constant 0 : i32
    return %c0_i32, %c0_i32_0 : i32, i32
  }
  func.func @transform_10(%arg0: i32) -> (i32, i32) {
    %c0_i32 = arith.constant 0 : i32
    %c0_i32_0 = arith.constant 0 : i32
    %c0_i32_1 = arith.constant 0 : i32
    return %c0_i32, %c0_i32_0 : i32, i32
  }
  func.func @transform_11(%arg0: i32) -> (i32, i32) {
    %c0_i32 = arith.constant 0 : i32
    %c0_i32_0 = arith.constant 0 : i32
    %c0_i32_1 = arith.constant 0 : i32
    return %c0_i32, %c0_i32_0 : i32, i32
  }
  func.func @transform_12(%arg0: i32) -> (i32, i32) {
    %c0_i32 = arith.constant 0 : i32
    %c0_i32_0 = arith.constant 0 : i32
    %c0_i32_1 = arith.constant 0 : i32
    return %c0_i32, %c0_i32_0 : i32, i32
  }
  func.func @transform_13(%arg0: i32) -> (i32, i32) {
    %c0_i32 = arith.constant 0 : i32
    %c0_i32_0 = arith.constant 0 : i32
    %c0_i32_1 = arith.constant 0 : i32
    return %c0_i32, %c0_i32_0 : i32, i32
  }
  func.func @transform_14(%arg0: i32) -> (i32, i32) {
    %c0_i32 = arith.constant 0 : i32
    %c0_i32_0 = arith.constant 0 : i32
    %c0_i32_1 = arith.constant 0 : i32
    return %c0_i32, %c0_i32_0 : i32, i32
  }
  func.func @transform_15(%arg0: i32) -> (i32, i32) {
    %c0_i32 = arith.constant 0 : i32
    %c0_i32_0 = arith.constant 0 : i32
    %c0_i32_1 = arith.constant 0 : i32
    return %c0_i32, %c0_i32_0 : i32, i32
  }
  func.func @transform_16(%arg0: i32) -> (i32, i32) {
    %c0_i32 = arith.constant 0 : i32
    %c0_i32_0 = arith.constant 0 : i32
    return %c0_i32, %arg0 : i32, i32
  }
  func.func @transform_17(%arg0: i32) -> (i32, i32, i32) {
    %c0_i32 = arith.constant 0 : i32
    %c0_i32_0 = arith.constant 0 : i32
    %c0_i32_1 = arith.constant 0 : i32
    %c0_i32_2 = arith.constant 0 : i32
    return %c0_i32, %c0_i32_0, %c0_i32_1 : i32, i32, i32
  }
  func.func @transform_18(%arg0: i32) -> (i32, i32, i32) {
    %c0_i32 = arith.constant 0 : i32
    %c0_i32_0 = arith.constant 0 : i32
    %c0_i32_1 = arith.constant 0 : i32
    %c0_i32_2 = arith.constant 0 : i32
    return %c0_i32, %c0_i32_0, %c0_i32_1 : i32, i32, i32
  }
  func.func @transform_19(%arg0: i32) -> (i32, i32) {
    %c0_i32 = arith.constant 0 : i32
    %c0_i32_0 = arith.constant 0 : i32
    %c0_i32_1 = arith.constant 0 : i32
    return %c0_i32, %c0_i32_0 : i32, i32
  }
  func.func @transform_20(%arg0: i32) -> (i32, i32) {
    %c0_i32 = arith.constant 0 : i32
    %c0_i32_0 = arith.constant 0 : i32
    %c0_i32_1 = arith.constant 0 : i32
    return %c0_i32, %c0_i32_0 : i32, i32
  }
  func.func @transform_21(%arg0: i32) -> (i32, i32) {
    %c0_i32 = arith.constant 0 : i32
    %c0_i32_0 = arith.constant 0 : i32
    %c0_i32_1 = arith.constant 0 : i32
    return %c0_i32, %c0_i32_0 : i32, i32
  }
}

</mosaic_0001>

<bundles_post_ra>
// kernel: rnn_model_forward.1
= control target key start
LH: loop header
LB: loop body
LE: loop exit
PB: predicated region body
PF: predicated region fallthrough
CT: control target
= control target key end

     0   :  { %s9500_s0 = inlined_call_operand.vmem [shape: bf16[32,64], index: 0, kind: input, shape index: {}]   ;;  %s9501_s1 = inlined_call_operand.vmem [shape: bf16[64,24], index: 1, kind: input, shape index: {}]   ;;  %s9502_s2 = inlined_call_operand.hbm [shape: f32[1,24], index: 2, kind: input, shape index: {}]   ;;  %s9503_s3 = inlined_call_operand.hbm [shape: bf16[24,32], index: 3, kind: input, shape index: {}]   ;;  %s9504_s4 = inlined_call_operand.hbm [shape: f32[1,32], index: 4, kind: input, shape index: {}]   ;;  %s9505_s5 = inlined_call_operand.hbm [shape: bf16[24,64], index: 5, kind: input, shape index: {}]   ;;  %s9506_s6 = inlined_call_operand.vmem [shape: bf16[32,64], index: 6, kind: input, shape index: {}]   ;;  %s9507_s7 = inlined_call_operand.hbm [shape: f32[1,64], index: 7, kind: input, shape index: {}]   ;;  %s9508_s8 = inlined_call_operand.hbm [shape: bf16[32,256], index: 8, kind: input, shape index: {}]   ;;  %s9509_s9 = inlined_call_operand.vmem [shape: bf16[64,256], index: 9, kind: input, shape index: {}]   ;;  %s9510_s10 = inlined_call_operand.hbm [shape: f32[1,256], index: 10, kind: input, shape index: {}]   ;;  %s9511_s11 = inlined_call_operand.vmem [shape: f32[8,128], index: 11, kind: input, shape index: {}]   ;;  %s9512_s12 = inlined_call_operand.vmem [shape: bf16[128,256], index: 12, kind: input, shape index: {}]   ;;  %s9513_s13 = inlined_call_operand.hbm [shape: bf16[128,256], index: 13, kind: input, shape index: {}]   ;;  %s9514_s14 = inlined_call_operand.vmem [shape: bf16[128,512], index: 14, kind: input, shape index: {}]   ;;  %s9515_s15 = inlined_call_operand.hbm [shape: bf16[128,256], index: 15, kind: input, shape index: {}]   ;;  %s9516_s16 = inlined_call_operand.hbm [shape: bf16[512,1024], index: 16, kind: input, shape index: {}]   ;;  %s9517_s17 = inlined_call_operand.hbm [shape: f32[2,1,512], index: 17, kind: input, shape index: {}]   ;;  %s9518_s18 = inlined_call_operand.hbm [shape: bf16[2,512,128], index: 18, kind: input, shape index: {}]   ;;  %s9519_s19 = inlined_call_operand.hbm [shape: f32[1,128], index: 19, kind: input, shape index: {}]   ;;  %s9520_s20 = inlined_call_operand.vmem [shape: f32[8,128], index: 20, kind: output, shape index: {0}]   ;;  %s9521_s21 = inlined_call_operand.hbm [shape: f32[8,128], index: 21, kind: output, shape index: {1}]  }
   0x1   :  { %9573 = sst [smem:[#allocation59_spill]] %s9500_s0 }
   0x2   :  { %9574 = sst [smem:[#allocation60_spill]] %s9501_s1 }
   0x3   :  { %9575 = sst [smem:[#allocation61_spill]] %s9502_s2 }
   0x4   :  { %9576 = sst [smem:[#allocation62_spill]] %s9503_s3 }
   0x5   :  { %9577 = sst [smem:[#allocation63_spill]] %s9504_s4 }
   0x6   :  { %9578 = sst [smem:[#allocation64_spill]] %s9505_s5 }
   0x7   :  { %9579 = sst [smem:[#allocation65_spill]] %s9507_s7 }
   0x8   :  { %9580 = sst [smem:[#allocation66_spill]] %s9508_s8 }
   0x9   :  { %9581 = sst [smem:[#allocation67_spill]] %s9514_s14 }
   0xa   :  { %9582 = sst [smem:[#allocation68_spill]] %s9520_s20 }
   0xb   :  { %9583 = sst [smem:[#allocation69_spill]] %s9521_s21 }
   0xc   :  { %27 = vsyncpa [#allocation4], 0 }
   0xd   :  { %28 = vsyncpa [#allocation7], 0 }
   0xe   :  { %29 = vsyncpa [#allocation10], 0 }
   0xf   :  { %30 = vsyncpa [#allocation13], 0 }
  0x10   :  { %31 = vsyncpa [#allocation16], 0 }
  0x11   :  { %32 = vsyncpa [#allocation19], 0 }
  0x12   :  { %34 = vsyncpa [#allocation19 + $0x1], 0 }
  0x13   :  { %35 = vsyncpa [#allocation22], 0 }
  0x14   :  { %36 = vsyncpa [#allocation5], 0  ;;  %s7926_s2 = smov 0   ;;  %s7928_s25 = smov 0  }
  0x15   :  { %s7930_s26 = smov 0   ;;  %s7932_s27 = smov 0  }
  0x16 LB: > { %s7794_s3 = smov [#allocation6]   ;;  %s7947_s29 = sadd.s32 4294967295, %s7792_s27   ;;  %s7792_s27 = sphi %s7932_s27, %s9711_s27   ;;  %s7788_s26 = sphi %s7930_s26, %s9710_s26   ;;  %s7784_s25 = sphi %s7928_s25, %s9709_s25   ;;  %s7780_s2 = sphi %s7926_s2, %s9708_s2  }
  0x17   : > { %s543_s28 = sshll.u32 %s7794_s3, 4  ;;  %p5896_p0 = scmp.ge.s32.totalorder %s7792_s27, 1  ;;  %s544_s28 = int_to_ptr.vmem [resolvable:$true] %s543_s28 }
  0x18   : > { %p9532_p1 = scmp.eq.s32.totalorder %s7947_s29, 0  ;;  %p514_p2 = scmp.lt.s32.totalorder %s7792_s27, 3 }
  0x19   : > { %s7795_s4 = smov [#allocation9]   ;;  %s7796_s22 = smov [#allocation12]  }
  0x1a   : > { %p7953_p4 = pnand %p5896_p0, %p514_p2  ;;  %s567_s30 = sshll.u32 %s7795_s4, 4  ;;  %s7965_s30 = int_to_ptr.vmem [resolvable:$true] %s567_s30 }
  0x1b   : > { %s594_s23 = sshll.u32 %s7796_s22, 4  ;;  %s7373_s24 = scalar_lea.vmem %s544_s28, 192  ;;  %s7967_s23 = int_to_ptr.vmem [resolvable:$true] %s594_s23 }
  0x1c   : > { %s9584_s0 = scalar_select %p7953_p4, 1, 0 }
  0x1d   : > { %p6635_p5 = pneg %p7953_p4  ;;  %p7374_p8 = scmp.ne.s32.totalorder %s544_s28, %s7373_s24 }
  0x1e   : > { %p7381_p11 = scmp.lt.s32.totalorder %s544_s28, %s544_s28  ;;  %p7382_p12 = scmp.lt.s32.totalorder %s7373_s24, %s7373_s24 }
  0x1f   : > { %p7961_p6 = pnand %p6635_p5, %p9532_p1 }
  0x20   : > { %p7383_p13 = por %p7382_p12, %p7381_p11 }
  0x21   : > { %p7971_p7 = pneg %p7961_p6 }
  0x23   : > { %p7376_p9 = pnand %p7374_p8, %p7971_p7 }
  0x25   : > { %p7377_p10 = pneg %p7376_p9 }
  0x27   : > { %p7384_p0 = pnand %p7383_p13, %p7377_p10 }
  0x29   : > { %7387 = shalt.err (!%p7384_p0)
}
  0x2a   : > { %s9526_s3 = smov 64   ;;  %s9528_s4 = smov 4  }
  0x2b   : > { %s9587_s20 = sld [smem:[#allocation62_spill]]  ;;  %s7399_s14 = scalar_lea.vmem %s7965_s30, 192 }
  0x2c   : > { %p7400_p2 = scmp.ne.s32.totalorder %s7965_s30, %s7399_s14  ;;  %p7407_p9 = scmp.lt.s32.totalorder %s7965_s30, %s7965_s30 }
  0x2d   : > { %p7408_p10 = scmp.lt.s32.totalorder %s7399_s14, %s7399_s14 }
  0x2e   : > { %p7402_p5 = pnand %p7400_p2, %p7971_p7 }
  0x2f   : > { %p7409_p11 = por %p7408_p10, %p7407_p9 }
  0x30   : > { %p7403_p8 = pneg %p7402_p5 }
  0x31   : > { %6641 = dma.hbm_to_vmem [thread:$0]  (!%p7961_p6), %s9587_s20, 192, %s544_s28, [#allocation7], %s9526_s3, %s9526_s3, %s9528_s4  }
  0x32   : > { %p7410_p12 = pnand %p7409_p11, %p7403_p8 }
  0x34   : > { %7413 = shalt.err (!%p7410_p12)
}
  0x35   : > { %s9588_s20 = sld [smem:[#allocation64_spill]]  ;;  %s7425_s28 = scalar_lea.vmem %s7967_s23, 512 }
  0x36   : > { %p7426_p13 = scmp.ne.s32.totalorder %s7967_s23, %s7425_s28  ;;  %p7433_p5 = scmp.lt.s32.totalorder %s7967_s23, %s7967_s23 }
  0x37   : > { %p7434_p8 = scmp.lt.s32.totalorder %s7425_s28, %s7425_s28 }
  0x38   : > { %p7428_p0 = pnand %p7426_p13, %p7971_p7 }
  0x39   : > { %p7435_p9 = por %p7434_p8, %p7433_p5 }
  0x3a   : > { %p7429_p2 = pneg %p7428_p0 }
  0x3b   : > { %6647 = dma.hbm_to_vmem [thread:$0]  (!%p7961_p6), %s9588_s20, 192, %s7965_s30, [#allocation10], %s9526_s3, %s9526_s3, %s9528_s4  }
  0x3c   : > { %p7436_p10 = pnand %p7435_p9, %p7429_p2 }
  0x3e   : > { %7439 = shalt.err (!%p7436_p10)
}
  0x3f   : > { %s9530_s14 = smov 128   ;;  %s9531_s22 = smov 8  }
  0x40   : > { %s9589_s8 = sld [smem:[#allocation66_spill]]  ;;  %s7801_s21 = smov [#allocation15]  }
  0x41   : > { %s627_s20 = sshll.u32 %s7801_s21, 4  ;;  %s7802_s28 = smov [#allocation20]   ;;  %s628_s20 = int_to_ptr.vmem [resolvable:$true] %s627_s20 }
  0x42   : > { %s656_s3 = sshll.u32 %s7802_s28, 4  ;;  %s7451_s4 = scalar_lea.vmem %s628_s20, 2048  ;;  %s657_s3 = int_to_ptr.vmem [resolvable:$true] %s656_s3 }
  0x43   : > { %p7452_p11 = scmp.ne.s32.totalorder %s628_s20, %s7451_s4  ;;  %p7459_p0 = scmp.lt.s32.totalorder %s628_s20, %s628_s20 }
  0x44   : > { %p7460_p2 = scmp.lt.s32.totalorder %s7451_s4, %s7451_s4 }
  0x45   : > { %p7454_p12 = pnand %p7452_p11, %p7971_p7 }
  0x46   : > { %6653 = dma.hbm_to_vmem [thread:$0]  (!%p7961_p6), %s9589_s8, 512, %s7967_s23, [#allocation13], %s9530_s14, %s9530_s14, %s9531_s22  }
  0x47   : > { %p7455_p13 = pneg %p7454_p12  ;;  %p7461_p5 = por %p7460_p2, %p7459_p0 }
  0x49   : > { %p7462_p8 = pnand %p7461_p5, %p7455_p13 }
  0x4b   : > { %7465 = shalt.err (!%p7462_p8)
}
  0x4c   : > { %6659 = dma.hbm_to_vmem [thread:$0]  (!%p7961_p6), %s9513_s13, 2048, %s628_s20, [#allocation16], %s9530_s14, %s9530_s14, %s9531_s22  }
  0x4d   : > { %s7477_s24 = scalar_lea.vmem %s657_s3, 128  ;;  %p7485_p12 = scmp.lt.s32.totalorder %s657_s3, %s657_s3 }
  0x4e   : > { %p7478_p9 = scmp.ne.s32.totalorder %s657_s3, %s7477_s24  ;;  %p7486_p0 = scmp.lt.s32.totalorder %s7477_s24, %s7477_s24 }
  0x50   : > { %p7480_p10 = pnand %p7478_p9, %p7971_p7  ;;  %p7487_p13 = por %p7486_p0, %p7485_p12 }
  0x52   : > { %p7481_p11 = pneg %p7480_p10 }
  0x54   : > { %p7488_p2 = pnand %p7487_p13, %p7481_p11 }
  0x56   : > { %7491 = shalt.err (!%p7488_p2)
}
  0x57   : > { %s9590_s4 = smov 4   ;;  %s9591_s21 = smov 64  }
  0x58   : > { %6665 = dma.hbm_to_vmem [thread:$0]  (!%p7961_p6), %s9517_s17, 128, %s657_s3, [#allocation19], %s9591_s21, %s9591_s21, %s9590_s4  }
  0x59   : > { %s7803_s20 = smov [#allocation21]   ;;  %s7804_s14 = smov [#allocation3]  }
  0x5a   : > { %s669_s30 = sshll.u32 %s7803_s20, 4  ;;  %s533_s22 = sshll.u32 %s7804_s14, 4  ;;  %s670_s30 = int_to_ptr.vmem [resolvable:$true] %s669_s30  ;;  %s534_s22 = int_to_ptr.vmem [resolvable:$true] %s533_s22 }
  0x5b   : > { %s7503_s8 = scalar_lea.vmem %s670_s30, 8192  ;;  %p7511_p10 = scmp.lt.s32.totalorder %s670_s30, %s670_s30 }
  0x5c   : > { %p7504_p5 = scmp.ne.s32.totalorder %s670_s30, %s7503_s8  ;;  %p7512_p11 = scmp.lt.s32.totalorder %s7503_s8, %s7503_s8 }
  0x5e   : > { %p7506_p8 = pnand %p7504_p5, %p7971_p7  ;;  %p7513_p12 = por %p7512_p11, %p7511_p10 }
  0x60   : > { %p7507_p9 = pneg %p7506_p8 }
  0x62   : > { %p7514_p0 = pnand %p7513_p12, %p7507_p9 }
  0x64   : > { %7517 = shalt.err (!%p7514_p0)
}
  0x65   : > { %6668 = dma.hbm_to_vmem [thread:$0]  (!%p7961_p6), %s9518_s18, 8192, %s670_s30, [#allocation22], %s9591_s21, %s9591_s21, %s9590_s4  }
  0x66   : > { %s7529_s14 = scalar_lea.vmem %s534_s22, 16  ;;  %s7536_s8 = scalar_lea.vmem %s534_s22, 32 }
  0x67   : > { %p7530_p13 = scmp.ne.s32.totalorder %s534_s22, %s7529_s14  ;;  %p7537_p8 = scmp.lt.s32.totalorder %s534_s22, %s534_s22 }
  0x68   : > { %p7538_p9 = scmp.lt.s32.totalorder %s7536_s8, %s7529_s14 }
  0x69   : > { %p7532_p2 = pnand %p7530_p13, %p7971_p7 }
  0x6a   : > { %p7539_p10 = por %p7538_p9, %p7537_p8 }
  0x6b   : > { %p7533_p5 = pneg %p7532_p2 }
  0x6d   : > { %p7540_p11 = pnand %p7539_p10, %p7533_p5 }
  0x6f   : > { %7543 = shalt.err (!%p7540_p11)
}
  0x70   : > { %s9592_s20 = sld [smem:[#allocation61_spill]]  ;;  %s7805_s4 = smov [#allocation8]  }
  0x71   : > { %s557_s21 = sshll.u32 %s7805_s4, 4  ;;  %s7806_s30 = smov [#allocation11]   ;;  %s558_s21 = int_to_ptr.vmem [resolvable:$true] %s557_s21 }
  0x72   : > { %s584_s3 = sshll.u32 %s7806_s30, 4  ;;  %s7555_s24 = scalar_lea.vmem %s558_s21, 16  ;;  %s585_s3 = int_to_ptr.vmem [resolvable:$true] %s584_s3 }
  0x73   : > { %p7556_p12 = scmp.ne.s32.totalorder %s558_s21, %s7555_s24  ;;  %s7562_s14 = scalar_lea.vmem %s558_s21, 32 }
  0x74   : > { %p7563_p2 = scmp.lt.s32.totalorder %s558_s21, %s558_s21  ;;  %p7564_p5 = scmp.lt.s32.totalorder %s7562_s14, %s7555_s24 }
  0x75   : > { %p7558_p0 = pnand %p7556_p12, %p7971_p7 }
  0x76   : > { %6638 = dma.hbm_to_vmem [thread:$0]  (!%p7961_p6), %s9592_s20, 16, %s534_s22, [#allocation4]  }
  0x77   : > { %p7559_p13 = pneg %p7558_p0  ;;  %p7565_p8 = por %p7564_p5, %p7563_p2 }
  0x79   : > { %p7566_p9 = pnand %p7565_p8, %p7559_p13 }
  0x7b   : > { %7569 = shalt.err (!%p7566_p9)
}
  0x7c   : > { %s9593_s28 = sld [smem:[#allocation63_spill]]  ;;  %s7581_s23 = scalar_lea.vmem %s585_s3, 16 }
  0x7d   : > { %p7582_p10 = scmp.ne.s32.totalorder %s585_s3, %s7581_s23  ;;  %s7588_s20 = scalar_lea.vmem %s585_s3, 32 }
  0x7e   : > { %p7589_p0 = scmp.lt.s32.totalorder %s585_s3, %s585_s3  ;;  %p7590_p3 = scmp.lt.s32.totalorder %s7588_s20, %s7581_s23 }
  0x7f   : > { %p7584_p11 = pnand %p7582_p10, %p7971_p7 }
  0x80   : > { %p7591_p1 = por %p7590_p3, %p7589_p0 }
  0x81   : > { %p7585_p12 = pneg %p7584_p11 }
  0x82   : > { %6644 = dma.hbm_to_vmem [thread:$0]  (!%p7961_p6), %s9593_s28, 16, %s558_s21, [#allocation7]  }
  0x83   : > { %p7592_p2 = pnand %p7591_p1, %p7585_p12 }
  0x85   : > { %7595 = shalt.err (!%p7592_p2)
}
  0x86   : > { %s9594_s7 = sld [smem:[#allocation65_spill]]  ;;  %s7807_s21 = smov [#allocation14]  }
  0x87   : > { %s611_s24 = sshll.u32 %s7807_s21, 4  ;;  %s7808_s14 = smov [#allocation17]   ;;  %s612_s24 = int_to_ptr.vmem [resolvable:$true] %s611_s24 }
  0x88   : > { %s643_s8 = sshll.u32 %s7808_s14, 4  ;;  %s7607_s22 = scalar_lea.vmem %s612_s24, 32  ;;  %s644_s8 = int_to_ptr.vmem [resolvable:$true] %s643_s8 }
  0x89   : > { %p7608_p13 = scmp.ne.s32.totalorder %s612_s24, %s7607_s22  ;;  %p7615_p3 = scmp.lt.s32.totalorder %s612_s24, %s612_s24 }
  0x8a   : > { %p7616_p1 = scmp.lt.s32.totalorder %s7607_s22, %s7607_s22 }
  0x8b   : > { %p7610_p5 = pnand %p7608_p13, %p7971_p7 }
  0x8c   : > { %6650 = dma.hbm_to_vmem [thread:$0]  (!%p7961_p6), %s9594_s7, 16, %s585_s3, [#allocation10]  }
  0x8d   : > { %p7611_p8 = pneg %p7610_p5  ;;  %p7617_p9 = por %p7616_p1, %p7615_p3 }
  0x8f   : > { %p7618_p10 = pnand %p7617_p9, %p7611_p8 }
  0x91   : > { %7621 = shalt.err (!%p7618_p10)
}
  0x92   : > { %6656 = dma.hbm_to_vmem [thread:$0]  (!%p7961_p6), %s9510_s10, 32, %s612_s24, [#allocation13]  }
  0x93   : > { %s7633_s3 = scalar_lea.vmem %s644_s8, 2048  ;;  %p7641_p2 = scmp.lt.s32.totalorder %s644_s8, %s644_s8 }
  0x94   : > { %p7634_p11 = scmp.ne.s32.totalorder %s644_s8, %s7633_s3  ;;  %p7642_p13 = scmp.lt.s32.totalorder %s7633_s3, %s7633_s3 }
  0x96   : > { %p7636_p12 = pnand %p7634_p11, %p7971_p7  ;;  %p7643_p5 = por %p7642_p13, %p7641_p2 }
  0x98   : > { %p7637_p0 = pneg %p7636_p12 }
  0x9a   : > { %p7644_p4 = pnand %p7643_p5, %p7637_p0 }
  0x9c   : > { %7647 = shalt.err (!%p7644_p4)
}
  0x9d   : > { %s9595_s20 = smov 8   ;;  %s9596_s4 = smov 128  }
  0x9e   : > { %6662 = dma.hbm_to_vmem [thread:$0]  (!%p7961_p6), %s9515_s15, 2048, %s644_s8, [#allocation16], %s9596_s4, %s9596_s4, %s9595_s20  }
  0x9f   : > { %s7809_s24 = smov [#allocation23]  }
  0xa0   : > { %s683_s14 = sshll.u32 %s7809_s24, 4  ;;  %s684_s14 = int_to_ptr.vmem [resolvable:$true] %s683_s14 }
  0xa1   : > { %s7659_s22 = scalar_lea.vmem %s684_s14, 16  ;;  %s7666_s28 = scalar_lea.vmem %s684_s14, 32 }
  0xa2   : > { %p7660_p8 = scmp.ne.s32.totalorder %s684_s14, %s7659_s22  ;;  %p7667_p4 = scmp.lt.s32.totalorder %s684_s14, %s684_s14 }
  0xa3   : > { %p7668_p9 = scmp.lt.s32.totalorder %s7666_s28, %s7659_s22 }
  0xa4   : > { %p7662_p3 = pnand %p7660_p8, %p7971_p7 }
  0xa5   : > { %p7669_p10 = por %p7668_p9, %p7667_p4 }
  0xa6   : > { %p7663_p1 = pneg %p7662_p3 }
  0xa8   : > { %p7670_p11 = pnand %p7669_p10, %p7663_p1 }
  0xaa   : > { %7673 = shalt.err (!%p7670_p11)
}
  0xab   : > { %6671 = dma.hbm_to_vmem [thread:$0]  (!%p7961_p6), %s9519_s19, 16, %s684_s14, [#allocation22]  }
  0xac   : > { %s8091_s1 = sadd.s32 1, %s7792_s27   ;;  %s385_s5 = sadd.s32 1, %s7788_s26 }
  0xad   : > { %s382_s8 = ssub.s32 %s7792_s27, %s8091_s1  ;;  %p392_p7 = scmp.ne.s32.totalorder %s7788_s26, %s7784_s25 }
  0xae   : > { %p383_p12 = scmp.eq.s32.totalorder %s382_s8, 0  ;;  %p393_p0 = scmp.eq.s32.totalorder %s7792_s27, 0 }
  0xaf   : > { %p398_p2 = scmp.ne.s32.totalorder %s7784_s25, %s7780_s2  ;;  %p6688_p13 = scmp.lt.s32.totalorder %s7792_s27, 2 }
  0xb0   : > { %s8103_s20 = scalar_select %p383_p12, %s7788_s26, %s385_s5  }
  0xb1   : > { %p394_p5 = por %p393_p0, %p392_p7  ;;  %p9597_p8 = scmp.eq.s32.totalorder %s7947_s29, 0 }
  0xb2   : > { %s694_s30 = sand.u32 1, %s7792_s27   ;;  %s696_s21 = sand.u32 1, %s7788_s26  }
  0xb3   : > { %p8107_p3 = por %p9597_p8, %p398_p2  ;;  %s5910_s24 = sshll.u32 %s696_s21, 10 }
  0xb4   : > { %s6479_s14 = sshll.u32 %s7792_s27, 8  ;;  %s698_s2 = scalar_lea.vmem [#allocation18], %s5910_s24 }
  0xb5   : > { %s9598_s4 = scalar_select %p8107_p3, 1, 0 }
  0xb6   : > { %s8117_s23 = scalar_lea.hbm %s9516_s16, %s6479_s14  ;;  %s705_s3 = sshll.u32 %s698_s2, 4  ;;  %s8119_s3 = int_to_ptr.vmem [resolvable:$true] %s705_s3 }
  0xb7   : > { %p8121_p6 = pnand %p6688_p13, %p394_p5  ;;  %s8125_s8 = scalar_lea.sflag [#allocation19], %s694_s30 }
  0xb8   : > { %s7674_s27 = scalar_lea.hbm %s8117_s23, 16384  ;;  %s7679_s24 = scalar_lea.hbm %s9516_s16, 32768 }
  0xb9   : > { %p7675_p1 = scmp.ne.s32.totalorder %s8117_s23, %s7674_s27  ;;  %p7676_p4 = pneg %p8121_p6 }
  0xba   : > { %p7680_p11 = scmp.lt.s32.totalorder %s8117_s23, %s9516_s16  ;;  %p7681_p7 = scmp.lt.s32.totalorder %s7679_s24, %s7674_s27 }
  0xbb   : > { %p7677_p9 = pnand %p7676_p4, %p7675_p1 }
  0xbc   : > { %p7682_p12 = por %p7681_p7, %p7680_p11 }
  0xbd   : > { %p7678_p10 = pneg %p7677_p9 }
  0xbf   : > { %p7683_p0 = pnand %p7682_p12, %p7678_p10 }
  0xc1   : > { %7686 = shalt.err (!%p7683_p0)
}
  0xc2   : > { %s7687_s30 = scalar_lea.vmem %s8119_s3, 16384  ;;  %s7810_s2 = smov [#allocation18]  }
  0xc3   : > { %p7688_p2 = scmp.ne.s32.totalorder %s8119_s3, %s7687_s30  ;;  %s7692_s7 = sshll.u32 %s7810_s2, 4  ;;  %s7693_s7 = int_to_ptr.vmem [resolvable:$false] %s7692_s7 }
  0xc4   : > { %s7694_s21 = scalar_lea.vmem %s7693_s7, 32768  ;;  %p7695_p8 = scmp.lt.s32.totalorder %s8119_s3, %s7693_s7 }
  0xc5   : > { %p7690_p13 = pnand %p7688_p2, %p7676_p4  ;;  %p7696_p1 = scmp.lt.s32.totalorder %s7694_s21, %s7687_s30 }
  0xc7   : > { %p7691_p5 = pneg %p7690_p13  ;;  %p7697_p9 = por %p7696_p1, %p7695_p8 }
  0xc9   : > { %p7698_p3 = pnand %p7697_p9, %p7691_p5 }
  0xcb   : > { %7701 = shalt.err (!%p7698_p3)
}
  0xcc   : > { %s7811_s27 = smov 512   ;;  %s7812_s14 = smov 256  }
  0xcd   : > { %s7813_s24 = smov 16   ;;  %p9600_p4 = scmp.ne.s32.totalorder %s9584_s0, 0 }
  0xce   : > { %6675 = dma.hbm_to_vmem [thread:$0]  (!%p8121_p6), %s8117_s23, 16384, %s8119_s3, %s8125_s8, %s7811_s27, %s7812_s14, %s7813_s24  }
  0xcf   : > { %717 = sbr.rel (%p9600_p4) target bundleno = 5145 (0x1419), region = 100  ;;  %p9601_p10 = scmp.eq.s32.totalorder (!%p9600_p4), %s7947_s29, 0 }
  0xd4   : > { %7743 = dma.done.wait (%p9601_p10), [#allocation4], 16   ;;  %p9602_p11 = pmov %p9601_p10 }
  0xd5   : > { %p9603_p3 = pmov %p9601_p10 }
  0xd6   : > { %7745 = vsyncadd (%p9602_p11), [#allocation4], 4294967280 }
  0xd7   : > { %7747 = dma.done.wait (%p9603_p3), [#allocation7], 208   ;;  %p9604_p7 = pmov %p9603_p3 }
  0xd8   : > { %p9605_p12 = pmov %p9603_p3 }
  0xd9   : > { %7749 = vsyncadd (%p9604_p7), [#allocation7], 4294967088 }
  0xda   : > { %7751 = dma.done.wait (%p9605_p12), [#allocation10], 208   ;;  %p9606_p6 = pmov %p9603_p3 }
  0xdb   : > { %p9607_p0 = pmov %p9603_p3 }
  0xdc   : > { %7753 = vsyncadd (%p9606_p6), [#allocation10], 4294967088 }
  0xdd   : > { %7755 = dma.done.wait (%p9607_p0), [#allocation13], 544   ;;  %p9608_p2 = pmov %p9607_p0 }
  0xde   : > { %p9609_p13 = pmov %p9607_p0 }
  0xdf   : > { %7757 = vsyncadd (%p9608_p2), [#allocation13], 4294966752 }
  0xe0   : > { %7759 = dma.done.wait (%p9609_p13), [#allocation16], 4096   ;;  %p9610_p5 = pmov %p9607_p0 }
  0xe1   : > { %s755_s7 = sand.u32 1, %s7947_s29   ;;  %s757_s0 = sand.u32 1, %s7784_s25  }
  0xe2   : > { %7761 = vsyncadd (%p9610_p5), [#allocation16], 4294963200  ;;  %s5923_s23 = sshll.u32 %s757_s0, 10  ;;  %s756_s3 = scalar_lea.sflag [#allocation19], %s755_s7 }
  0xe3   : > { %s8170_s5 = scalar_lea.vmem [#allocation18], %s5923_s23  ;;  %p9611_p8 = scmp.ne.s32.totalorder %s9598_s4, 0 }
  0xe5   : > { %7763 = dma.done.wait (%p9611_p8), %s756_s3, 16384  }
  0xe6   : > { %7765 = vsyncadd (%p9611_p8), %s756_s3, 4294950912  ;;  %p9612_p1 = pmov %p9607_p0 }
  0xe7   : > { %p9613_p9 = pmov %p9607_p0 }
  0xe8   : > { %7767 = dma.done.wait (%p9612_p1), [#allocation19], 128  }
  0xe9   : > { %7769 = vsyncadd (%p9613_p9), [#allocation19], 4294967168  ;;  %p9614_p4 = pmov %p9607_p0 }
  0xea   : > { %p9615_p10 = pmov %p9607_p0 }
  0xeb   : > { %7771 = dma.done.wait (%p9614_p4), [#allocation22], 8208  }
  0xec   : > { %7773 = vsyncadd (%p9615_p10), [#allocation22], 4294959088  ;;  %p9616_p11 = scmp.ne.s32.totalorder %s7947_s29, 0 }
  0xee   : > { %830 = sbr.rel (%p9616_p11) target bundleno = 4608 (0x1200), region = 156 }
  0xf3   : > { %s9617_s28 = sld [smem:[#allocation60_spill]]  ;;  %vm884_vm0 = vcmask 523264   ;;  %v6762_v6 = vld [vmem:[#allocation6 + $0x8] ss:$0 sps:$4 sm:$0xff]   ;;  %v6763_v7 = vld [vmem:[#allocation9 + $0x8] ss:$0 sps:$4 sm:$0xff]  }
  0xf4   : > { %s9618_s24 = sld [smem:[#allocation59_spill]]  ;;  %vm972_vm1 = vcmask 1043456   ;;  %v6764_v10 = vld [vmem:[#allocation6] sm:$0xff]   ;;  %v6765_v11 = vld [vmem:[#allocation9] sm:$0xff]   ;;  %v5928_v14 = vld [vmem:[#allocation3] ss:$0 sm:$0xff] }
  0xf5   : > { %6579 = vmatprep.subr.msk.bf16.mxu1 %vm972_vm1, %v6762_v6  ;;  %v974_v8 = vsel %vm972_vm1, %v6762_v6, 0  ;;  %v1116_v9 = vsel %vm972_vm1, %v6763_v7, 0  ;;  %vm965_vm2 = vcmask 195584   ;;  %v6769_v27 = vld [vmem:[#allocation12 + $0x14] ss:$8 sps:$4 sm:$0xff]   ;;  %v6766_v28 = vld [vmem:[%s9506_s6 + $0x8] sm:$0xff]  }
  0xf6   : > { %6556 = vmatpush3.bf16.msra.mxu1 %v974_v8  ;;  %v6767_v29 = vld [vmem:[#allocation12 + $0x10] ss:$8 sps:$4 sm:$0xff]   ;;  %v6773_v30 = vld [vmem:[#allocation12 + $0x4] ss:$8 sps:$4 sm:$0xff]   ;;  %v6771_v32 = vld [vmem:[#allocation12] ss:$8 sps:$4 sm:$0xff]  }
  0xf7   : > { %6557 = vmatprep.subr.bf16.mxu1 %v6764_v10  ;;  %v6770_v31 = vld [vmem:[%s9506_s6] sm:$0xff]   ;;  %v9535_v33 = vmov 0   ;;  %v8216_v34 = vld [vmem:[%s9512_s12 + $0x74] ss:$8 sps:$4 sm:$0xff]   ;;  %v5937_v38 = vld [vmem:[#allocation8] ss:$0 sm:$0xff] }
  0xf8   : > { %v6791_v35 = vld [vmem:[%s9509_s9 + $0x34] ss:$8 sps:$4 sm:$0xff]   ;;  %vm1050_vm3 = vcmask 261120   ;;  %v8225_v50 = vld [vmem:[%s9512_s12 + $0x70] ss:$8 sps:$4 sm:$0xff]   ;;  %s9625_s7 = sld [smem:[#allocation67_spill]] }
  0xf9   : > { %v6756_v0 = vld [vmem:[%s9617_s28 + $0x18] sm:$0xff]   ;;  %v6757_v1 = vld [vmem:[%s9617_s28 + $0x10] sm:$0xff]   ;;  %v6758_v2 = vld [vmem:[%s9617_s28 + $0x8] sm:$0xff]   ;;  %s9705_s30 = sld [smem:[#allocation68_spill]] }
  0xfa   : > { %6543 = vmatprep.subr.bf16.mxu0 %v6756_v0  ;;  %v6760_v3 = vld [vmem:[%s9618_s24] sm:$0xff]   ;;  %v6761_v5 = vld [vmem:[%s9618_s24 + $0x8] sm:$0xff]   ;;  %6558 = vmatpush3.bf16.msra.mxu1 %v6764_v10  ;;  %v6789_v51 = vld [vmem:[%s9509_s9 + $0x30] ss:$8 sps:$4 sm:$0xff]  }
  0xfb   : > { %6544 = vmatpush3.bf16.msra.mxu0 %v6756_v0  ;;  %v6759_v4 = vld [vmem:[%s9617_s28] sm:$0xff]   ;;  %6551 = vmatprep.mubr.msk.bf16.mxu0 %vm884_vm0, %v6760_v3  ;;  %v8249_v55 = vld [vmem:[%s9512_s12 + $0x54] ss:$8 sps:$4 sm:$0xff]   ;;  %v8256_v56 = vld [vmem:[%s9512_s12 + $0x50] ss:$8 sps:$4 sm:$0xff]  }
  0xfc   : > { %6545 = vmatprep.subr.bf16.mxu0 %v6757_v1  ;;  %6563 = vmatprep.subr.bf16.mxu1 %v6766_v28  ;;  %v8233_v53 = vld [vmem:[%s9512_s12 + $0x64] ss:$8 sps:$4 sm:$0xff]   ;;  %v8243_v54 = vld [vmem:[%s9512_s12 + $0x60] ss:$8 sps:$4 sm:$0xff]   ;;  %v8276_v59 = vld [vmem:[%s9512_s12 + $0x34] ss:$8 sps:$4 sm:$0xff]  }
  0xfd   : > { %v8262_v57 = vld [vmem:[%s9512_s12 + $0x44] ss:$8 sps:$4 sm:$0xff]   ;;  %v8270_v58 = vld [vmem:[%s9512_s12 + $0x40] ss:$8 sps:$4 sm:$0xff]   ;;  %v8282_v60 = vld [vmem:[%s9512_s12 + $0x30] ss:$8 sps:$4 sm:$0xff]  }
  0xfe   : > { %v8289_v61 = vld [vmem:[%s9512_s12 + $0x24] ss:$8 sps:$4 sm:$0xff]   ;;  %v8294_v62 = vld [vmem:[%s9512_s12 + $0x20] ss:$8 sps:$4 sm:$0xff]   ;;  %v6803_v3 = vld [vmem:[%s9509_s9 + $0x14] ss:$8 sps:$4 sm:$0xff]  }
  0xff   : > { %6546 = vmatpush3.bf16.msra.mxu0 %v6757_v1  ;;  %v6797_v63 = vld [vmem:[%s9509_s9 + $0x24] ss:$8 sps:$4 sm:$0xff]   ;;  %v6795_v0 = vld [vmem:[%s9509_s9 + $0x20] ss:$8 sps:$4 sm:$0xff]   ;;  %v8307_v1 = vld [vmem:[%s9512_s12 + $0x14] ss:$8 sps:$4 sm:$0xff]  }
 0x100   : > { %6547 = vmatprep.subr.bf16.mxu0 %v6758_v2  ;;  %v8330_v6 = vld [vmem:[%s9512_s12] ss:$8 sps:$4 sm:$0xff]  }
 0x101   : > { %v6807_v8 = vld [vmem:[%s9509_s9] ss:$8 sps:$4 sm:$0xff]  }
 0x103   : > { %6548 = vmatpush3.bf16.msra.mxu0 %v6758_v2  ;;  %v8312_v2 = vld [vmem:[%s9512_s12 + $0x10] ss:$8 sps:$4 sm:$0xff]  }
 0x104   : > { %6549 = vmatprep.subr.bf16.mxu0 %v6759_v4 }
 0x107   : > { %6550 = vmatpush3.bf16.msra.mxu0 %v6759_v4  ;;  %v6801_v4 = vld [vmem:[%s9509_s9 + $0x10] ss:$8 sps:$4 sm:$0xff]  }
 0x108   : > { %6580 = vmatprep.subr.msk.bf16.mxu0 %vm972_vm1, %v6763_v7  ;;  %v6809_v7 = vld [vmem:[%s9509_s9 + $0x4] ss:$8 sps:$4 sm:$0xff]  }
 0x10a   : > { %6552 = vmatmul.mubr.msk.bf16.vlgmr.msra.gmra.mxu0 %vm884_vm0, %v6761_v5  ;;  %v8325_v5 = vld [vmem:[%s9512_s12 + $0x4] ss:$8 sps:$4 sm:$0xff]  }
 0x10b   : > { %6572 = vmatpush3.bf16.msra.mxu0 %v1116_v9  ;;  %v8343_v9 = vld [vmem:[%s9511_s11] sm:$0xff] }
 0x10c   : > { %6573 = vmatprep.subr.bf16.mxu0 %v6765_v11  ;;  %v1405_v10 = vpack.c.bf16 %v8343_v9, %v8343_v9 }
 0x10f   : > { %6574 = vmatpush3.bf16.msra.mxu0 %v6765_v11 }
 0x110   : > { %1327 = vmatprep.subr.bf16.mxu0 %v6769_v27 }
 0x1ca   : > { %v6553_v12 = vpop.f32.mrf.mxu0 }
 0x1cb   : > { %v934_v18 = vadd.f32 %v6553_v12, %v5928_v14 }
 0x1cc   : > { %v925_v13 = vpop.f32.mrf.mxu0 }
 0x1cd   : > { %v926_v16 = vadd.f32 %v5928_v14, %v925_v13  ;;  %v942_v24 = vmax.f32 %v934_v18, 0.0 }
 0x1ce   : > { %v6554_v15 = vpop.f32.mrf.mxu0 }
 0x1cf   : > { %v937_v17 = vadd.f32 %v6554_v15, %v5928_v14  ;;  %v940_v22 = vmax.f32 %v926_v16, 0.0 }
 0x1d0   : > { %v928_v19 = vpop.f32.mrf.mxu0 }
 0x1d1   : > { %v929_v20 = vadd.f32 %v5928_v14, %v928_v19  ;;  %v943_v21 = vmax.f32 %v937_v17, 0.0  ;;  %v5950_v19 = vld [vmem:[#allocation11] ss:$0 sm:$0xff] }
 0x1d3   : > { %v941_v23 = vmax.f32 %v929_v20, 0.0  ;;  %v948_v26 = vpack.c.bf16 %v943_v21, %v942_v24 }
 0x1d5   : > { %v947_v25 = vpack.c.bf16 %v941_v23, %v940_v22 }
 0x1d7   : > { %6559 = vmatprep.mubr.msk.bf16.mxu1 %vm965_vm2, %v947_v25  ;;  %6575 = vmatprep.mubr.msk.bf16.mxu0 %vm965_vm2, %v947_v25 }
 0x1d8   : > { %6560 = vmatmul.mubr.msk.bf16.vlgmr.msra.gmra.mxu1 %vm965_vm2, %v948_v26  ;;  %6576 = vmatmul.mubr.msk.bf16.vlgmr.msra.gmra.mxu0 %vm965_vm2, %v948_v26 }
 0x1d9   : > { %1328 = vmatpush1.bf16.msra.mxu0 %v6767_v29  ;;  %6564 = vmatpush3.bf16.msra.mxu1 %v6766_v28 }
 0x1da   : > { %1329 = vmatprep.subr.bf16.mxu0 %v6773_v30  ;;  %6565 = vmatprep.subr.bf16.mxu1 %v6770_v31 }
 0x1db   : > { %1347 = vmatprep.mubr.bf16.mxu0 %v9535_v33 }
 0x1dd   : > { %1330 = vmatpush1.bf16.msra.mxu0 %v6771_v32  ;;  %6566 = vmatpush3.bf16.msra.mxu1 %v6770_v31 }
 0x1de   : > { %1486 = vmatprep.subr.bf16.mxu0 %v8216_v34  ;;  %1250 = vmatprep.subr.bf16.mxu1 %v6791_v35 }
 0x298   : > { %v6561_v36 = vpop.f32.mrf.mxu1  ;;  %v6577_v11 = vpop.f32.mrf.mxu0 }
 0x299   : > { %v1019_v42 = vadd.f32 %v6561_v36, %v5937_v38 }
 0x29a   : > { %v1010_v37 = vpop.f32.mrf.mxu1  ;;  %v1152_v12 = vpop.f32.mrf.mxu0 }
 0x29b   : > { %v1011_v40 = vadd.f32 %v5937_v38, %v1010_v37  ;;  %v1027_v48 = vmax.f32 %v1019_v42, 0.0 }
 0x29c   : > { %v6562_v39 = vpop.f32.mrf.mxu1  ;;  %v6578_v14 = vpop.f32.mrf.mxu0 }
 0x29d   : > { %v1022_v41 = vadd.f32 %v6562_v39, %v5937_v38  ;;  %v1025_v46 = vmax.f32 %v1011_v40, 0.0 }
 0x29e   : > { %v1013_v43 = vpop.f32.mrf.mxu1  ;;  %v1155_v18 = vpop.f32.mrf.mxu0 }
 0x29f   : > { %v1014_v44 = vadd.f32 %v5937_v38, %v1013_v43  ;;  %v1028_v45 = vmax.f32 %v1022_v41, 0.0 }
 0x2a1   : > { %v1026_v47 = vmax.f32 %v1014_v44, 0.0  ;;  %v1037_v52 = vpack.c.bf16 %v1028_v45, %v1027_v48  ;;  %v8362_v48 = vld [vmem:[#allocation15 + $0x74] ss:$8 sps:$4 sm:$0xff]  }
 0x2a3   : > { %v1036_v49 = vpack.c.bf16 %v1026_v47, %v1025_v46 }
 0x2a5   : > { %6567 = vmatprep.mubr.msk.bf16.mxu1 %vm1050_vm3, %v1036_v49  ;;  %5965 = vmatmul.mubr.msk.bf16.vlgmr.msra.gmra.mxu0 %vm1050_vm3, %v1036_v49  ;;  %v8364_v49 = vld [vmem:[#allocation15 + $0x70] ss:$8 sps:$4 sm:$0xff]  }
 0x2a6   : > { %6568 = vmatmul.mubr.msk.bf16.vlgmr.msra.gmra.mxu1 %vm1050_vm3, %v1037_v52  ;;  %1357 = vmatprep.mubr.bf16.mxu0 %v9535_v33 }
 0x2a7   : > { %1487 = vmatpush1.bf16.msra.mxu0 %v8225_v50  ;;  %1251 = vmatpush1.bf16.msra.mxu1 %v6789_v51  ;;  %v8368_v51 = vld [vmem:[#allocation15 + $0x64] ss:$8 sps:$4 sm:$0xff]  }
 0x2a8   : > { %1488 = vmatprep.subr.bf16.mxu0 %v8233_v53  ;;  %1274 = vmatprep.mubr.bf16.mxu1 %v9535_v33 }
 0x2a9   : > { %1252 = vmatprep.subr.bf16.mxu1 %v6797_v63  ;;  %v8374_v63 = vld [vmem:[#allocation15 + $0x54] ss:$8 sps:$4 sm:$0xff]  }
 0x2ab   : > { %1489 = vmatpush1.bf16.msra.mxu0 %v8243_v54  ;;  %1253 = vmatpush1.bf16.msra.mxu1 %v6795_v0  ;;  %v8376_v0 = vld [vmem:[#allocation15 + $0x50] ss:$8 sps:$4 sm:$0xff]  }
 0x2ac   : > { %1490 = vmatprep.subr.bf16.mxu0 %v8249_v55  ;;  %1254 = vmatprep.subr.bf16.mxu1 %v6803_v3  ;;  %v8380_v3 = vld [vmem:[#allocation15 + $0x44] ss:$8 sps:$4 sm:$0xff]  }
 0x2ad   : > { %5966 = vmatmul.mubr.msk.bf16.gmra.mxu0 %vm1050_vm3, %v1037_v52  ;;  %v8370_v52 = vld [vmem:[#allocation15 + $0x60] ss:$8 sps:$4 sm:$0xff]  }
 0x2ae   : > { %1518 = vmatprep.mubr.bf16.mxu0 %v9535_v33 }
 0x2af   : > { %1491 = vmatpush1.bf16.msra.mxu0 %v8256_v56  ;;  %1255 = vmatpush1.bf16.msra.mxu1 %v6801_v4  ;;  %v8382_v4 = vld [vmem:[#allocation15 + $0x40] ss:$8 sps:$4 sm:$0xff]  }
 0x2b0   : > { %1492 = vmatprep.subr.bf16.mxu0 %v8262_v57  ;;  %1256 = vmatprep.subr.bf16.mxu1 %v6809_v7  ;;  %v8384_v7 = vld [vmem:[#allocation15 + $0x34] ss:$8 sps:$4 sm:$0xff]  }
 0x2b3   : > { %1493 = vmatpush1.bf16.msra.mxu0 %v8270_v58  ;;  %1257 = vmatpush1.bf16.msra.mxu1 %v6807_v8  ;;  %v8388_v8 = vld [vmem:[#allocation15 + $0x30] ss:$8 sps:$4 sm:$0xff]  }
 0x2b4   : > { %1494 = vmatprep.subr.bf16.mxu0 %v8276_v59  ;;  %1636 = vmatprep.subr.bf16.mxu1 %v8362_v48 }
 0x2b7   : > { %1495 = vmatpush1.bf16.msra.mxu0 %v8282_v60 }
 0x2b8   : > { %1496 = vmatprep.subr.bf16.mxu0 %v8289_v61 }
 0x2bb   : > { %1497 = vmatpush1.bf16.msra.mxu0 %v8294_v62 }
 0x2bc   : > { %1498 = vmatprep.subr.bf16.mxu0 %v8307_v1 }
 0x2bf   : > { %1499 = vmatpush1.bf16.msra.mxu0 %v8312_v2 }
 0x2c0   : > { %1500 = vmatprep.subr.bf16.mxu0 %v8325_v5 }
 0x2c3   : > { %1501 = vmatpush1.bf16.msra.mxu0 %v8330_v6 }
 0x2c6   : > { %1519 = vmatmul.mubr.bf16.vlgmr.msra.gmra.mxu0 %v1405_v10  ;;  %v8391_v10 = vld [vmem:[#allocation15 + $0x24] ss:$8 sps:$4 sm:$0xff]  }
 0x2c7   : > { %1912 = vmatprep.mubr.bf16.mxu0 %v9535_v33 }
 0x365   : > { %v1349_v36 = vpop.f32.mrf.mxu0 }
 0x366   : > { %v6569_v13 = vpop.f32.mrf.mxu1 }
 0x367   : > { %v1161_v25 = vadd.f32 %v6577_v11, %v6569_v13  ;;  %v8352_v37 = vpop.f32.mrf.mxu0  ;;  %v8394_v11 = vld [vmem:[#allocation15 + $0x20] ss:$8 sps:$4 sm:$0xff]   ;;  %v8400_v13 = vld [vmem:[#allocation15 + $0x10] ss:$8 sps:$4 sm:$0xff]  }
 0x368   : > { %v1091_v15 = vpop.f32.mrf.mxu1 }
 0x369   : > { %v1153_v16 = vadd.f32 %v1152_v12, %v1091_v15  ;;  %v1176_v30 = vadd.f32 %v5950_v19, %v1161_v25  ;;  %v1353_v38 = vpop.f32.mrf.mxu0  ;;  %v8397_v12 = vld [vmem:[#allocation15 + $0x14] ss:$8 sps:$4 sm:$0xff]   ;;  %v8406_v15 = vld [vmem:[#allocation15] ss:$8 sps:$4 sm:$0xff]  }
 0x36a   : > { %v6570_v17 = vpop.f32.mrf.mxu1 }
 0x36b   : > { %v1174_v21 = vadd.f32 %v5950_v19, %v1153_v16  ;;  %v1164_v23 = vadd.f32 %v6578_v14, %v6570_v17  ;;  %v1180_v32 = vmax.f32 %v1176_v30, 0.0  ;;  %v1355_v39 = vpop.f32.mrf.mxu0  ;;  %v8403_v14 = vld [vmem:[#allocation15 + $0x4] ss:$8 sps:$4 sm:$0xff]   ;;  %v1370_v16 = vlaneseq }
 0x36c   : > { %v1094_v20 = vpop.f32.mrf.mxu1 }
 0x36d   : > { %v1156_v22 = vadd.f32 %v1155_v18, %v1094_v20  ;;  %v1178_v26 = vmax.f32 %v1174_v21, 0.0  ;;  %v1177_v28 = vadd.f32 %v5950_v19, %v1164_v23  ;;  %v1359_v40 = vpop.f32.mrf.mxu0  ;;  %v1371_v17 = vshrl.u32 %v1370_v16, 7 }
 0x36f   : > { %v1175_v24 = vadd.f32 %v5950_v19, %v1156_v22  ;;  %v1181_v31 = vmax.f32 %v1177_v28, 0.0  ;;  %v8354_v41 = vpop.f32.mrf.mxu0  ;;  %v1372_v18 = vsub.s32 0, %v1371_v17  ;;  %v1368_v19 = vld [vmem:[#allocation14] sm:$0x3]  ;;  %v1376_v25 = vsub.s32 1, %v1371_v17 }
 0x371   : > { %v1179_v27 = vmax.f32 %v1175_v24, 0.0  ;;  %v1195_v35 = vpack.c.bf16 %v1181_v31, %v1180_v32  ;;  %v8356_v42 = vpop.f32.mrf.mxu0  ;;  %v1373_v20 = vrot.slane %v1368_v19, %v1372_v18  ;;  %v8410_v31 = vrot.slane %v1368_v19, %v1376_v25 }
 0x373   : > { %v1194_v29 = vpack.c.bf16 %v1179_v27, %v1178_v26  ;;  %v8358_v43 = vpop.f32.mrf.mxu0  ;;  %9620 = vst [vmem:[#allocation35_spill] sm:$0xff] %v8410_v31 }
 0x374   : > { %9619 = vst [vmem:[#allocation34_spill] sm:$0xff] %v8358_v43  ;;  %v8588_v43 = vld [vmem:[%s9625_s7 + $0x2c] ss:$16 sps:$4 sm:$0xff]  }
 0x375   : > { %5959 = vmatmul.mubr.msk.bf16.vlgmr.msra.gmra.mxu1 %vm884_vm0, %v1194_v29  ;;  %9637 = vst [vmem:[#allocation51_spill] sm:$0xff] %v8588_v43 }
 0x376   : > { %1284 = vmatprep.mubr.bf16.mxu1 %v9535_v33  ;;  %1637 = vmatpush1.bf16.msra.mxu1 %v8364_v49 }
 0x377   : > { %1638 = vmatprep.subr.bf16.mxu1 %v8368_v51 }
 0x37a   : > { %1639 = vmatpush1.bf16.msra.mxu1 %v8370_v52 }
 0x37b   : > { %1640 = vmatprep.subr.bf16.mxu1 %v8374_v63 }
 0x37d   : > { %5960 = vmatmul.mubr.msk.bf16.gmra.mxu1 %vm884_vm0, %v1195_v35 }
 0x37e   : > { %1668 = vmatprep.mubr.bf16.mxu1 %v9535_v33  ;;  %1641 = vmatpush1.bf16.msra.mxu1 %v8376_v0 }
 0x37f   : > { %1642 = vmatprep.subr.bf16.mxu1 %v8380_v3 }
 0x382   : > { %1643 = vmatpush1.bf16.msra.mxu1 %v8382_v4 }
 0x383   : > { %1644 = vmatprep.subr.bf16.mxu1 %v8384_v7 }
 0x386   : > { %v1520_v44 = vpop.f32.mrf.mxu0  ;;  %1645 = vmatpush1.bf16.msra.mxu1 %v8388_v8 }
 0x387   : > { %1646 = vmatprep.subr.bf16.mxu1 %v8391_v10 }
 0x388   : > { %v8360_v45 = vpop.f32.mrf.mxu0 }
 0x38a   : > { %v1524_v46 = vpop.f32.mrf.mxu0  ;;  %1647 = vmatpush1.bf16.msra.mxu1 %v8394_v11 }
 0x38b   : > { %1648 = vmatprep.subr.bf16.mxu1 %v8397_v12 }
 0x38c   : > { %v1525_v47 = vpop.f32.mrf.mxu0 }
 0x38e   : > { %1649 = vmatpush1.bf16.msra.mxu1 %v8400_v13 }
 0x38f   : > { %1650 = vmatprep.subr.bf16.mxu1 %v8403_v14 }
 0x392   : > { %1651 = vmatpush1.bf16.msra.mxu1 %v8406_v15 }
 0x435   : > { %v1276_v21 = vpop.f32.mrf.mxu1 }
 0x436   : > { %v1350_v22 = vadd.f32 %v1349_v36, %v1276_v21 }
 0x437   : > { %v1278_v23 = vpop.f32.mrf.mxu1 }
 0x438   : > { %v1380_v24 = vadd.f32 %v1373_v20, %v1350_v22  ;;  %v1352_v47 = vadd.f32 %v8352_v37, %v1278_v23 }
 0x439   : > { %v1280_v26 = vpop.f32.mrf.mxu1 }
 0x43a   : > { %v1527_v27 = vadd.f32 %v1520_v44, %v1380_v24  ;;  %v1354_v28 = vadd.f32 %v1353_v38, %v1280_v26  ;;  %v1381_v19 = vadd.f32 %v8410_v31, %v1352_v47  ;;  %v8487_v47 = vld [vmem:[%s9625_s7 + $0xa4] ss:$16 sps:$4 sm:$0xff]  }
 0x43b   : > { %v1282_v29 = vpop.f32.mrf.mxu1 }
 0x43c   : > { %v5983_v30 = vmul.f32 -1.442695, %v1527_v27  ;;  %v1356_v32 = vadd.f32 %v1355_v39, %v1282_v29  ;;  %v8412_v35 = vadd.f32 %v1373_v20, %v1354_v28  ;;  %v1528_v37 = vadd.f32 %v8360_v45, %v1381_v19  ;;  %v8439_v45 = vld [vmem:[%s9625_s7 + $0xe4] ss:$16 sps:$4 sm:$0xff]   ;;  %v8454_v28 = vld [vmem:[%s9625_s7 + $0xe8] ss:$16 sps:$4 sm:$0xff]  }
 0x43d   : > { %v1286_v46 = vpop.f32.mrf.mxu1  ;;  %9626 = vst [vmem:[#allocation40_spill] sm:$0xff] %v8454_v28  ;;  %1880 = vmatprep.subr.bf16.mxu0 %v8439_v45  ;;  %v8463_v29 = vld [vmem:[%s9625_s7 + $0xc4] ss:$16 sps:$4 sm:$0xff]   ;;  %v8516_v19 = vld [vmem:[%s9625_s7 + $0x8c] ss:$16 sps:$4 sm:$0xff]  }
 0x43e   : > { %7026 = vpow2.f32 %v5983_v30  ;;  %v1360_v16 = vadd.f32 %v1359_v40, %v1286_v46  ;;  %v8416_v36 = vadd.f32 %v8410_v31, %v1356_v32  ;;  %v8468_v30 = vld [vmem:[%s9625_s7 + $0xcc] ss:$16 sps:$4 sm:$0xff]   ;;  %v8473_v32 = vld [vmem:[%s9625_s7 + $0xc0] ss:$16 sps:$4 sm:$0xff]   ;;  %v8478_v46 = vld [vmem:[%s9625_s7 + $0xc8] ss:$16 sps:$4 sm:$0xff]  }
 0x43f   : > { %v1288_v18 = vpop.f32.mrf.mxu1  ;;  %7028 = vtanh.f32 %v1528_v37  ;;  %9627 = vst [vmem:[#allocation41_spill] sm:$0xff] %v8468_v30  ;;  %9628 = vst [vmem:[#allocation42_spill] sm:$0xff] %v8478_v46  ;;  %v8526_v37 = vld [vmem:[%s9625_s7 + $0x88] ss:$16 sps:$4 sm:$0xff]  }
 0x440   : > { %9621 = vst [vmem:[#allocation36_spill] sm:$0xff] %v8416_v36  ;;  %v1362_v17 = vadd.f32 %v8354_v41, %v1288_v18  ;;  %v8419_v44 = vadd.f32 %v1373_v20, %v1360_v16  ;;  %v8492_v16 = vld [vmem:[%s9625_s7 + $0xac] ss:$16 sps:$4 sm:$0xff]   ;;  %v8497_v18 = vld [vmem:[%s9625_s7 + $0xa0] ss:$16 sps:$4 sm:$0xff]   ;;  %9631 = vst [vmem:[#allocation45_spill] sm:$0xff] %v8516_v19 }
 0x441   : > { %v1290_v38 = vpop.f32.mrf.mxu1  ;;  %9629 = vst [vmem:[#allocation43_spill] sm:$0xff] %v8492_v16  ;;  %9632 = vst [vmem:[#allocation46_spill] sm:$0xff] %v8526_v37 }
 0x442   : > { %9622 = vst [vmem:[#allocation37_spill] sm:$0xff] %v8419_v44  ;;  %v1364_v39 = vadd.f32 %v8356_v42, %v1290_v38  ;;  %v8424_v21 = vadd.f32 %v8410_v31, %v1362_v17  ;;  %v8502_v17 = vld [vmem:[%s9625_s7 + $0xa8] ss:$16 sps:$4 sm:$0xff]   ;;  %v8511_v38 = vld [vmem:[%s9625_s7 + $0x84] ss:$16 sps:$4 sm:$0xff]  }
 0x443   : > { %9630 = vst [vmem:[#allocation44_spill] sm:$0xff] %v8502_v17  ;;  %v8583_v31 = vld [vmem:[%s9625_s7 + $0x24] ss:$16 sps:$4 sm:$0xff]  }
 0x444   : > { %9623 = vst [vmem:[#allocation38_spill] sm:$0xff] %v8424_v21  ;;  %v8426_v22 = vadd.f32 %v1373_v20, %v1364_v39  ;;  %v8444_v20 = vld [vmem:[%s9625_s7 + $0xec] ss:$16 sps:$4 sm:$0xff]   ;;  %v8521_v39 = vld [vmem:[%s9625_s7 + $0x80] ss:$16 sps:$4 sm:$0xff]  }
 0x445   : > { %1921 = vmatprep.subr.bf16.mxu1 %v8444_v20  ;;  %v8598_v21 = vld [vmem:[%s9625_s7 + $0x28] ss:$16 sps:$4 sm:$0xff]   ;;  %v8607_v44 = vld [vmem:[%s9625_s7 + $0x4] ss:$16 sps:$4 sm:$0xff]  }
 0x446   : > { %9624 = vst [vmem:[#allocation39_spill] sm:$0xff] %v8426_v22  ;;  %v8593_v22 = vld [vmem:[%s9625_s7 + $0x20] ss:$16 sps:$4 sm:$0xff]   ;;  %9638 = vst [vmem:[#allocation52_spill] sm:$0xff] %v8598_v21 }
 0x44b   : > { %v7027_v40 = vpop.eup %7026 }
 0x44c   : > { %v1532_v23 = vadd.f32 1.0, %v7027_v40  ;;  %v7029_v24 = vpop.eup %7028  ;;  %v8535_v40 = vld [vmem:[%s9625_s7 + $0x64] ss:$16 sps:$4 sm:$0xff]  }
 0x44d   : > { %v1536_v41 = vsub.f32 %v7029_v24, %v8343_v9  ;;  %v8545_v24 = vld [vmem:[%s9625_s7 + $0x60] ss:$16 sps:$4 sm:$0xff]  }
 0x44e   : > { %7030 = vrcp.f32 %v1532_v23  ;;  %v8540_v23 = vld [vmem:[%s9625_s7 + $0x6c] ss:$16 sps:$4 sm:$0xff]  }
 0x44f   : > { %9633 = vst [vmem:[#allocation47_spill] sm:$0xff] %v8540_v23 }
 0x45b   : > { %v7031_v25 = vpop.eup %7030 }
 0x45c   : > { %v1537_v26 = vmul.f32 %v7031_v25, %v1536_v41  ;;  %v8550_v41 = vld [vmem:[%s9625_s7 + $0x68] ss:$16 sps:$4 sm:$0xff]   ;;  %v8559_v25 = vld [vmem:[%s9625_s7 + $0x44] ss:$16 sps:$4 sm:$0xff]  }
 0x45d   : > { %9634 = vst [vmem:[#allocation48_spill] sm:$0xff] %v8550_v41 }
 0x45e   : > { %v8431_v27 = vadd.f32 %v1537_v26, %v8343_v9  ;;  %v8449_v9 = vld [vmem:[%s9625_s7 + $0xe0] ss:$16 sps:$4 sm:$0xff]   ;;  %v8564_v26 = vld [vmem:[%s9625_s7 + $0x4c] ss:$16 sps:$4 sm:$0xff]  }
 0x45f   : > { %1881 = vmatpush1.bf16.msra.mxu0 %v8449_v9  ;;  %9635 = vst [vmem:[#allocation49_spill] sm:$0xff] %v8564_v26 }
 0x460   : > { %v1555_v42 = vpack.c.bf16 %v8431_v27, %v8431_v27  ;;  %1882 = vmatprep.subr.bf16.mxu0 %v8463_v29 }
 0x462   : > { %1669 = vmatmul.mubr.bf16.vlgmr.msra.gmra.mxu1 %v1555_v42  ;;  %v8569_v42 = vld [vmem:[%s9625_s7 + $0x40] ss:$16 sps:$4 sm:$0xff]  }
 0x463   : > { %1953 = vmatprep.mubr.bf16.mxu1 %v9535_v33  ;;  %1922 = vmatpush1.bf16.msra.mxu1 %v8454_v28  ;;  %v8574_v33 = vld [vmem:[%s9625_s7 + $0x48] ss:$16 sps:$4 sm:$0xff]  }
 0x464   : > { %1923 = vmatprep.subr.bf16.mxu1 %v8468_v30  ;;  %1883 = vmatpush1.bf16.msra.mxu0 %v8473_v32  ;;  %9636 = vst [vmem:[#allocation50_spill] sm:$0xff] %v8574_v33 }
 0x465   : > { %1884 = vmatprep.subr.bf16.mxu0 %v8487_v47 }
 0x467   : > { %1924 = vmatpush1.bf16.msra.mxu1 %v8478_v46 }
 0x468   : > { %1925 = vmatprep.subr.bf16.mxu1 %v8492_v16  ;;  %1885 = vmatpush1.bf16.msra.mxu0 %v8497_v18 }
 0x469   : > { %1886 = vmatprep.subr.bf16.mxu0 %v8511_v38 }
 0x46b   : > { %1926 = vmatpush1.bf16.msra.mxu1 %v8502_v17 }
 0x46c   : > { %1927 = vmatprep.subr.bf16.mxu1 %v8516_v19  ;;  %1887 = vmatpush1.bf16.msra.mxu0 %v8521_v39 }
 0x46d   : > { %1888 = vmatprep.subr.bf16.mxu0 %v8535_v40 }
 0x46f   : > { %1928 = vmatpush1.bf16.msra.mxu1 %v8526_v37 }
 0x470   : > { %1929 = vmatprep.subr.bf16.mxu1 %v8540_v23  ;;  %1889 = vmatpush1.bf16.msra.mxu0 %v8545_v24 }
 0x471   : > { %1890 = vmatprep.subr.bf16.mxu0 %v8559_v25 }
 0x473   : > { %1930 = vmatpush1.bf16.msra.mxu1 %v8550_v41 }
 0x474   : > { %1931 = vmatprep.subr.bf16.mxu1 %v8564_v26  ;;  %1891 = vmatpush1.bf16.msra.mxu0 %v8569_v42  ;;  %v8617_v26 = vld [vmem:[%s9625_s7] ss:$16 sps:$4 sm:$0xff]  }
 0x475   : > { %1892 = vmatprep.subr.bf16.mxu0 %v8583_v31 }
 0x477   : > { %1932 = vmatpush1.bf16.msra.mxu1 %v8574_v33  ;;  %v8612_v33 = vld [vmem:[%s9625_s7 + $0xc] ss:$16 sps:$4 sm:$0xff]  }
 0x478   : > { %1933 = vmatprep.subr.bf16.mxu1 %v8588_v43  ;;  %1893 = vmatpush1.bf16.msra.mxu0 %v8593_v22  ;;  %9639 = vst [vmem:[#allocation53_spill] sm:$0xff] %v8612_v33  ;;  %v8622_v43 = vld [vmem:[%s9625_s7 + $0x8] ss:$16 sps:$4 sm:$0xff]  }
 0x479   : > { %9640 = vst [vmem:[#allocation54_spill] sm:$0xff] %v8622_v43  ;;  %1894 = vmatprep.subr.bf16.mxu0 %v8607_v44 }
 0x47b   : > { %1934 = vmatpush1.bf16.msra.mxu1 %v8598_v21  ;;  %v8629_v21 = vpop.f32.mrf.mxu1 }
 0x47c   : > { %1935 = vmatprep.subr.bf16.mxu1 %v8612_v33  ;;  %1895 = vmatpush1.bf16.msra.mxu0 %v8617_v26  ;;  %9641 = vst [vmem:[#allocation55_spill] sm:$0xff] %v8629_v21 }
 0x47f   : > { %1936 = vmatpush1.bf16.msra.mxu1 %v8622_v43 }
 0x480   : > { %2236 = vmatprep.subr.bf16.mxu1 %v8216_v34 }
 0x522   : > { %v1670_v41 = vpop.f32.mrf.mxu1 }
 0x523   : > { %v6000_v23 = vmul.f32 -1.442695, %v1670_v41 }
 0x524   : > { %v1672_v37 = vpop.f32.mrf.mxu1 }
 0x525   : > { %7032 = vpow2.f32 %v6000_v23  ;;  %v9642_v23 = vmov 0  }
 0x526   : > { %v1674_v19 = vpop.f32.mrf.mxu1  ;;  %7034 = vtanh.f32 %v1672_v37 }
 0x528   : > { %v1675_v17 = vpop.f32.mrf.mxu1 }
 0x532   : > { %v7033_v16 = vpop.eup %7032 }
 0x533   : > { %v1680_v46 = vadd.f32 1.0, %v7033_v16  ;;  %v7035_v30 = vpop.eup %7034 }
 0x534   : > { %v1684_v33 = vsub.f32 %v7035_v30, %v8431_v27 }
 0x535   : > { %7036 = vrcp.f32 %v1680_v46 }
 0x542   : > { %v7037_v28 = vpop.eup %7036 }
 0x543   : > { %v1685_v36 = vmul.f32 %v7037_v28, %v1684_v33  ;;  %v8655_v33 = vld [vmem:[#allocation17 + $0x74] ss:$8 sps:$4 sm:$0xff]  }
 0x544   : > { %2084 = vmatprep.subr.bf16.mxu0 %v8655_v33 }
 0x545   : > { %v8633_v43 = vadd.f32 %v1685_v36, %v8431_v27 }
 0x547   : > { %v1719_v34 = vpack.c.bf16 %v8633_v43, %v8633_v43 }
 0x549   : > { %1913 = vmatmul.mubr.bf16.vlgmr.msra.gmra.mxu0 %v1719_v34  ;;  %1954 = vmatmul.mubr.bf16.vlgmr.msra.gmra.mxu1 %v1719_v34 }
 0x54a   : > { %2116 = vmatprep.mubr.bf16.mxu0 %v9642_v23  ;;  %2237 = vmatpush1.bf16.msra.mxu1 %v8225_v50  ;;  %v8657_v50 = vld [vmem:[#allocation17 + $0x70] ss:$8 sps:$4 sm:$0xff]  }
 0x54b   : > { %2238 = vmatprep.subr.bf16.mxu1 %v8233_v53  ;;  %2268 = vmatprep.mubr.bf16.mxu1 %v9642_v23  ;;  %v8661_v53 = vld [vmem:[#allocation17 + $0x64] ss:$8 sps:$4 sm:$0xff]  }
 0x54c   : > { %2085 = vmatpush1.bf16.msra.mxu0 %v8657_v50 }
 0x54d   : > { %2086 = vmatprep.subr.bf16.mxu0 %v8661_v53 }
 0x54e   : > { %2239 = vmatpush1.bf16.msra.mxu1 %v8243_v54  ;;  %v8663_v54 = vld [vmem:[#allocation17 + $0x60] ss:$8 sps:$4 sm:$0xff]  }
 0x54f   : > { %2240 = vmatprep.subr.bf16.mxu1 %v8249_v55  ;;  %v8667_v55 = vld [vmem:[#allocation17 + $0x54] ss:$8 sps:$4 sm:$0xff]  }
 0x550   : > { %2087 = vmatpush1.bf16.msra.mxu0 %v8663_v54 }
 0x551   : > { %2088 = vmatprep.subr.bf16.mxu0 %v8667_v55 }
 0x552   : > { %2241 = vmatpush1.bf16.msra.mxu1 %v8256_v56  ;;  %v8669_v56 = vld [vmem:[#allocation17 + $0x50] ss:$8 sps:$4 sm:$0xff]  }
 0x553   : > { %2242 = vmatprep.subr.bf16.mxu1 %v8262_v57  ;;  %v8673_v57 = vld [vmem:[#allocation17 + $0x44] ss:$8 sps:$4 sm:$0xff]  }
 0x554   : > { %2089 = vmatpush1.bf16.msra.mxu0 %v8669_v56 }
 0x555   : > { %2090 = vmatprep.subr.bf16.mxu0 %v8673_v57 }
 0x556   : > { %2243 = vmatpush1.bf16.msra.mxu1 %v8270_v58  ;;  %v8675_v58 = vld [vmem:[#allocation17 + $0x40] ss:$8 sps:$4 sm:$0xff]  }
 0x557   : > { %2244 = vmatprep.subr.bf16.mxu1 %v8276_v59  ;;  %v8679_v59 = vld [vmem:[#allocation17 + $0x34] ss:$8 sps:$4 sm:$0xff]  }
 0x558   : > { %2091 = vmatpush1.bf16.msra.mxu0 %v8675_v58 }
 0x559   : > { %2092 = vmatprep.subr.bf16.mxu0 %v8679_v59 }
 0x55a   : > { %2245 = vmatpush1.bf16.msra.mxu1 %v8282_v60  ;;  %v8681_v60 = vld [vmem:[#allocation17 + $0x30] ss:$8 sps:$4 sm:$0xff]  }
 0x55b   : > { %2246 = vmatprep.subr.bf16.mxu1 %v8289_v61  ;;  %v8685_v61 = vld [vmem:[#allocation17 + $0x24] ss:$8 sps:$4 sm:$0xff]  }
 0x55c   : > { %2093 = vmatpush1.bf16.msra.mxu0 %v8681_v60 }
 0x55d   : > { %2094 = vmatprep.subr.bf16.mxu0 %v8685_v61 }
 0x55e   : > { %2247 = vmatpush1.bf16.msra.mxu1 %v8294_v62  ;;  %v8687_v62 = vld [vmem:[#allocation17 + $0x20] ss:$8 sps:$4 sm:$0xff]  }
 0x55f   : > { %2248 = vmatprep.subr.bf16.mxu1 %v8307_v1  ;;  %v8691_v1 = vld [vmem:[#allocation17 + $0x14] ss:$8 sps:$4 sm:$0xff]  }
 0x560   : > { %2095 = vmatpush1.bf16.msra.mxu0 %v8687_v62 }
 0x561   : > { %2096 = vmatprep.subr.bf16.mxu0 %v8691_v1 }
 0x562   : > { %2249 = vmatpush1.bf16.msra.mxu1 %v8312_v2  ;;  %v8693_v2 = vld [vmem:[#allocation17 + $0x10] ss:$8 sps:$4 sm:$0xff]  }
 0x563   : > { %2250 = vmatprep.subr.bf16.mxu1 %v8325_v5  ;;  %9643 = vst [vmem:[#allocation56_spill] sm:$0xff] %v8693_v2  ;;  %v8697_v5 = vld [vmem:[#allocation17 + $0x4] ss:$8 sps:$4 sm:$0xff]  }
 0x564   : > { %2097 = vmatpush1.bf16.msra.mxu0 %v8693_v2  ;;  %9644 = vst [vmem:[#allocation57_spill] sm:$0xff] %v8697_v5 }
 0x565   : > { %2098 = vmatprep.subr.bf16.mxu0 %v8697_v5 }
 0x566   : > { %2251 = vmatpush1.bf16.msra.mxu1 %v8330_v6  ;;  %v8699_v6 = vld [vmem:[#allocation17] ss:$8 sps:$4 sm:$0xff]  }
 0x567   : > { %2630 = vmatprep.subr.bf16.mxu1 %v8439_v45  ;;  %9645 = vst [vmem:[#allocation58_spill] sm:$0xff] %v8699_v6 }
 0x568   : > { %2099 = vmatpush1.bf16.msra.mxu0 %v8699_v6 }
 0x569   : > { %2386 = vmatprep.subr.bf16.mxu0 %v8362_v48 }
 0x609   : > { %v1914_v36 = vpop.f32.mrf.mxu0  ;;  %v1955_v27 = vpop.f32.mrf.mxu1 }
 0x60a   : > { %v6033_v45 = vmul.f32 -1.442695, %v1914_v36  ;;  %v6034_v28 = vmul.f32 -1.442695, %v1955_v27 }
 0x60b   : > { %v1916_v30 = vpop.f32.mrf.mxu0  ;;  %v1957_v46 = vpop.f32.mrf.mxu1 }
 0x60c   : > { %7038 = vpow2.f32 %v6033_v45  ;;  %v6035_v16 = vmul.f32 -1.442695, %v1957_v46  ;;  %v1968_v36 = vmax.f32 %v1916_v30, 0.0  ;;  %v9652_v30 = vld [vmem:[#allocation45_spill] sm:$0xff] }
 0x60d   : > { %7040 = vpow2.f32 %v6034_v28  ;;  %v1918_v17 = vpop.f32.mrf.mxu0  ;;  %v1959_v19 = vpop.f32.mrf.mxu1 }
 0x60e   : > { %7042 = vpow2.f32 %v6035_v16  ;;  %v1969_v27 = vsub.f32 %v1968_v36, %v8633_v43  ;;  %v9655_v36 = vld [vmem:[#allocation48_spill] sm:$0xff] }
 0x60f   : > { %v1919_v37 = vpop.f32.mrf.mxu0  ;;  %v1960_v41 = vpop.f32.mrf.mxu1 }
 0x619   : > { %v7039_v34 = vpop.eup %7038 }
 0x61a   : > { %v7041_v21 = vpop.eup %7040  ;;  %v1965_v5 = vadd.f32 1.0, %v7039_v34  ;;  %v9653_v34 = vld [vmem:[#allocation46_spill] sm:$0xff] }
 0x61b   : > { %v7043_v6 = vpop.eup %7042  ;;  %v1975_v48 = vadd.f32 1.0, %v7041_v21 }
 0x61c   : > { %7044 = vrcp.f32 %v1965_v5  ;;  %v1981_v2 = vadd.f32 1.0, %v7043_v6  ;;  %v9650_v5 = vld [vmem:[#allocation43_spill] sm:$0xff]  ;;  %v9651_v6 = vld [vmem:[#allocation44_spill] sm:$0xff] }
 0x61e   : > { %7046 = vrcp.f32 %v1981_v2  ;;  %v9649_v2 = vld [vmem:[#allocation42_spill] sm:$0xff] }
 0x61f   : > { %7048 = vrcp.f32 %v1975_v48  ;;  %v9654_v48 = vld [vmem:[#allocation47_spill] sm:$0xff] }
 0x629   : > { %v7045_v45 = vpop.eup %7044 }
 0x62a   : > { %v1970_v46 = vmul.f32 %v7045_v45, %v1969_v27  ;;  %v9656_v27 = vld [vmem:[#allocation49_spill] sm:$0xff]  ;;  %v9657_v45 = vld [vmem:[#allocation50_spill] sm:$0xff] }
 0x62b   : > { %v7047_v28 = vpop.eup %7046 }
 0x62c   : > { %v1971_v17 = vadd.f32 %v1970_v46, %v8633_v43  ;;  %v1984_v16 = vsub.f32 %v7047_v28, %v8633_v43  ;;  %v7049_v19 = vpop.eup %7048  ;;  %v9658_v46 = vld [vmem:[#allocation51_spill] sm:$0xff]  ;;  %v9659_v28 = vld [vmem:[#allocation52_spill] sm:$0xff] }
 0x62e   : > { %v2003_v37 = vpack.c.bf16 %v1971_v17, %v1971_v17  ;;  %v1985_v41 = vmul.f32 %v7049_v19, %v1984_v16  ;;  %v9661_v16 = vld [vmem:[#allocation54_spill] sm:$0xff] }
 0x630   : > { %2117 = vmatmul.mubr.bf16.vlgmr.msra.gmra.mxu0 %v2003_v37 }
 0x631   : > { %2387 = vmatpush1.bf16.msra.mxu0 %v8364_v49  ;;  %2418 = vmatprep.mubr.bf16.mxu0 %v9642_v23 }
 0x632   : > { %2388 = vmatprep.subr.bf16.mxu0 %v8368_v51 }
 0x635   : > { %2389 = vmatpush1.bf16.msra.mxu0 %v8370_v52 }
 0x636   : > { %2390 = vmatprep.subr.bf16.mxu0 %v8374_v63 }
 0x639   : > { %2391 = vmatpush1.bf16.msra.mxu0 %v8376_v0 }
 0x63a   : > { %2392 = vmatprep.subr.bf16.mxu0 %v8380_v3 }
 0x63d   : > { %2393 = vmatpush1.bf16.msra.mxu0 %v8382_v4 }
 0x63e   : > { %2394 = vmatprep.subr.bf16.mxu0 %v8384_v7  ;;  %v1986_v7 = vadd.f32 %v1985_v41, %v8633_v43 }
 0x641   : > { %2395 = vmatpush1.bf16.msra.mxu0 %v8388_v8 }
 0x642   : > { %2396 = vmatprep.subr.bf16.mxu0 %v8391_v10 }
 0x645   : > { %2397 = vmatpush1.bf16.msra.mxu0 %v8394_v11 }
 0x646   : > { %2398 = vmatprep.subr.bf16.mxu0 %v8397_v12  ;;  %v2134_v12 = vadd.f32 %v1971_v17, %v8633_v43 }
 0x649   : > { %2399 = vmatpush1.bf16.msra.mxu0 %v8400_v13 }
 0x64a   : > { %2400 = vmatprep.subr.bf16.mxu0 %v8403_v14  ;;  %v2135_v14 = vadd.f32 %v2134_v12, %v1986_v7 }
 0x64d   : > { %2401 = vmatpush1.bf16.msra.mxu0 %v8406_v15 }
 0x64e   : > { %2671 = vmatprep.subr.bf16.mxu0 %v8444_v20 }
 0x6f0   : > { %v2118_v49 = vpop.f32.mrf.mxu0 }
 0x6f1   : > { %v6052_v51 = vmul.f32 -1.442695, %v2118_v49 }
 0x6f2   : > { %v2120_v52 = vpop.f32.mrf.mxu0 }
 0x6f3   : > { %7050 = vpow2.f32 %v6052_v51  ;;  %v2131_v8 = vsub.f32 %v2120_v52, %v1971_v17 }
 0x6f4   : > { %v2122_v63 = vpop.f32.mrf.mxu0 }
 0x6f6   : > { %v2123_v0 = vpop.f32.mrf.mxu0 }
 0x700   : > { %v7051_v3 = vpop.eup %7050 }
 0x701   : > { %v2128_v4 = vadd.f32 1.0, %v7051_v3 }
 0x703   : > { %7052 = vrcp.f32 %v2128_v4 }
 0x710   : > { %v7053_v10 = vpop.eup %7052 }
 0x711   : > { %v2132_v11 = vmul.f32 %v7053_v10, %v2131_v8 }
 0x713   : > { %v2133_v13 = vadd.f32 %v2132_v11, %v1971_v17  ;;  %v9660_v17 = vld [vmem:[#allocation53_spill] sm:$0xff] }
 0x715   : > { %v2136_v15 = vadd.f32 %v2135_v14, %v2133_v13 }
 0x717   : > { %v2137_v21 = vmul.f32 0.25, %v2136_v15 }
 0x719   : > { %2138 = vst [vmem:[#allocation2 + $0x10] sm:$0xff] %v2137_v21  ;;  %v2155_v20 = vpack.c.bf16 %v2137_v21, %v2137_v21 }
 0x71b   : > { %2269 = vmatmul.mubr.bf16.vlgmr.msra.gmra.mxu1 %v2155_v20 }
 0x71c   : > { %2631 = vmatpush1.bf16.msra.mxu1 %v8449_v9  ;;  %2662 = vmatprep.mubr.bf16.mxu1 %v9642_v23 }
 0x71d   : > { %2632 = vmatprep.subr.bf16.mxu1 %v8463_v29 }
 0x720   : > { %2633 = vmatpush1.bf16.msra.mxu1 %v8473_v32 }
 0x721   : > { %2634 = vmatprep.subr.bf16.mxu1 %v8487_v47 }
 0x724   : > { %2635 = vmatpush1.bf16.msra.mxu1 %v8497_v18 }
 0x725   : > { %2636 = vmatprep.subr.bf16.mxu1 %v8511_v38  ;;  %v9646_v38 = vld [vmem:[#allocation36_spill] sm:$0xff] }
 0x728   : > { %2637 = vmatpush1.bf16.msra.mxu1 %v8521_v39 }
 0x729   : > { %2638 = vmatprep.subr.bf16.mxu1 %v8535_v40 }
 0x72c   : > { %2639 = vmatpush1.bf16.msra.mxu1 %v8545_v24 }
 0x72d   : > { %2640 = vmatprep.subr.bf16.mxu1 %v8559_v25 }
 0x730   : > { %2641 = vmatpush1.bf16.msra.mxu1 %v8569_v42 }
 0x731   : > { %2642 = vmatprep.subr.bf16.mxu1 %v8583_v31 }
 0x734   : > { %2643 = vmatpush1.bf16.msra.mxu1 %v8593_v22 }
 0x735   : > { %2644 = vmatprep.subr.bf16.mxu1 %v8607_v44 }
 0x738   : > { %2645 = vmatpush1.bf16.msra.mxu1 %v8617_v26 }
 0x739   : > { %2834 = vmatprep.subr.bf16.mxu1 %v8655_v33  ;;  %v9647_v33 = vld [vmem:[#allocation40_spill] sm:$0xff] }
 0x7db   : > { %v2270_v43 = vpop.f32.mrf.mxu1 }
 0x7dc   : > { %v2277_v9 = vadd.f32 %v2270_v43, %v8412_v35  ;;  %v9648_v35 = vld [vmem:[#allocation41_spill] sm:$0xff] }
 0x7dd   : > { %v2272_v29 = vpop.f32.mrf.mxu1 }
 0x7de   : > { %v6069_v32 = vmul.f32 -1.442695, %v2277_v9  ;;  %v2278_v39 = vadd.f32 %v2272_v29, %v9646_v38 }
 0x7df   : > { %v2274_v47 = vpop.f32.mrf.mxu1 }
 0x7e0   : > { %7054 = vpow2.f32 %v6069_v32 }
 0x7e1   : > { %v2275_v18 = vpop.f32.mrf.mxu1  ;;  %7056 = vtanh.f32 %v2278_v39 }
 0x7ed   : > { %v7055_v31 = vpop.eup %7054 }
 0x7ee   : > { %v2282_v40 = vadd.f32 1.0, %v7055_v31  ;;  %v7057_v22 = vpop.eup %7056 }
 0x7ef   : > { %v2286_v44 = vsub.f32 %v7057_v22, %v2137_v21 }
 0x7f0   : > { %7058 = vrcp.f32 %v2282_v40 }
 0x7fd   : > { %v7059_v24 = vpop.eup %7058 }
 0x7fe   : > { %v2287_v25 = vmul.f32 %v7059_v24, %v2286_v44  ;;  %v8789_v44 = vld [vmem:[%s9512_s12 + $0x74] ss:$8 sps:$4 sm:$0xff]   ;;  %v8794_v24 = vld [vmem:[%s9512_s12 + $0x70] ss:$8 sps:$4 sm:$0xff]  }
 0x800   : > { %v2288_v26 = vadd.f32 %v2287_v25, %v2137_v21  ;;  %v8801_v25 = vld [vmem:[%s9512_s12 + $0x64] ss:$8 sps:$4 sm:$0xff]  }
 0x802   : > { %v2305_v42 = vpack.c.bf16 %v2288_v26, %v2288_v26 }
 0x804   : > { %2419 = vmatmul.mubr.bf16.vlgmr.msra.gmra.mxu0 %v2305_v42  ;;  %v8813_v42 = vld [vmem:[%s9512_s12 + $0x54] ss:$8 sps:$4 sm:$0xff]  }
 0x805   : > { %2672 = vmatpush1.bf16.msra.mxu0 %v9647_v33  ;;  %2703 = vmatprep.mubr.bf16.mxu0 %v9642_v23  ;;  %v8818_v33 = vld [vmem:[%s9512_s12 + $0x50] ss:$8 sps:$4 sm:$0xff]  }
 0x806   : > { %2673 = vmatprep.subr.bf16.mxu0 %v9648_v35  ;;  %v8825_v35 = vld [vmem:[%s9512_s12 + $0x44] ss:$8 sps:$4 sm:$0xff]  }
 0x809   : > { %2674 = vmatpush1.bf16.msra.mxu0 %v9649_v2  ;;  %v8830_v2 = vld [vmem:[%s9512_s12 + $0x40] ss:$8 sps:$4 sm:$0xff]  }
 0x80a   : > { %2675 = vmatprep.subr.bf16.mxu0 %v9650_v5  ;;  %v8837_v5 = vld [vmem:[%s9512_s12 + $0x34] ss:$8 sps:$4 sm:$0xff]  }
 0x80d   : > { %2676 = vmatpush1.bf16.msra.mxu0 %v9651_v6  ;;  %v8842_v6 = vld [vmem:[%s9512_s12 + $0x30] ss:$8 sps:$4 sm:$0xff]  }
 0x80e   : > { %2677 = vmatprep.subr.bf16.mxu0 %v9652_v30  ;;  %v8849_v30 = vld [vmem:[%s9512_s12 + $0x24] ss:$8 sps:$4 sm:$0xff]  }
 0x811   : > { %2678 = vmatpush1.bf16.msra.mxu0 %v9653_v34  ;;  %v8854_v34 = vld [vmem:[%s9512_s12 + $0x20] ss:$8 sps:$4 sm:$0xff]  }
 0x812   : > { %2679 = vmatprep.subr.bf16.mxu0 %v9654_v48  ;;  %v8861_v48 = vld [vmem:[%s9512_s12 + $0x14] ss:$8 sps:$4 sm:$0xff]  }
 0x815   : > { %2680 = vmatpush1.bf16.msra.mxu0 %v9655_v36  ;;  %v8866_v36 = vld [vmem:[%s9512_s12 + $0x10] ss:$8 sps:$4 sm:$0xff]  }
 0x816   : > { %2681 = vmatprep.subr.bf16.mxu0 %v9656_v27  ;;  %v8873_v27 = vld [vmem:[%s9512_s12 + $0x4] ss:$8 sps:$4 sm:$0xff]  }
 0x819   : > { %2682 = vmatpush1.bf16.msra.mxu0 %v9657_v45  ;;  %v8878_v45 = vld [vmem:[%s9512_s12] ss:$8 sps:$4 sm:$0xff]  }
 0x81a   : > { %2683 = vmatprep.subr.bf16.mxu0 %v9658_v46 }
 0x81d   : > { %2684 = vmatpush1.bf16.msra.mxu0 %v9659_v28 }
 0x81e   : > { %2685 = vmatprep.subr.bf16.mxu0 %v9660_v17 }
 0x821   : > { %2686 = vmatpush1.bf16.msra.mxu0 %v9661_v16 }
 0x822   : > { %2986 = vmatprep.subr.bf16.mxu0 %v8789_v44 }
 0x8c4   : > { %v2420_v19 = vpop.f32.mrf.mxu0 }
 0x8c5   : > { %v6086_v37 = vmul.f32 -1.442695, %v2420_v19 }
 0x8c6   : > { %v2422_v41 = vpop.f32.mrf.mxu0 }
 0x8c7   : > { %7060 = vpow2.f32 %v6086_v37 }
 0x8c8   : > { %v2424_v49 = vpop.f32.mrf.mxu0  ;;  %7062 = vtanh.f32 %v2422_v41 }
 0x8ca   : > { %v2425_v51 = vpop.f32.mrf.mxu0 }
 0x8d4   : > { %v7061_v52 = vpop.eup %7060 }
 0x8d5   : > { %v2430_v63 = vadd.f32 1.0, %v7061_v52  ;;  %v7063_v0 = vpop.eup %7062 }
 0x8d6   : > { %v2434_v3 = vsub.f32 %v7063_v0, %v2288_v26 }
 0x8d7   : > { %7064 = vrcp.f32 %v2430_v63 }
 0x8e4   : > { %v7065_v4 = vpop.eup %7064 }
 0x8e5   : > { %v2435_v7 = vmul.f32 %v7065_v4, %v2434_v3 }
 0x8e7   : > { %v8761_v8 = vadd.f32 %v2435_v7, %v2288_v26  ;;  %v8806_v26 = vld [vmem:[%s9512_s12 + $0x60] ss:$8 sps:$4 sm:$0xff]  }
 0x8e9   : > { %v2469_v10 = vpack.c.bf16 %v8761_v8, %v8761_v8 }
 0x8eb   : > { %2663 = vmatmul.mubr.bf16.vlgmr.msra.gmra.mxu1 %v2469_v10  ;;  %2704 = vmatmul.mubr.bf16.vlgmr.msra.gmra.mxu0 %v2469_v10 }
 0x8ec   : > { %2835 = vmatpush1.bf16.msra.mxu1 %v8657_v50  ;;  %2866 = vmatprep.mubr.bf16.mxu1 %v9642_v23  ;;  %v9662_v50 = vld [vmem:[#allocation56_spill] sm:$0xff] }
 0x8ed   : > { %2836 = vmatprep.subr.bf16.mxu1 %v8661_v53  ;;  %3018 = vmatprep.mubr.bf16.mxu0 %v9642_v23  ;;  %v9663_v53 = vld [vmem:[#allocation57_spill] sm:$0xff] }
 0x8ee   : > { %2987 = vmatpush1.bf16.msra.mxu0 %v8794_v24 }
 0x8ef   : > { %2988 = vmatprep.subr.bf16.mxu0 %v8801_v25 }
 0x8f0   : > { %2837 = vmatpush1.bf16.msra.mxu1 %v8663_v54  ;;  %v9664_v54 = vld [vmem:[#allocation58_spill] sm:$0xff] }
 0x8f1   : > { %2838 = vmatprep.subr.bf16.mxu1 %v8667_v55 }
 0x8f2   : > { %2989 = vmatpush1.bf16.msra.mxu0 %v8806_v26 }
 0x8f3   : > { %2990 = vmatprep.subr.bf16.mxu0 %v8813_v42 }
 0x8f4   : > { %2839 = vmatpush1.bf16.msra.mxu1 %v8669_v56 }
 0x8f5   : > { %2840 = vmatprep.subr.bf16.mxu1 %v8673_v57 }
 0x8f6   : > { %2991 = vmatpush1.bf16.msra.mxu0 %v8818_v33 }
 0x8f7   : > { %2992 = vmatprep.subr.bf16.mxu0 %v8825_v35 }
 0x8f8   : > { %2841 = vmatpush1.bf16.msra.mxu1 %v8675_v58 }
 0x8f9   : > { %2842 = vmatprep.subr.bf16.mxu1 %v8679_v59 }
 0x8fa   : > { %2993 = vmatpush1.bf16.msra.mxu0 %v8830_v2 }
 0x8fb   : > { %2994 = vmatprep.subr.bf16.mxu0 %v8837_v5 }
 0x8fc   : > { %2843 = vmatpush1.bf16.msra.mxu1 %v8681_v60 }
 0x8fd   : > { %2844 = vmatprep.subr.bf16.mxu1 %v8685_v61 }
 0x8fe   : > { %2995 = vmatpush1.bf16.msra.mxu0 %v8842_v6 }
 0x8ff   : > { %2996 = vmatprep.subr.bf16.mxu0 %v8849_v30 }
 0x900   : > { %2845 = vmatpush1.bf16.msra.mxu1 %v8687_v62 }
 0x901   : > { %2846 = vmatprep.subr.bf16.mxu1 %v8691_v1 }
 0x902   : > { %2997 = vmatpush1.bf16.msra.mxu0 %v8854_v34 }
 0x903   : > { %2998 = vmatprep.subr.bf16.mxu0 %v8861_v48 }
 0x904   : > { %2847 = vmatpush1.bf16.msra.mxu1 %v9662_v50 }
 0x905   : > { %2848 = vmatprep.subr.bf16.mxu1 %v9663_v53  ;;  %v8885_v53 = vld [vmem:[#allocation15 + $0x74] ss:$8 sps:$4 sm:$0xff]  }
 0x906   : > { %2999 = vmatpush1.bf16.msra.mxu0 %v8866_v36 }
 0x907   : > { %3000 = vmatprep.subr.bf16.mxu0 %v8873_v27 }
 0x908   : > { %2849 = vmatpush1.bf16.msra.mxu1 %v9664_v54  ;;  %v8887_v54 = vld [vmem:[#allocation15 + $0x70] ss:$8 sps:$4 sm:$0xff]  }
 0x909   : > { %3136 = vmatprep.subr.bf16.mxu1 %v8885_v53 }
 0x90a   : > { %3001 = vmatpush1.bf16.msra.mxu0 %v8878_v45 }
 0x9ab   : > { %v2664_v55 = vpop.f32.mrf.mxu1  ;;  %v2705_v56 = vpop.f32.mrf.mxu0 }
 0x9ac   : > { %v6119_v57 = vmul.f32 -1.442695, %v2664_v55  ;;  %v6120_v58 = vmul.f32 -1.442695, %v2705_v56  ;;  %v8891_v55 = vld [vmem:[#allocation15 + $0x64] ss:$8 sps:$4 sm:$0xff]  }
 0x9ad   : > { %v2666_v11 = vpop.f32.mrf.mxu1  ;;  %v2707_v59 = vpop.f32.mrf.mxu0  ;;  %v8897_v56 = vld [vmem:[#allocation15 + $0x54] ss:$8 sps:$4 sm:$0xff]  }
 0x9ae   : > { %7066 = vpow2.f32 %v6119_v57  ;;  %v6121_v60 = vmul.f32 -1.442695, %v2707_v59  ;;  %v2718_v9 = vmax.f32 %v2666_v11, 0.0  ;;  %v8899_v57 = vld [vmem:[#allocation15 + $0x50] ss:$8 sps:$4 sm:$0xff]  }
 0x9af   : > { %7068 = vpow2.f32 %v6120_v58  ;;  %v2668_v61 = vpop.f32.mrf.mxu1  ;;  %v2709_v12 = vpop.f32.mrf.mxu0  ;;  %v8903_v58 = vld [vmem:[#allocation15 + $0x44] ss:$8 sps:$4 sm:$0xff]   ;;  %v8905_v11 = vld [vmem:[#allocation15 + $0x40] ss:$8 sps:$4 sm:$0xff]   ;;  %v8907_v59 = vld [vmem:[#allocation15 + $0x34] ss:$8 sps:$4 sm:$0xff]  }
 0x9b0   : > { %7070 = vpow2.f32 %v6121_v60  ;;  %v2719_v29 = vsub.f32 %v2718_v9, %v8761_v8  ;;  %v8911_v60 = vld [vmem:[#allocation15 + $0x30] ss:$8 sps:$4 sm:$0xff]   ;;  %v8914_v61 = vld [vmem:[#allocation15 + $0x24] ss:$8 sps:$4 sm:$0xff]   ;;  %v8917_v12 = vld [vmem:[#allocation15 + $0x20] ss:$8 sps:$4 sm:$0xff]  }
 0x9b1   : > { %v2669_v62 = vpop.f32.mrf.mxu1  ;;  %v2710_v1 = vpop.f32.mrf.mxu0 }
 0x9b2   : > { %v8920_v62 = vld [vmem:[#allocation15 + $0x14] ss:$8 sps:$4 sm:$0xff]   ;;  %v8923_v1 = vld [vmem:[#allocation15 + $0x10] ss:$8 sps:$4 sm:$0xff]  }
 0x9bb   : > { %v7067_v13 = vpop.eup %7066 }
 0x9bc   : > { %v7069_v14 = vpop.eup %7068  ;;  %v2715_v15 = vadd.f32 1.0, %v7067_v13  ;;  %v8926_v13 = vld [vmem:[#allocation15 + $0x4] ss:$8 sps:$4 sm:$0xff]  }
 0x9bd   : > { %v7071_v21 = vpop.eup %7070  ;;  %v2725_v20 = vadd.f32 1.0, %v7069_v14  ;;  %v8929_v14 = vld [vmem:[#allocation15] ss:$8 sps:$4 sm:$0xff]  }
 0x9be   : > { %7072 = vrcp.f32 %v2715_v15  ;;  %v2731_v43 = vadd.f32 1.0, %v7071_v21  ;;  %v9665_v21 = vld [vmem:[#allocation37_spill] sm:$0xff] }
 0x9c0   : > { %7074 = vrcp.f32 %v2731_v43 }
 0x9c1   : > { %7076 = vrcp.f32 %v2725_v20 }
 0x9cb   : > { %v7073_v32 = vpop.eup %7072 }
 0x9cc   : > { %v2720_v47 = vmul.f32 %v7073_v32, %v2719_v29 }
 0x9cd   : > { %v7075_v18 = vpop.eup %7074 }
 0x9ce   : > { %v2721_v38 = vadd.f32 %v2720_v47, %v8761_v8  ;;  %v2734_v39 = vsub.f32 %v7075_v18, %v8761_v8  ;;  %v7077_v31 = vpop.eup %7076  ;;  %v9666_v47 = vld [vmem:[#allocation38_spill] sm:$0xff] }
 0x9d0   : > { %v2753_v40 = vpack.c.bf16 %v2721_v38, %v2721_v38  ;;  %v2735_v22 = vmul.f32 %v7077_v31, %v2734_v39  ;;  %v2884_v0 = vadd.f32 %v2721_v38, %v8761_v8 }
 0x9d2   : > { %2867 = vmatmul.mubr.bf16.vlgmr.msra.gmra.mxu1 %v2753_v40  ;;  %v2736_v49 = vadd.f32 %v2735_v22, %v8761_v8  ;;  %v8893_v8 = vld [vmem:[#allocation15 + $0x60] ss:$8 sps:$4 sm:$0xff]  }
 0x9d3   : > { %3168 = vmatprep.mubr.bf16.mxu1 %v9642_v23  ;;  %3137 = vmatpush1.bf16.msra.mxu1 %v8887_v54 }
 0x9d4   : > { %v2885_v4 = vadd.f32 %v2884_v0, %v2736_v49  ;;  %3138 = vmatprep.subr.bf16.mxu1 %v8891_v55  ;;  %v8967_v49 = vld [vmem:[%s9625_s7 + $0xc4] ss:$16 sps:$4 sm:$0xff]  }
 0x9d5   : > { %v8991_v0 = vld [vmem:[%s9625_s7 + $0xa4] ss:$16 sps:$4 sm:$0xff]  }
 0x9d7   : > { %3139 = vmatpush1.bf16.msra.mxu1 %v8893_v8 }
 0x9d8   : > { %3140 = vmatprep.subr.bf16.mxu1 %v8897_v56 }
 0x9db   : > { %3141 = vmatpush1.bf16.msra.mxu1 %v8899_v57 }
 0x9dc   : > { %3142 = vmatprep.subr.bf16.mxu1 %v8903_v58 }
 0x9df   : > { %3143 = vmatpush1.bf16.msra.mxu1 %v8905_v11 }
 0x9e0   : > { %3144 = vmatprep.subr.bf16.mxu1 %v8907_v59 }
 0x9e3   : > { %3145 = vmatpush1.bf16.msra.mxu1 %v8911_v60 }
 0x9e4   : > { %3146 = vmatprep.subr.bf16.mxu1 %v8914_v61 }
 0x9e7   : > { %3147 = vmatpush1.bf16.msra.mxu1 %v8917_v12 }
 0x9e8   : > { %3148 = vmatprep.subr.bf16.mxu1 %v8920_v62 }
 0x9eb   : > { %3149 = vmatpush1.bf16.msra.mxu1 %v8923_v1 }
 0x9ec   : > { %3150 = vmatprep.subr.bf16.mxu1 %v8926_v13 }
 0x9ef   : > { %3151 = vmatpush1.bf16.msra.mxu1 %v8929_v14 }
 0xa92   : > { %v2868_v46 = vpop.f32.mrf.mxu1 }
 0xa93   : > { %v6138_v28 = vmul.f32 -1.442695, %v2868_v46 }
 0xa94   : > { %v2870_v17 = vpop.f32.mrf.mxu1 }
 0xa95   : > { %7078 = vpow2.f32 %v6138_v28  ;;  %v2881_v51 = vsub.f32 %v2870_v17, %v2721_v38 }
 0xa96   : > { %v2872_v16 = vpop.f32.mrf.mxu1 }
 0xa97   : > { %v8943_v16 = vld [vmem:[%s9625_s7 + $0xe4] ss:$16 sps:$4 sm:$0xff]  }
 0xa98   : > { %v2873_v19 = vpop.f32.mrf.mxu1  ;;  %3380 = vmatprep.subr.bf16.mxu0 %v8943_v16 }
 0xa99   : > { %v8948_v19 = vld [vmem:[%s9625_s7 + $0xec] ss:$16 sps:$4 sm:$0xff]  }
 0xa9a   : > { %3421 = vmatprep.subr.bf16.mxu1 %v8948_v19 }
 0xaa2   : > { %v7079_v37 = vpop.eup %7078 }
 0xaa3   : > { %v2878_v41 = vadd.f32 1.0, %v7079_v37  ;;  %v8953_v37 = vld [vmem:[%s9625_s7 + $0xe0] ss:$16 sps:$4 sm:$0xff]  }
 0xaa5   : > { %7080 = vrcp.f32 %v2878_v41  ;;  %v8958_v41 = vld [vmem:[%s9625_s7 + $0xe8] ss:$16 sps:$4 sm:$0xff]  }
 0xaa6   : > { %9667 = vst [vmem:[#allocation36_spill] sm:$0xff] %v8958_v41 }
 0xab2   : > { %v7081_v52 = vpop.eup %7080 }
 0xab3   : > { %v2882_v63 = vmul.f32 %v7081_v52, %v2881_v51  ;;  %v8972_v51 = vld [vmem:[%s9625_s7 + $0xcc] ss:$16 sps:$4 sm:$0xff]   ;;  %v8977_v52 = vld [vmem:[%s9625_s7 + $0xc0] ss:$16 sps:$4 sm:$0xff]  }
 0xab4   : > { %9668 = vst [vmem:[#allocation40_spill] sm:$0xff] %v8972_v51 }
 0xab5   : > { %v2883_v3 = vadd.f32 %v2882_v63, %v2721_v38  ;;  %v8982_v63 = vld [vmem:[%s9625_s7 + $0xc8] ss:$16 sps:$4 sm:$0xff]  }
 0xab6   : > { %9669 = vst [vmem:[#allocation41_spill] sm:$0xff] %v8982_v63 }
 0xab7   : > { %v2886_v7 = vadd.f32 %v2885_v4, %v2883_v3  ;;  %v8996_v3 = vld [vmem:[%s9625_s7 + $0xac] ss:$16 sps:$4 sm:$0xff]   ;;  %v9001_v4 = vld [vmem:[%s9625_s7 + $0xa0] ss:$16 sps:$4 sm:$0xff]  }
 0xab8   : > { %9670 = vst [vmem:[#allocation42_spill] sm:$0xff] %v8996_v3 }
 0xab9   : > { %v2887_v10 = vmul.f32 0.25, %v2886_v7  ;;  %v9006_v7 = vld [vmem:[%s9625_s7 + $0xa8] ss:$16 sps:$4 sm:$0xff]  }
 0xaba   : > { %9671 = vst [vmem:[#allocation43_spill] sm:$0xff] %v9006_v7 }
 0xabb   : > { %2888 = vst [vmem:[#allocation2] sm:$0xff] %v2887_v10  ;;  %v2905_v50 = vpack.c.bf16 %v2887_v10, %v2887_v10 }
 0xabd   : > { %3019 = vmatmul.mubr.bf16.vlgmr.msra.gmra.mxu0 %v2905_v50  ;;  %v9020_v50 = vld [vmem:[%s9625_s7 + $0x8c] ss:$16 sps:$4 sm:$0xff]  }
 0xabe   : > { %3412 = vmatprep.mubr.bf16.mxu0 %v9642_v23  ;;  %3381 = vmatpush1.bf16.msra.mxu0 %v8953_v37  ;;  %9672 = vst [vmem:[#allocation44_spill] sm:$0xff] %v9020_v50 }
 0xabf   : > { %3382 = vmatprep.subr.bf16.mxu0 %v8967_v49 }
 0xac2   : > { %3383 = vmatpush1.bf16.msra.mxu0 %v8977_v52 }
 0xac3   : > { %3384 = vmatprep.subr.bf16.mxu0 %v8991_v0 }
 0xac6   : > { %3385 = vmatpush1.bf16.msra.mxu0 %v9001_v4 }
 0xb7d   : > { %v3020_v15 = vpop.f32.mrf.mxu0 }
 0xb7e   : > { %v3027_v20 = vadd.f32 %v3020_v15, %v9665_v21  ;;  %v9025_v15 = vld [vmem:[%s9625_s7 + $0x80] ss:$16 sps:$4 sm:$0xff]   ;;  %v9030_v21 = vld [vmem:[%s9625_s7 + $0x88] ss:$16 sps:$4 sm:$0xff]  }
 0xb7f   : > { %v3022_v43 = vpop.f32.mrf.mxu0  ;;  %9673 = vst [vmem:[#allocation45_spill] sm:$0xff] %v9030_v21 }
 0xb80   : > { %v6155_v9 = vmul.f32 -1.442695, %v3027_v20  ;;  %v3028_v18 = vadd.f32 %v3022_v43, %v9666_v47  ;;  %v9039_v20 = vld [vmem:[%s9625_s7 + $0x64] ss:$16 sps:$4 sm:$0xff]   ;;  %v9044_v43 = vld [vmem:[%s9625_s7 + $0x6c] ss:$16 sps:$4 sm:$0xff]  }
 0xb81   : > { %v3024_v29 = vpop.f32.mrf.mxu0  ;;  %9674 = vst [vmem:[#allocation46_spill] sm:$0xff] %v9044_v43  ;;  %v9068_v47 = vld [vmem:[%s9625_s7 + $0x4c] ss:$16 sps:$4 sm:$0xff]  }
 0xb82   : > { %7082 = vpow2.f32 %v6155_v9  ;;  %v9049_v9 = vld [vmem:[%s9625_s7 + $0x60] ss:$16 sps:$4 sm:$0xff]   ;;  %v9054_v29 = vld [vmem:[%s9625_s7 + $0x68] ss:$16 sps:$4 sm:$0xff]   ;;  %9676 = vst [vmem:[#allocation48_spill] sm:$0xff] %v9068_v47 }
 0xb83   : > { %v3025_v32 = vpop.f32.mrf.mxu0  ;;  %7084 = vtanh.f32 %v3028_v18  ;;  %9675 = vst [vmem:[#allocation47_spill] sm:$0xff] %v9054_v29  ;;  %v9073_v18 = vld [vmem:[%s9625_s7 + $0x40] ss:$16 sps:$4 sm:$0xff]  }
 0xb84   : > { %v9063_v32 = vld [vmem:[%s9625_s7 + $0x44] ss:$16 sps:$4 sm:$0xff]  }
 0xb8f   : > { %v7083_v38 = vpop.eup %7082 }
 0xb90   : > { %v3032_v39 = vadd.f32 1.0, %v7083_v38  ;;  %v7085_v31 = vpop.eup %7084  ;;  %v9078_v38 = vld [vmem:[%s9625_s7 + $0x48] ss:$16 sps:$4 sm:$0xff]  }
 0xb91   : > { %v3036_v40 = vsub.f32 %v7085_v31, %v2887_v10  ;;  %9677 = vst [vmem:[#allocation49_spill] sm:$0xff] %v9078_v38  ;;  %v9092_v31 = vld [vmem:[%s9625_s7 + $0x2c] ss:$16 sps:$4 sm:$0xff]  }
 0xb92   : > { %7086 = vrcp.f32 %v3032_v39  ;;  %v9087_v39 = vld [vmem:[%s9625_s7 + $0x24] ss:$16 sps:$4 sm:$0xff]   ;;  %9678 = vst [vmem:[#allocation50_spill] sm:$0xff] %v9092_v31 }
 0xb9f   : > { %v7087_v22 = vpop.eup %7086 }
 0xba0   : > { %v3037_v46 = vmul.f32 %v7087_v22, %v3036_v40  ;;  %v9097_v40 = vld [vmem:[%s9625_s7 + $0x20] ss:$16 sps:$4 sm:$0xff]   ;;  %v9102_v22 = vld [vmem:[%s9625_s7 + $0x28] ss:$16 sps:$4 sm:$0xff]  }
 0xba1   : > { %9679 = vst [vmem:[#allocation51_spill] sm:$0xff] %v9102_v22 }
 0xba2   : > { %v8935_v28 = vadd.f32 %v3037_v46, %v2887_v10  ;;  %v9015_v10 = vld [vmem:[%s9625_s7 + $0x84] ss:$16 sps:$4 sm:$0xff]  }
 0xba3   : > { %3386 = vmatprep.subr.bf16.mxu0 %v9015_v10  ;;  %v9111_v46 = vld [vmem:[%s9625_s7 + $0x4] ss:$16 sps:$4 sm:$0xff]  }
 0xba4   : > { %v3055_v17 = vpack.c.bf16 %v8935_v28, %v8935_v28  ;;  %3387 = vmatpush1.bf16.msra.mxu0 %v9025_v15 }
 0xba5   : > { %3388 = vmatprep.subr.bf16.mxu0 %v9039_v20 }
 0xba6   : > { %3169 = vmatmul.mubr.bf16.vlgmr.msra.gmra.mxu1 %v3055_v17  ;;  %v9116_v17 = vld [vmem:[%s9625_s7 + $0xc] ss:$16 sps:$4 sm:$0xff]  }
 0xba7   : > { %3453 = vmatprep.mubr.bf16.mxu1 %v9642_v23  ;;  %3422 = vmatpush1.bf16.msra.mxu1 %v8958_v41  ;;  %9680 = vst [vmem:[#allocation52_spill] sm:$0xff] %v9116_v17 }
 0xba8   : > { %3423 = vmatprep.subr.bf16.mxu1 %v8972_v51  ;;  %3389 = vmatpush1.bf16.msra.mxu0 %v9049_v9 }
 0xba9   : > { %3390 = vmatprep.subr.bf16.mxu0 %v9063_v32 }
 0xbab   : > { %3424 = vmatpush1.bf16.msra.mxu1 %v8982_v63 }
 0xbac   : > { %3425 = vmatprep.subr.bf16.mxu1 %v8996_v3  ;;  %3391 = vmatpush1.bf16.msra.mxu0 %v9073_v18 }
 0xbad   : > { %3392 = vmatprep.subr.bf16.mxu0 %v9087_v39 }
 0xbaf   : > { %3426 = vmatpush1.bf16.msra.mxu1 %v9006_v7 }
 0xbb0   : > { %3427 = vmatprep.subr.bf16.mxu1 %v9020_v50  ;;  %3393 = vmatpush1.bf16.msra.mxu0 %v9097_v40 }
 0xbb1   : > { %3394 = vmatprep.subr.bf16.mxu0 %v9111_v46 }
 0xbb3   : > { %3428 = vmatpush1.bf16.msra.mxu1 %v9030_v21 }
 0xbb4   : > { %3429 = vmatprep.subr.bf16.mxu1 %v9044_v43 }
 0xbb7   : > { %3430 = vmatpush1.bf16.msra.mxu1 %v9054_v29 }
 0xbb8   : > { %3431 = vmatprep.subr.bf16.mxu1 %v9068_v47 }
 0xbbb   : > { %3432 = vmatpush1.bf16.msra.mxu1 %v9078_v38  ;;  %v9121_v38 = vld [vmem:[%s9625_s7] ss:$16 sps:$4 sm:$0xff]  }
 0xbbc   : > { %3433 = vmatprep.subr.bf16.mxu1 %v9092_v31  ;;  %v9126_v31 = vld [vmem:[%s9625_s7 + $0x8] ss:$16 sps:$4 sm:$0xff]   ;;  %3395 = vmatpush1.bf16.msra.mxu0 %v9121_v38 }
 0xbbf   : > { %3434 = vmatpush1.bf16.msra.mxu1 %v9102_v22 }
 0xbc0   : > { %3435 = vmatprep.subr.bf16.mxu1 %v9116_v17 }
 0xbc3   : > { %3436 = vmatpush1.bf16.msra.mxu1 %v9126_v31 }
 0xbc4   : > { %3736 = vmatprep.subr.bf16.mxu1 %v8789_v44 }
 0xc66   : > { %v3170_v22 = vpop.f32.mrf.mxu1 }
 0xc67   : > { %v6172_v47 = vmul.f32 -1.442695, %v3170_v22 }
 0xc68   : > { %v3172_v29 = vpop.f32.mrf.mxu1 }
 0xc69   : > { %7088 = vpow2.f32 %v6172_v47 }
 0xc6a   : > { %v3174_v43 = vpop.f32.mrf.mxu1  ;;  %7090 = vtanh.f32 %v3172_v29 }
 0xc6c   : > { %v3175_v21 = vpop.f32.mrf.mxu1 }
 0xc76   : > { %v7089_v50 = vpop.eup %7088 }
 0xc77   : > { %v3180_v7 = vadd.f32 1.0, %v7089_v50  ;;  %v7091_v3 = vpop.eup %7090 }
 0xc78   : > { %v3184_v63 = vsub.f32 %v7091_v3, %v8935_v28 }
 0xc79   : > { %7092 = vrcp.f32 %v3180_v7 }
 0xc86   : > { %v7093_v17 = vpop.eup %7092 }
 0xc87   : > { %v3185_v51 = vmul.f32 %v7093_v17, %v3184_v63 }
 0xc89   : > { %v9135_v41 = vadd.f32 %v3185_v51, %v8935_v28  ;;  %v9201_v28 = vld [vmem:[#allocation17] ss:$8 sps:$4 sm:$0xff]  }
 0xc8a   : > { %9683 = vst [vmem:[#allocation56_spill] sm:$0xff] %v9201_v28 }
 0xc8b   : > { %v3219_v44 = vpack.c.bf16 %v9135_v41, %v9135_v41 }
 0xc8d   : > { %3413 = vmatmul.mubr.bf16.vlgmr.msra.gmra.mxu0 %v3219_v44  ;;  %3454 = vmatmul.mubr.bf16.vlgmr.msra.gmra.mxu1 %v3219_v44 }
 0xc8e   : > { %3616 = vmatprep.mubr.bf16.mxu0 %v9642_v23  ;;  %3737 = vmatpush1.bf16.msra.mxu1 %v8794_v24  ;;  %v9157_v24 = vld [vmem:[#allocation17 + $0x74] ss:$8 sps:$4 sm:$0xff]  }
 0xc8f   : > { %3738 = vmatprep.subr.bf16.mxu1 %v8801_v25  ;;  %3768 = vmatprep.mubr.bf16.mxu1 %v9642_v23  ;;  %v9159_v25 = vld [vmem:[#allocation17 + $0x70] ss:$8 sps:$4 sm:$0xff]  }
 0xc90   : > { %3584 = vmatprep.subr.bf16.mxu0 %v9157_v24 }
 0xc91   : > { %3585 = vmatpush1.bf16.msra.mxu0 %v9159_v25 }
 0xc92   : > { %3739 = vmatpush1.bf16.msra.mxu1 %v8806_v26  ;;  %v9163_v26 = vld [vmem:[#allocation17 + $0x64] ss:$8 sps:$4 sm:$0xff]  }
 0xc93   : > { %3740 = vmatprep.subr.bf16.mxu1 %v8813_v42  ;;  %v9165_v42 = vld [vmem:[#allocation17 + $0x60] ss:$8 sps:$4 sm:$0xff]   ;;  %3586 = vmatprep.subr.bf16.mxu0 %v9163_v26 }
 0xc95   : > { %3587 = vmatpush1.bf16.msra.mxu0 %v9165_v42 }
 0xc96   : > { %3741 = vmatpush1.bf16.msra.mxu1 %v8818_v33  ;;  %v9169_v33 = vld [vmem:[#allocation17 + $0x54] ss:$8 sps:$4 sm:$0xff]  }
 0xc97   : > { %3742 = vmatprep.subr.bf16.mxu1 %v8825_v35  ;;  %v9171_v35 = vld [vmem:[#allocation17 + $0x50] ss:$8 sps:$4 sm:$0xff]   ;;  %3588 = vmatprep.subr.bf16.mxu0 %v9169_v33 }
 0xc99   : > { %3589 = vmatpush1.bf16.msra.mxu0 %v9171_v35 }
 0xc9a   : > { %3743 = vmatpush1.bf16.msra.mxu1 %v8830_v2  ;;  %v9175_v2 = vld [vmem:[#allocation17 + $0x44] ss:$8 sps:$4 sm:$0xff]  }
 0xc9b   : > { %3744 = vmatprep.subr.bf16.mxu1 %v8837_v5  ;;  %v9177_v5 = vld [vmem:[#allocation17 + $0x40] ss:$8 sps:$4 sm:$0xff]   ;;  %3590 = vmatprep.subr.bf16.mxu0 %v9175_v2 }
 0xc9d   : > { %3591 = vmatpush1.bf16.msra.mxu0 %v9177_v5 }
 0xc9e   : > { %3745 = vmatpush1.bf16.msra.mxu1 %v8842_v6  ;;  %v9181_v6 = vld [vmem:[#allocation17 + $0x34] ss:$8 sps:$4 sm:$0xff]  }
 0xc9f   : > { %3746 = vmatprep.subr.bf16.mxu1 %v8849_v30  ;;  %v9183_v30 = vld [vmem:[#allocation17 + $0x30] ss:$8 sps:$4 sm:$0xff]   ;;  %3592 = vmatprep.subr.bf16.mxu0 %v9181_v6 }
 0xca1   : > { %3593 = vmatpush1.bf16.msra.mxu0 %v9183_v30 }
 0xca2   : > { %3747 = vmatpush1.bf16.msra.mxu1 %v8854_v34  ;;  %v9187_v34 = vld [vmem:[#allocation17 + $0x24] ss:$8 sps:$4 sm:$0xff]  }
 0xca3   : > { %3748 = vmatprep.subr.bf16.mxu1 %v8861_v48  ;;  %v9189_v48 = vld [vmem:[#allocation17 + $0x20] ss:$8 sps:$4 sm:$0xff]   ;;  %3594 = vmatprep.subr.bf16.mxu0 %v9187_v34 }
 0xca5   : > { %3595 = vmatpush1.bf16.msra.mxu0 %v9189_v48 }
 0xca6   : > { %3749 = vmatpush1.bf16.msra.mxu1 %v8866_v36  ;;  %v9193_v36 = vld [vmem:[#allocation17 + $0x14] ss:$8 sps:$4 sm:$0xff]  }
 0xca7   : > { %3750 = vmatprep.subr.bf16.mxu1 %v8873_v27  ;;  %v9195_v27 = vld [vmem:[#allocation17 + $0x10] ss:$8 sps:$4 sm:$0xff]   ;;  %3596 = vmatprep.subr.bf16.mxu0 %v9193_v36 }
 0xca8   : > { %9681 = vst [vmem:[#allocation53_spill] sm:$0xff] %v9195_v27 }
 0xca9   : > { %3597 = vmatpush1.bf16.msra.mxu0 %v9195_v27 }
 0xcaa   : > { %3751 = vmatpush1.bf16.msra.mxu1 %v8878_v45  ;;  %v9199_v45 = vld [vmem:[#allocation17 + $0x4] ss:$8 sps:$4 sm:$0xff]  }
 0xcab   : > { %4130 = vmatprep.subr.bf16.mxu1 %v8943_v16  ;;  %9682 = vst [vmem:[#allocation54_spill] sm:$0xff] %v9199_v45  ;;  %3598 = vmatprep.subr.bf16.mxu0 %v9199_v45 }
 0xcad   : > { %3599 = vmatpush1.bf16.msra.mxu0 %v9201_v28 }
 0xcae   : > { %3886 = vmatprep.subr.bf16.mxu0 %v8885_v53 }
 0xd4d   : > { %v3414_v16 = vpop.f32.mrf.mxu0  ;;  %v3455_v51 = vpop.f32.mrf.mxu1 }
 0xd4e   : > { %v6205_v63 = vmul.f32 -1.442695, %v3414_v16  ;;  %v6206_v3 = vmul.f32 -1.442695, %v3455_v51 }
 0xd4f   : > { %v3416_v7 = vpop.f32.mrf.mxu0  ;;  %v3457_v50 = vpop.f32.mrf.mxu1 }
 0xd50   : > { %7094 = vpow2.f32 %v6205_v63  ;;  %v6207_v21 = vmul.f32 -1.442695, %v3457_v50  ;;  %v3468_v16 = vmax.f32 %v3416_v7, 0.0 }
 0xd51   : > { %7096 = vpow2.f32 %v6206_v3  ;;  %v3418_v43 = vpop.f32.mrf.mxu0  ;;  %v3459_v29 = vpop.f32.mrf.mxu1 }
 0xd52   : > { %7098 = vpow2.f32 %v6207_v21  ;;  %v3469_v51 = vsub.f32 %v3468_v16, %v9135_v41  ;;  %v9690_v16 = vld [vmem:[#allocation41_spill] sm:$0xff] }
 0xd53   : > { %v3419_v47 = vpop.f32.mrf.mxu0  ;;  %v3460_v22 = vpop.f32.mrf.mxu1 }
 0xd5d   : > { %v7095_v17 = vpop.eup %7094 }
 0xd5e   : > { %v7097_v44 = vpop.eup %7096  ;;  %v3465_v45 = vadd.f32 1.0, %v7095_v17 }
 0xd5f   : > { %v7099_v28 = vpop.eup %7098  ;;  %v3475_v53 = vadd.f32 1.0, %v7097_v44  ;;  %v9688_v44 = vld [vmem:[#allocation36_spill] sm:$0xff] }
 0xd60   : > { %7100 = vrcp.f32 %v3465_v45  ;;  %v3481_v27 = vadd.f32 1.0, %v7099_v28 }
 0xd62   : > { %7102 = vrcp.f32 %v3481_v27 }
 0xd63   : > { %7104 = vrcp.f32 %v3475_v53  ;;  %v9689_v53 = vld [vmem:[#allocation40_spill] sm:$0xff] }
 0xd6d   : > { %v7101_v63 = vpop.eup %7100 }
 0xd6e   : > { %v3470_v50 = vmul.f32 %v7101_v63, %v3469_v51  ;;  %v9691_v51 = vld [vmem:[#allocation42_spill] sm:$0xff]  ;;  %v9692_v63 = vld [vmem:[#allocation43_spill] sm:$0xff] }
 0xd6f   : > { %v7103_v3 = vpop.eup %7102 }
 0xd70   : > { %v3471_v43 = vadd.f32 %v3470_v50, %v9135_v41  ;;  %v3484_v21 = vsub.f32 %v7103_v3, %v9135_v41  ;;  %v7105_v29 = vpop.eup %7104  ;;  %v9693_v50 = vld [vmem:[#allocation44_spill] sm:$0xff]  ;;  %v9694_v3 = vld [vmem:[#allocation45_spill] sm:$0xff] }
 0xd72   : > { %v3503_v47 = vpack.c.bf16 %v3471_v43, %v3471_v43  ;;  %v3485_v22 = vmul.f32 %v7105_v29, %v3484_v21  ;;  %v9696_v21 = vld [vmem:[#allocation47_spill] sm:$0xff]  ;;  %v9697_v29 = vld [vmem:[#allocation48_spill] sm:$0xff] }
 0xd74   : > { %3617 = vmatmul.mubr.bf16.vlgmr.msra.gmra.mxu0 %v3503_v47  ;;  %v9698_v47 = vld [vmem:[#allocation49_spill] sm:$0xff] }
 0xd75   : > { %3887 = vmatpush1.bf16.msra.mxu0 %v8887_v54  ;;  %3918 = vmatprep.mubr.bf16.mxu0 %v9642_v23 }
 0xd76   : > { %3888 = vmatprep.subr.bf16.mxu0 %v8891_v55 }
 0xd79   : > { %3889 = vmatpush1.bf16.msra.mxu0 %v8893_v8 }
 0xd7a   : > { %3890 = vmatprep.subr.bf16.mxu0 %v8897_v56 }
 0xd7d   : > { %3891 = vmatpush1.bf16.msra.mxu0 %v8899_v57 }
 0xd7e   : > { %3892 = vmatprep.subr.bf16.mxu0 %v8903_v58 }
 0xd81   : > { %3893 = vmatpush1.bf16.msra.mxu0 %v8905_v11 }
 0xd82   : > { %3894 = vmatprep.subr.bf16.mxu0 %v8907_v59  ;;  %v3486_v59 = vadd.f32 %v3485_v22, %v9135_v41  ;;  %v9699_v22 = vld [vmem:[#allocation50_spill] sm:$0xff] }
 0xd85   : > { %3895 = vmatpush1.bf16.msra.mxu0 %v8911_v60 }
 0xd86   : > { %3896 = vmatprep.subr.bf16.mxu0 %v8914_v61 }
 0xd89   : > { %3897 = vmatpush1.bf16.msra.mxu0 %v8917_v12 }
 0xd8a   : > { %3898 = vmatprep.subr.bf16.mxu0 %v8920_v62  ;;  %v3634_v62 = vadd.f32 %v3471_v43, %v9135_v41  ;;  %v9684_v41 = vld [vmem:[#allocation39_spill] sm:$0xff] }
 0xd8d   : > { %3899 = vmatpush1.bf16.msra.mxu0 %v8923_v1 }
 0xd8e   : > { %3900 = vmatprep.subr.bf16.mxu0 %v8926_v13  ;;  %v3635_v13 = vadd.f32 %v3634_v62, %v3486_v59 }
 0xd91   : > { %3901 = vmatpush1.bf16.msra.mxu0 %v8929_v14 }
 0xd92   : > { %4171 = vmatprep.subr.bf16.mxu0 %v8948_v19 }
 0xe34   : > { %v3618_v54 = vpop.f32.mrf.mxu0 }
 0xe35   : > { %v6224_v55 = vmul.f32 -1.442695, %v3618_v54  ;;  %v9700_v54 = vld [vmem:[#allocation51_spill] sm:$0xff] }
 0xe36   : > { %v3620_v8 = vpop.f32.mrf.mxu0 }
 0xe37   : > { %7106 = vpow2.f32 %v6224_v55  ;;  %v3631_v60 = vsub.f32 %v3620_v8, %v3471_v43  ;;  %v9701_v55 = vld [vmem:[#allocation52_spill] sm:$0xff] }
 0xe38   : > { %v3622_v56 = vpop.f32.mrf.mxu0 }
 0xe3a   : > { %v3623_v57 = vpop.f32.mrf.mxu0 }
 0xe44   : > { %v7107_v58 = vpop.eup %7106 }
 0xe45   : > { %v3628_v11 = vadd.f32 1.0, %v7107_v58 }
 0xe47   : > { %7108 = vrcp.f32 %v3628_v11 }
 0xe54   : > { %v7109_v61 = vpop.eup %7108 }
 0xe55   : > { %v3632_v12 = vmul.f32 %v7109_v61, %v3631_v60 }
 0xe57   : > { %v3633_v1 = vadd.f32 %v3632_v12, %v3471_v43  ;;  %v9695_v43 = vld [vmem:[#allocation46_spill] sm:$0xff] }
 0xe59   : > { %v3636_v14 = vadd.f32 %v3635_v13, %v3633_v1 }
 0xe5b   : > { %v3637_v19 = vmul.f32 0.25, %v3636_v14 }
 0xe5d   : > { %3638 = vst [vmem:[#allocation2 + $0x18] sm:$0xff] %v3637_v19  ;;  %v3655_v27 = vpack.c.bf16 %v3637_v19, %v3637_v19 }
 0xe5f   : > { %3769 = vmatmul.mubr.bf16.vlgmr.msra.gmra.mxu1 %v3655_v27 }
 0xe60   : > { %4131 = vmatpush1.bf16.msra.mxu1 %v8953_v37  ;;  %4162 = vmatprep.mubr.bf16.mxu1 %v9642_v23 }
 0xe61   : > { %4132 = vmatprep.subr.bf16.mxu1 %v8967_v49 }
 0xe64   : > { %4133 = vmatpush1.bf16.msra.mxu1 %v8977_v52 }
 0xe65   : > { %4134 = vmatprep.subr.bf16.mxu1 %v8991_v0 }
 0xe68   : > { %4135 = vmatpush1.bf16.msra.mxu1 %v9001_v4 }
 0xe69   : > { %4136 = vmatprep.subr.bf16.mxu1 %v9015_v10 }
 0xe6c   : > { %4137 = vmatpush1.bf16.msra.mxu1 %v9025_v15  ;;  %v9685_v15 = vld [vmem:[#allocation55_spill] sm:$0xff] }
 0xe6d   : > { %4138 = vmatprep.subr.bf16.mxu1 %v9039_v20  ;;  %v9686_v20 = vld [vmem:[#allocation34_spill] sm:$0xff] }
 0xe70   : > { %4139 = vmatpush1.bf16.msra.mxu1 %v9049_v9  ;;  %v1366_v9 = vadd.f32 %v9686_v20, %v9685_v15 }
 0xe71   : > { %4140 = vmatprep.subr.bf16.mxu1 %v9063_v32  ;;  %v9687_v32 = vld [vmem:[#allocation35_spill] sm:$0xff] }
 0xe74   : > { %4141 = vmatpush1.bf16.msra.mxu1 %v9073_v18  ;;  %v1387_v18 = vadd.f32 %v9687_v32, %v1366_v9 }
 0xe75   : > { %4142 = vmatprep.subr.bf16.mxu1 %v9087_v39 }
 0xe78   : > { %4143 = vmatpush1.bf16.msra.mxu1 %v9097_v40 }
 0xe79   : > { %4144 = vmatprep.subr.bf16.mxu1 %v9111_v46 }
 0xe7c   : > { %4145 = vmatpush1.bf16.msra.mxu1 %v9121_v38 }
 0xe7d   : > { %4334 = vmatprep.subr.bf16.mxu1 %v9157_v24 }
 0xf1f   : > { %v3770_v37 = vpop.f32.mrf.mxu1 }
 0xf20   : > { %v3777_v49 = vadd.f32 %v3770_v37, %v9684_v41 }
 0xf21   : > { %v3772_v52 = vpop.f32.mrf.mxu1 }
 0xf22   : > { %v6241_v0 = vmul.f32 -1.442695, %v3777_v49  ;;  %v3778_v39 = vadd.f32 %v3772_v52, %v1387_v18 }
 0xf23   : > { %v3774_v4 = vpop.f32.mrf.mxu1 }
 0xf24   : > { %7110 = vpow2.f32 %v6241_v0 }
 0xf25   : > { %v3775_v10 = vpop.f32.mrf.mxu1  ;;  %7112 = vtanh.f32 %v3778_v39 }
 0xf31   : > { %v7111_v40 = vpop.eup %7110 }
 0xf32   : > { %v3782_v46 = vadd.f32 1.0, %v7111_v40  ;;  %v7113_v38 = vpop.eup %7112 }
 0xf33   : > { %v3786_v24 = vsub.f32 %v7113_v38, %v3637_v19 }
 0xf34   : > { %7114 = vrcp.f32 %v3782_v46  ;;  %v6311_v46 = vld [vmem:[#allocation23] ss:$0 sm:$0xff] }
 0xf35   : > { %4397 = vst [vmem:[%s9705_s30] sm:$0xff] %v6311_v46 }
 0xf41   : > { %v7115_v45 = vpop.eup %7114 }
 0xf42   : > { %v3787_v28 = vmul.f32 %v7115_v45, %v3786_v24 }
 0xf44   : > { %v3788_v7 = vadd.f32 %v3787_v28, %v3637_v19 }
 0xf46   : > { %v3805_v17 = vpack.c.bf16 %v3788_v7, %v3788_v7 }
 0xf48   : > { %3919 = vmatmul.mubr.bf16.vlgmr.msra.gmra.mxu0 %v3805_v17 }
 0xf49   : > { %4172 = vmatpush1.bf16.msra.mxu0 %v9688_v44  ;;  %4203 = vmatprep.mubr.bf16.mxu0 %v9642_v23 }
 0xf4a   : > { %4173 = vmatprep.subr.bf16.mxu0 %v9689_v53 }
 0xf4d   : > { %4174 = vmatpush1.bf16.msra.mxu0 %v9690_v16 }
 0xf4e   : > { %4175 = vmatprep.subr.bf16.mxu0 %v9691_v51 }
 0xf51   : > { %4176 = vmatpush1.bf16.msra.mxu0 %v9692_v63 }
 0xf52   : > { %4177 = vmatprep.subr.bf16.mxu0 %v9693_v50 }
 0xf55   : > { %4178 = vmatpush1.bf16.msra.mxu0 %v9694_v3 }
 0xf56   : > { %4179 = vmatprep.subr.bf16.mxu0 %v9695_v43 }
 0xf59   : > { %4180 = vmatpush1.bf16.msra.mxu0 %v9696_v21 }
 0xf5a   : > { %4181 = vmatprep.subr.bf16.mxu0 %v9697_v29 }
 0xf5d   : > { %4182 = vmatpush1.bf16.msra.mxu0 %v9698_v47 }
 0xf5e   : > { %4183 = vmatprep.subr.bf16.mxu0 %v9699_v22 }
 0xf61   : > { %4184 = vmatpush1.bf16.msra.mxu0 %v9700_v54 }
 0xf62   : > { %4185 = vmatprep.subr.bf16.mxu0 %v9701_v55 }
 0xf65   : > { %4186 = vmatpush1.bf16.msra.mxu0 %v9126_v31  ;;  %v9703_v31 = vld [vmem:[#allocation54_spill] sm:$0xff] }
0x1008   : > { %v3920_v8 = vpop.f32.mrf.mxu0 }
0x1009   : > { %v6258_v56 = vmul.f32 -1.442695, %v3920_v8 }
0x100a   : > { %v3922_v57 = vpop.f32.mrf.mxu0 }
0x100b   : > { %7116 = vpow2.f32 %v6258_v56 }
0x100c   : > { %v3924_v58 = vpop.f32.mrf.mxu0  ;;  %7118 = vtanh.f32 %v3922_v57 }
0x100e   : > { %v3925_v11 = vpop.f32.mrf.mxu0 }
0x1018   : > { %v7117_v59 = vpop.eup %7116 }
0x1019   : > { %v3930_v60 = vadd.f32 1.0, %v7117_v59  ;;  %v7119_v61 = vpop.eup %7118 }
0x101a   : > { %v3934_v12 = vsub.f32 %v7119_v61, %v3788_v7 }
0x101b   : > { %7120 = vrcp.f32 %v3930_v60 }
0x1028   : > { %v7121_v62 = vpop.eup %7120 }
0x1029   : > { %v3935_v1 = vmul.f32 %v7121_v62, %v3934_v12 }
0x102b   : > { %v9265_v13 = vadd.f32 %v3935_v1, %v3788_v7 }
0x102d   : > { %v3969_v14 = vpack.c.bf16 %v9265_v13, %v9265_v13 }
0x102f   : > { %4163 = vmatmul.mubr.bf16.vlgmr.msra.gmra.mxu1 %v3969_v14  ;;  %4204 = vmatmul.mubr.bf16.vlgmr.msra.gmra.mxu0 %v3969_v14 }
0x1030   : > { %4335 = vmatpush1.bf16.msra.mxu1 %v9159_v25  ;;  %4366 = vmatprep.mubr.bf16.mxu1 %v9642_v23  ;;  %v9702_v23 = vld [vmem:[#allocation53_spill] sm:$0xff]  ;;  %v9704_v25 = vld [vmem:[#allocation56_spill] sm:$0xff] }
0x1031   : > { %4336 = vmatprep.subr.bf16.mxu1 %v9163_v26 }
0x1034   : > { %4337 = vmatpush1.bf16.msra.mxu1 %v9165_v42 }
0x1035   : > { %4338 = vmatprep.subr.bf16.mxu1 %v9169_v33 }
0x1038   : > { %4339 = vmatpush1.bf16.msra.mxu1 %v9171_v35 }
0x1039   : > { %4340 = vmatprep.subr.bf16.mxu1 %v9175_v2 }
0x103c   : > { %4341 = vmatpush1.bf16.msra.mxu1 %v9177_v5 }
0x103d   : > { %4342 = vmatprep.subr.bf16.mxu1 %v9181_v6 }
0x1040   : > { %4343 = vmatpush1.bf16.msra.mxu1 %v9183_v30 }
0x1041   : > { %4344 = vmatprep.subr.bf16.mxu1 %v9187_v34 }
0x1044   : > { %4345 = vmatpush1.bf16.msra.mxu1 %v9189_v48 }
0x1045   : > { %4346 = vmatprep.subr.bf16.mxu1 %v9193_v36 }
0x1048   : > { %4347 = vmatpush1.bf16.msra.mxu1 %v9702_v23 }
0x1049   : > { %4348 = vmatprep.subr.bf16.mxu1 %v9703_v31 }
0x104c   : > { %4349 = vmatpush1.bf16.msra.mxu1 %v9704_v25 }
0x10ef   : > { %v4164_v26 = vpop.f32.mrf.mxu1  ;;  %v4205_v42 = vpop.f32.mrf.mxu0 }
0x10f0   : > { %v6291_v33 = vmul.f32 -1.442695, %v4164_v26  ;;  %v6292_v35 = vmul.f32 -1.442695, %v4205_v42 }
0x10f1   : > { %v4166_v2 = vpop.f32.mrf.mxu1  ;;  %v4207_v5 = vpop.f32.mrf.mxu0 }
0x10f2   : > { %7122 = vpow2.f32 %v6291_v33  ;;  %v6293_v6 = vmul.f32 -1.442695, %v4207_v5  ;;  %v4218_v0 = vmax.f32 %v4166_v2, 0.0 }
0x10f3   : > { %7124 = vpow2.f32 %v6292_v35  ;;  %v4168_v30 = vpop.f32.mrf.mxu1  ;;  %v4209_v34 = vpop.f32.mrf.mxu0 }
0x10f4   : > { %7126 = vpow2.f32 %v6293_v6  ;;  %v4219_v4 = vsub.f32 %v4218_v0, %v9265_v13 }
0x10f5   : > { %v4169_v48 = vpop.f32.mrf.mxu1  ;;  %v4210_v36 = vpop.f32.mrf.mxu0 }
0x10ff   : > { %v7123_v19 = vpop.eup %7122 }
0x1100   : > { %v7125_v27 = vpop.eup %7124  ;;  %v4215_v37 = vadd.f32 1.0, %v7123_v19 }
0x1101   : > { %v7127_v41 = vpop.eup %7126  ;;  %v4225_v49 = vadd.f32 1.0, %v7125_v27 }
0x1102   : > { %7128 = vrcp.f32 %v4215_v37  ;;  %v4231_v52 = vadd.f32 1.0, %v7127_v41 }
0x1104   : > { %7130 = vrcp.f32 %v4231_v52 }
0x1105   : > { %7132 = vrcp.f32 %v4225_v49 }
0x110f   : > { %v7129_v10 = vpop.eup %7128 }
0x1110   : > { %v4220_v15 = vmul.f32 %v7129_v10, %v4219_v4 }
0x1111   : > { %v7131_v20 = vpop.eup %7130 }
0x1112   : > { %v4221_v9 = vadd.f32 %v4220_v15, %v9265_v13  ;;  %v4234_v32 = vsub.f32 %v7131_v20, %v9265_v13  ;;  %v7133_v18 = vpop.eup %7132 }
0x1114   : > { %v4253_v39 = vpack.c.bf16 %v4221_v9, %v4221_v9  ;;  %v4235_v40 = vmul.f32 %v7133_v18, %v4234_v32  ;;  %v4384_v50 = vadd.f32 %v4221_v9, %v9265_v13 }
0x1116   : > { %4367 = vmatmul.mubr.bf16.vlgmr.msra.gmra.mxu1 %v4253_v39  ;;  %v4236_v53 = vadd.f32 %v4235_v40, %v9265_v13 }
0x1118   : > { %v4385_v43 = vadd.f32 %v4384_v50, %v4236_v53 }
0x11d6   : > { %v4368_v38 = vpop.f32.mrf.mxu1 }
0x11d7   : > { %v6310_v24 = vmul.f32 -1.442695, %v4368_v38 }
0x11d8   : > { %v4370_v45 = vpop.f32.mrf.mxu1 }
0x11d9   : > { %7134 = vpow2.f32 %v6310_v24  ;;  %v4381_v16 = vsub.f32 %v4370_v45, %v4221_v9 }
0x11da   : > { %v4372_v28 = vpop.f32.mrf.mxu1 }
0x11dc   : > { %v4373_v7 = vpop.f32.mrf.mxu1 }
0x11e6   : > { %v7135_v17 = vpop.eup %7134 }
0x11e7   : > { %v4378_v44 = vadd.f32 1.0, %v7135_v17 }
0x11e9   : > { %7136 = vrcp.f32 %v4378_v44 }
0x11f6   : > { %v7137_v51 = vpop.eup %7136 }
0x11f7   : > { %v4382_v63 = vmul.f32 %v7137_v51, %v4381_v16 }
0x11f9   : > { %v4383_v3 = vadd.f32 %v4382_v63, %v4221_v9 }
0x11fb   : > { %v4386_v21 = vadd.f32 %v4385_v43, %v4383_v3 }
0x11fd   : > { %v4387_v29 = vmul.f32 0.25, %v4386_v21 }
0x11ff   : > { %4388 = vst [vmem:[#allocation2 + $0x8] sm:$0xff] %v4387_v29  ;;  %4389 = vst [vmem:[#allocation24] sm:$0xff] %v4387_v29 }
0x1200 PF: > { %v7138_v47 = vld [vmem:[%s8170_s5 + $0xe4] ss:$16 sps:$4 sm:$0xff]   ;;  %v7142_v54 = vld [vmem:[%s8170_s5 + $0xe0] ss:$16 sps:$4 sm:$0xff]   ;;  %s6480_s2 = sshll.u32 %s7947_s29, 8  ;;  %p6701_p3 = scmp.eq.s32.totalorder %s7947_s29, 1 }
0x1201   : > { %v7140_v22 = vld [vmem:[%s8170_s5 + $0x2e4] ss:$16 sps:$4 sm:$0xff]   ;;  %5198 = vmatprep.subr.bf16.mxu0 %v7138_v47  ;;  %v7143_v55 = vld [vmem:[%s8170_s5 + $0x2e0] ss:$16 sps:$4 sm:$0xff]   ;;  %s9395_s21 = scalar_lea.vmem [#allocation21], %s6480_s2  ;;  %s7815_s14 = smov [#allocation24]  }
0x1202   : > { %5239 = vmatprep.subr.bf16.mxu1 %v7140_v22  ;;  %v7144_v8 = vld [vmem:[%s8170_s5 + $0xc4] ss:$16 sps:$4 sm:$0xff]   ;;  %5199 = vmatpush1.bf16.msra.mxu0 %v7142_v54  ;;  %v7148_v57 = vld [vmem:[%s8170_s5 + $0xc0] ss:$16 sps:$4 sm:$0xff]   ;;  %s5722_s0 = sshll.u32 %s7815_s14, 4  ;;  %s5723_s0 = int_to_ptr.vmem [resolvable:$true] %s5722_s0 }
0x1203   : > { %5240 = vmatpush1.bf16.msra.mxu1 %v7143_v55  ;;  %v7146_v56 = vld [vmem:[%s8170_s5 + $0x2c4] ss:$16 sps:$4 sm:$0xff]   ;;  %5200 = vmatprep.subr.bf16.mxu0 %v7144_v8  ;;  %v7149_v58 = vld [vmem:[%s8170_s5 + $0x2c0] ss:$16 sps:$4 sm:$0xff]   ;;  %s7702_s23 = scalar_lea.vmem %s5723_s0, 128  ;;  %p7709_p0 = scmp.lt.s32.totalorder %s5723_s0, %s5723_s0 }
0x1204   : > { %5241 = vmatprep.subr.bf16.mxu1 %v7146_v56  ;;  %v7150_v11 = vld [vmem:[%s8170_s5 + $0xa4] ss:$16 sps:$4 sm:$0xff]   ;;  %v7154_v60 = vld [vmem:[%s8170_s5 + $0xa0] ss:$16 sps:$4 sm:$0xff]   ;;  %v4400_v56 = vld [vmem:[#allocation2 + $0x18] sm:$0xff]  ;;  %p7703_p7 = scmp.ne.s32.totalorder %s5723_s0, %s7702_s23  ;;  %p7710_p2 = scmp.lt.s32.totalorder %s7702_s23, %s7702_s23 }
0x1205   : > { %v7152_v59 = vld [vmem:[%s8170_s5 + $0x2a4] ss:$16 sps:$4 sm:$0xff]   ;;  %v7155_v61 = vld [vmem:[%s8170_s5 + $0x2a0] ss:$16 sps:$4 sm:$0xff]  }
0x1206   : > { %5201 = vmatpush1.bf16.msra.mxu0 %v7148_v57  ;;  %v7156_v12 = vld [vmem:[%s8170_s5 + $0x84] ss:$16 sps:$4 sm:$0xff]   ;;  %v7160_v1 = vld [vmem:[%s8170_s5 + $0x80] ss:$16 sps:$4 sm:$0xff]   ;;  %v4401_v45 = vld [vmem:[#allocation2 + $0x8] sm:$0xff]  ;;  %p7704_p12 = pnand %p7703_p7, %p6701_p3  ;;  %p7711_p13 = por %p7710_p2, %p7709_p0 }
0x1207   : > { %5242 = vmatpush1.bf16.msra.mxu1 %v7149_v58  ;;  %5202 = vmatprep.subr.bf16.mxu0 %v7150_v11  ;;  %v7158_v62 = vld [vmem:[%s8170_s5 + $0x284] ss:$16 sps:$4 sm:$0xff]   ;;  %v7161_v13 = vld [vmem:[%s8170_s5 + $0x280] ss:$16 sps:$4 sm:$0xff]   ;;  %v4533_v7 = vpack.c.bf16 %v4401_v45, %v4401_v45  ;;  %v7236_v57 = vld [vmem:[%s8170_s5 + $0xec] ss:$16 sps:$4 sm:$0xff]  }
0x1208   : > { %5243 = vmatprep.subr.bf16.mxu1 %v7152_v59  ;;  %v7162_v14 = vld [vmem:[%s8170_s5 + $0x64] ss:$16 sps:$4 sm:$0xff]   ;;  %v7166_v31 = vld [vmem:[%s8170_s5 + $0x60] ss:$16 sps:$4 sm:$0xff]   ;;  %v7239_v58 = vld [vmem:[%s8170_s5 + $0x2ec] ss:$16 sps:$4 sm:$0xff]   ;;  %v9364_v59 = vpack.c.bf16 %v4400_v56, %v4400_v56  ;;  %p7705_p6 = pneg %p7704_p12 }
0x1209   : > { %v7164_v23 = vld [vmem:[%s8170_s5 + $0x264] ss:$16 sps:$4 sm:$0xff]   ;;  %v7167_v25 = vld [vmem:[%s8170_s5 + $0x260] ss:$16 sps:$4 sm:$0xff]   ;;  %5271 = vmatprep.mubr.bf16.mxu1 %v4533_v7  ;;  %v7294_v45 = vld [vmem:[%s8170_s5 + $0x1a8] ss:$16 sps:$4 sm:$0xff]  }
0x120a   : > { %5203 = vmatpush1.bf16.msra.mxu0 %v7154_v60  ;;  %v7168_v26 = vld [vmem:[%s8170_s5 + $0x44] ss:$16 sps:$4 sm:$0xff]   ;;  %v7172_v33 = vld [vmem:[%s8170_s5 + $0x40] ss:$16 sps:$4 sm:$0xff]   ;;  %v7234_v60 = vld [vmem:[%s8170_s5 + $0xe8] ss:$16 sps:$4 sm:$0xff]   ;;  %p7712_p5 = pnand %p7711_p13, %p7705_p6 }
0x120b   : > { %5244 = vmatpush1.bf16.msra.mxu1 %v7155_v61  ;;  %5204 = vmatprep.subr.bf16.mxu0 %v7156_v12  ;;  %v7170_v42 = vld [vmem:[%s8170_s5 + $0x244] ss:$16 sps:$4 sm:$0xff]   ;;  %v7173_v35 = vld [vmem:[%s8170_s5 + $0x240] ss:$16 sps:$4 sm:$0xff]   ;;  %v7237_v61 = vld [vmem:[%s8170_s5 + $0x2e8] ss:$16 sps:$4 sm:$0xff]  }
0x120c   : > { %5245 = vmatprep.subr.bf16.mxu1 %v7158_v62  ;;  %v7174_v2 = vld [vmem:[%s8170_s5 + $0x24] ss:$16 sps:$4 sm:$0xff]   ;;  %v7178_v6 = vld [vmem:[%s8170_s5 + $0x20] ss:$16 sps:$4 sm:$0xff]   ;;  %v7242_v12 = vld [vmem:[%s8170_s5 + $0xcc] ss:$16 sps:$4 sm:$0xff]  }
0x120d   : > { %v7176_v5 = vld [vmem:[%s8170_s5 + $0x224] ss:$16 sps:$4 sm:$0xff]   ;;  %v7179_v30 = vld [vmem:[%s8170_s5 + $0x220] ss:$16 sps:$4 sm:$0xff]   ;;  %v7245_v62 = vld [vmem:[%s8170_s5 + $0x2cc] ss:$16 sps:$4 sm:$0xff]  }
0x120e   : > { %5205 = vmatpush1.bf16.msra.mxu0 %v7160_v1  ;;  %v7180_v34 = vld [vmem:[%s8170_s5 + $0x4] ss:$16 sps:$4 sm:$0xff]   ;;  %v7184_v36 = vld [vmem:[%s8170_s5] ss:$16 sps:$4 sm:$0xff]   ;;  %v7240_v1 = vld [vmem:[%s8170_s5 + $0xc8] ss:$16 sps:$4 sm:$0xff]  }
0x120f   : > { %5246 = vmatpush1.bf16.msra.mxu1 %v7161_v13  ;;  %5206 = vmatprep.subr.bf16.mxu0 %v7162_v14  ;;  %v7182_v48 = vld [vmem:[%s8170_s5 + $0x204] ss:$16 sps:$4 sm:$0xff]   ;;  %v7185_v19 = vld [vmem:[%s8170_s5 + $0x200] ss:$16 sps:$4 sm:$0xff]   ;;  %v7243_v13 = vld [vmem:[%s8170_s5 + $0x2c8] ss:$16 sps:$4 sm:$0xff]  }
0x1210   : > { %5247 = vmatprep.subr.bf16.mxu1 %v7164_v23  ;;  %v7186_v27 = vld [vmem:[%s8170_s5 + $0x1e4] ss:$16 sps:$4 sm:$0xff]   ;;  %v7190_v41 = vld [vmem:[%s8170_s5 + $0x1e0] ss:$16 sps:$4 sm:$0xff]   ;;  %v7248_v14 = vld [vmem:[%s8170_s5 + $0xac] ss:$16 sps:$4 sm:$0xff]  }
0x1211   : > { %v7188_v37 = vld [vmem:[%s8170_s5 + $0x3e4] ss:$16 sps:$4 sm:$0xff]   ;;  %v7191_v49 = vld [vmem:[%s8170_s5 + $0x3e0] ss:$16 sps:$4 sm:$0xff]   ;;  %v7251_v23 = vld [vmem:[%s8170_s5 + $0x2ac] ss:$16 sps:$4 sm:$0xff]  }
0x1212   : > { %5207 = vmatpush1.bf16.msra.mxu0 %v7166_v31  ;;  %v7192_v52 = vld [vmem:[%s8170_s5 + $0x1c4] ss:$16 sps:$4 sm:$0xff]   ;;  %v7196_v4 = vld [vmem:[%s8170_s5 + $0x1c0] ss:$16 sps:$4 sm:$0xff]   ;;  %v7246_v31 = vld [vmem:[%s8170_s5 + $0xa8] ss:$16 sps:$4 sm:$0xff]  }
0x1213   : > { %5248 = vmatpush1.bf16.msra.mxu1 %v7167_v25  ;;  %5208 = vmatprep.subr.bf16.mxu0 %v7168_v26  ;;  %v7194_v0 = vld [vmem:[%s8170_s5 + $0x3c4] ss:$16 sps:$4 sm:$0xff]   ;;  %v7197_v10 = vld [vmem:[%s8170_s5 + $0x3c0] ss:$16 sps:$4 sm:$0xff]   ;;  %v7249_v25 = vld [vmem:[%s8170_s5 + $0x2a8] ss:$16 sps:$4 sm:$0xff]  }
0x1214   : > { %5249 = vmatprep.subr.bf16.mxu1 %v7170_v42  ;;  %v7198_v15 = vld [vmem:[%s8170_s5 + $0x1a4] ss:$16 sps:$4 sm:$0xff]   ;;  %v7202_v9 = vld [vmem:[%s8170_s5 + $0x1a0] ss:$16 sps:$4 sm:$0xff]   ;;  %v7254_v26 = vld [vmem:[%s8170_s5 + $0x8c] ss:$16 sps:$4 sm:$0xff]  }
0x1215   : > { %v7200_v20 = vld [vmem:[%s8170_s5 + $0x3a4] ss:$16 sps:$4 sm:$0xff]   ;;  %v7203_v32 = vld [vmem:[%s8170_s5 + $0x3a0] ss:$16 sps:$4 sm:$0xff]   ;;  %v7257_v42 = vld [vmem:[%s8170_s5 + $0x28c] ss:$16 sps:$4 sm:$0xff]  }
0x1216   : > { %5209 = vmatpush1.bf16.msra.mxu0 %v7172_v33  ;;  %v7204_v18 = vld [vmem:[%s8170_s5 + $0x184] ss:$16 sps:$4 sm:$0xff]   ;;  %v7208_v46 = vld [vmem:[%s8170_s5 + $0x180] ss:$16 sps:$4 sm:$0xff]   ;;  %v7252_v33 = vld [vmem:[%s8170_s5 + $0x88] ss:$16 sps:$4 sm:$0xff]  }
0x1217   : > { %5250 = vmatpush1.bf16.msra.mxu1 %v7173_v35  ;;  %5210 = vmatprep.subr.bf16.mxu0 %v7174_v2  ;;  %v7206_v39 = vld [vmem:[%s8170_s5 + $0x384] ss:$16 sps:$4 sm:$0xff]   ;;  %v7209_v38 = vld [vmem:[%s8170_s5 + $0x380] ss:$16 sps:$4 sm:$0xff]   ;;  %v7255_v35 = vld [vmem:[%s8170_s5 + $0x288] ss:$16 sps:$4 sm:$0xff]  }
0x1218   : > { %5251 = vmatprep.subr.bf16.mxu1 %v7176_v5  ;;  %v4399_v40 = vld [vmem:[#allocation2] sm:$0xff]  ;;  %v4398_v8 = vld [vmem:[#allocation2 + $0x10] sm:$0xff]  ;;  %v7260_v2 = vld [vmem:[%s8170_s5 + $0x6c] ss:$16 sps:$4 sm:$0xff]  }
0x1219   : > { %v9341_v24 = vpack.c.bf16 %v4399_v40, %v4399_v40  ;;  %v7210_v28 = vld [vmem:[%s8170_s5 + $0x164] ss:$16 sps:$4 sm:$0xff]   ;;  %v7214_v44 = vld [vmem:[%s8170_s5 + $0x160] ss:$16 sps:$4 sm:$0xff]   ;;  %v9362_v11 = vpack.c.bf16 %v4398_v8, %v4398_v8  ;;  %v7263_v5 = vld [vmem:[%s8170_s5 + $0x26c] ss:$16 sps:$4 sm:$0xff]  }
0x121a   : > { %5211 = vmatpush1.bf16.msra.mxu0 %v7178_v6  ;;  %v7212_v17 = vld [vmem:[%s8170_s5 + $0x364] ss:$16 sps:$4 sm:$0xff]   ;;  %v7215_v53 = vld [vmem:[%s8170_s5 + $0x360] ss:$16 sps:$4 sm:$0xff]   ;;  %v7258_v6 = vld [vmem:[%s8170_s5 + $0x68] ss:$16 sps:$4 sm:$0xff]  }
0x121b   : > { %5252 = vmatpush1.bf16.msra.mxu1 %v7179_v30  ;;  %5212 = vmatprep.subr.bf16.mxu0 %v7180_v34  ;;  %v7216_v16 = vld [vmem:[%s8170_s5 + $0x144] ss:$16 sps:$4 sm:$0xff]   ;;  %v7220_v63 = vld [vmem:[%s8170_s5 + $0x140] ss:$16 sps:$4 sm:$0xff]   ;;  %v7261_v30 = vld [vmem:[%s8170_s5 + $0x268] ss:$16 sps:$4 sm:$0xff]  }
0x121c   : > { %5253 = vmatprep.subr.bf16.mxu1 %v7182_v48  ;;  %5230 = vmatprep.mubr.bf16.mxu0 %v9341_v24  ;;  %v7218_v51 = vld [vmem:[%s8170_s5 + $0x344] ss:$16 sps:$4 sm:$0xff]   ;;  %v7221_v50 = vld [vmem:[%s8170_s5 + $0x340] ss:$16 sps:$4 sm:$0xff]   ;;  %v7266_v34 = vld [vmem:[%s8170_s5 + $0x4c] ss:$16 sps:$4 sm:$0xff]  }
0x121d   : > { %v7222_v3 = vld [vmem:[%s8170_s5 + $0x124] ss:$16 sps:$4 sm:$0xff]   ;;  %v7226_v21 = vld [vmem:[%s8170_s5 + $0x120] ss:$16 sps:$4 sm:$0xff]   ;;  %v7269_v48 = vld [vmem:[%s8170_s5 + $0x24c] ss:$16 sps:$4 sm:$0xff]  }
0x121e   : > { %5213 = vmatpush1.bf16.msra.mxu0 %v7184_v36  ;;  %v7224_v43 = vld [vmem:[%s8170_s5 + $0x324] ss:$16 sps:$4 sm:$0xff]   ;;  %v7227_v29 = vld [vmem:[%s8170_s5 + $0x320] ss:$16 sps:$4 sm:$0xff]   ;;  %v7264_v36 = vld [vmem:[%s8170_s5 + $0x48] ss:$16 sps:$4 sm:$0xff]  }
0x121f   : > { %5254 = vmatpush1.bf16.msra.mxu1 %v7185_v19  ;;  %5214 = vmatprep.subr.bf16.mxu0 %v7186_v27  ;;  %v7228_v47 = vld [vmem:[%s8170_s5 + $0x104] ss:$16 sps:$4 sm:$0xff]   ;;  %v7232_v54 = vld [vmem:[%s8170_s5 + $0x100] ss:$16 sps:$4 sm:$0xff]   ;;  %v7267_v19 = vld [vmem:[%s8170_s5 + $0x248] ss:$16 sps:$4 sm:$0xff]  }
0x1220   : > { %5255 = vmatprep.subr.bf16.mxu1 %v7188_v37  ;;  %v7230_v22 = vld [vmem:[%s8170_s5 + $0x304] ss:$16 sps:$4 sm:$0xff]   ;;  %v7233_v55 = vld [vmem:[%s8170_s5 + $0x300] ss:$16 sps:$4 sm:$0xff]   ;;  %v7272_v27 = vld [vmem:[%s8170_s5 + $0x2c] ss:$16 sps:$4 sm:$0xff]  }
0x1221   : > { %v7275_v37 = vld [vmem:[%s8170_s5 + $0x22c] ss:$16 sps:$4 sm:$0xff]   ;;  %v7288_v40 = vld [vmem:[%s8170_s5 + $0x1c8] ss:$16 sps:$4 sm:$0xff]  }
0x1222   : > { %5215 = vmatpush2.bf16.msra.mxu0 %v7190_v41  ;;  %v7270_v41 = vld [vmem:[%s8170_s5 + $0x28] ss:$16 sps:$4 sm:$0xff]   ;;  %v7326_v8 = vld [vmem:[%s8170_s5 + $0x10c] ss:$16 sps:$4 sm:$0xff]  }
0x1223   : > { %5256 = vmatpush2.bf16.msra.mxu1 %v7191_v49  ;;  %5216 = vmatprep.subr.bf16.mxu0 %v7192_v52  ;;  %v7273_v49 = vld [vmem:[%s8170_s5 + $0x228] ss:$16 sps:$4 sm:$0xff]   ;;  %v7278_v52 = vld [vmem:[%s8170_s5 + $0xc] ss:$16 sps:$4 sm:$0xff]  }
0x1224   : > { %5257 = vmatprep.subr.bf16.mxu1 %v7194_v0  ;;  %v7281_v0 = vld [vmem:[%s8170_s5 + $0x20c] ss:$16 sps:$4 sm:$0xff]  }
0x1225   : > { %v7329_v56 = vld [vmem:[%s8170_s5 + $0x30c] ss:$16 sps:$4 sm:$0xff]  }
0x1226   : > { %5217 = vmatpush2.bf16.msra.mxu0 %v7196_v4  ;;  %v7276_v4 = vld [vmem:[%s8170_s5 + $0x8] ss:$16 sps:$4 sm:$0xff]  }
0x1227   : > { %5258 = vmatpush2.bf16.msra.mxu1 %v7197_v10  ;;  %5218 = vmatprep.subr.bf16.mxu0 %v7198_v15  ;;  %v7279_v10 = vld [vmem:[%s8170_s5 + $0x208] ss:$16 sps:$4 sm:$0xff]   ;;  %v7284_v15 = vld [vmem:[%s8170_s5 + $0x1ec] ss:$16 sps:$4 sm:$0xff]  }
0x1228   : > { %5259 = vmatprep.subr.bf16.mxu1 %v7200_v20  ;;  %v7287_v20 = vld [vmem:[%s8170_s5 + $0x3ec] ss:$16 sps:$4 sm:$0xff]  }
0x122a   : > { %5219 = vmatpush2.bf16.msra.mxu0 %v7202_v9  ;;  %v7282_v9 = vld [vmem:[%s8170_s5 + $0x1e8] ss:$16 sps:$4 sm:$0xff]  }
0x122b   : > { %5260 = vmatpush2.bf16.msra.mxu1 %v7203_v32  ;;  %5220 = vmatprep.subr.bf16.mxu0 %v7204_v18  ;;  %v7285_v32 = vld [vmem:[%s8170_s5 + $0x3e8] ss:$16 sps:$4 sm:$0xff]   ;;  %v7290_v18 = vld [vmem:[%s8170_s5 + $0x1cc] ss:$16 sps:$4 sm:$0xff]  }
0x122c   : > { %5261 = vmatprep.subr.bf16.mxu1 %v7206_v39  ;;  %v7293_v39 = vld [vmem:[%s8170_s5 + $0x3cc] ss:$16 sps:$4 sm:$0xff]  }
0x122e   : > { %5221 = vmatpush2.bf16.msra.mxu0 %v7208_v46  ;;  %v7291_v46 = vld [vmem:[%s8170_s5 + $0x3c8] ss:$16 sps:$4 sm:$0xff]  }
0x122f   : > { %5262 = vmatpush2.bf16.msra.mxu1 %v7209_v38  ;;  %5222 = vmatprep.subr.bf16.mxu0 %v7210_v28  ;;  %v7296_v38 = vld [vmem:[%s8170_s5 + $0x1ac] ss:$16 sps:$4 sm:$0xff]   ;;  %v7297_v28 = vld [vmem:[%s8170_s5 + $0x3a8] ss:$16 sps:$4 sm:$0xff]  }
0x1230   : > { %5263 = vmatprep.subr.bf16.mxu1 %v7212_v17  ;;  %v7305_v17 = vld [vmem:[%s8170_s5 + $0x38c] ss:$16 sps:$4 sm:$0xff]  }
0x1232   : > { %5223 = vmatpush2.bf16.msra.mxu0 %v7214_v44  ;;  %v7300_v44 = vld [vmem:[%s8170_s5 + $0x188] ss:$16 sps:$4 sm:$0xff]  }
0x1233   : > { %5264 = vmatpush2.bf16.msra.mxu1 %v7215_v53  ;;  %5224 = vmatprep.subr.bf16.mxu0 %v7216_v16  ;;  %v7303_v53 = vld [vmem:[%s8170_s5 + $0x388] ss:$16 sps:$4 sm:$0xff]   ;;  %v7308_v16 = vld [vmem:[%s8170_s5 + $0x16c] ss:$16 sps:$4 sm:$0xff]  }
0x1234   : > { %5265 = vmatprep.subr.bf16.mxu1 %v7218_v51  ;;  %v7311_v51 = vld [vmem:[%s8170_s5 + $0x36c] ss:$16 sps:$4 sm:$0xff]  }
0x1236   : > { %5225 = vmatpush2.bf16.msra.mxu0 %v7220_v63  ;;  %v7306_v63 = vld [vmem:[%s8170_s5 + $0x168] ss:$16 sps:$4 sm:$0xff]  }
0x1237   : > { %5266 = vmatpush2.bf16.msra.mxu1 %v7221_v50  ;;  %5226 = vmatprep.subr.bf16.mxu0 %v7222_v3  ;;  %v7309_v50 = vld [vmem:[%s8170_s5 + $0x368] ss:$16 sps:$4 sm:$0xff]   ;;  %v7314_v3 = vld [vmem:[%s8170_s5 + $0x14c] ss:$16 sps:$4 sm:$0xff]  }
0x1238   : > { %5267 = vmatprep.subr.bf16.mxu1 %v7224_v43  ;;  %v7317_v43 = vld [vmem:[%s8170_s5 + $0x34c] ss:$16 sps:$4 sm:$0xff]  }
0x123a   : > { %5227 = vmatpush2.bf16.msra.mxu0 %v7226_v21  ;;  %v7312_v21 = vld [vmem:[%s8170_s5 + $0x148] ss:$16 sps:$4 sm:$0xff]  }
0x123b   : > { %5268 = vmatpush2.bf16.msra.mxu1 %v7227_v29  ;;  %5228 = vmatprep.subr.bf16.mxu0 %v7228_v47  ;;  %v7315_v29 = vld [vmem:[%s8170_s5 + $0x348] ss:$16 sps:$4 sm:$0xff]   ;;  %v7320_v47 = vld [vmem:[%s8170_s5 + $0x12c] ss:$16 sps:$4 sm:$0xff]  }
0x123c   : > { %5269 = vmatprep.subr.bf16.mxu1 %v7230_v22  ;;  %v7323_v22 = vld [vmem:[%s8170_s5 + $0x32c] ss:$16 sps:$4 sm:$0xff]  }
0x123e   : > { %5229 = vmatpush2.bf16.msra.mxu0 %v7232_v54  ;;  %v7318_v54 = vld [vmem:[%s8170_s5 + $0x128] ss:$16 sps:$4 sm:$0xff]  }
0x123f   : > { %5270 = vmatpush2.bf16.msra.mxu1 %v7233_v55  ;;  %5280 = vmatprep.subr.bf16.mxu0 %v7236_v57  ;;  %v7321_v55 = vld [vmem:[%s8170_s5 + $0x328] ss:$16 sps:$4 sm:$0xff]  }
0x1240   : > { %5321 = vmatprep.subr.bf16.mxu1 %v7239_v58  ;;  %v7324_v57 = vld [vmem:[%s8170_s5 + $0x108] ss:$16 sps:$4 sm:$0xff]  }
0x1241   : > { %5231 = vmatmul.mubr.bf16.vlgmr.msra.gmra.mxu0 %v9362_v11  ;;  %v7327_v58 = vld [vmem:[%s8170_s5 + $0x308] ss:$16 sps:$4 sm:$0xff]  }
0x1242   : > { %5272 = vmatmul.mubr.bf16.vlgmr.msra.gmra.mxu1 %v9364_v59  ;;  %5281 = vmatpush1.bf16.msra.mxu0 %v7234_v60  ;;  %v7330_v60 = vld [vmem:[%s9395_s21 + $0x78] sm:$0xff]  }
0x1243   : > { %5322 = vmatpush1.bf16.msra.mxu1 %v7237_v61  ;;  %5282 = vmatprep.subr.bf16.mxu0 %v7242_v12  ;;  %v7331_v61 = vld [vmem:[%s9395_s21 + $0x38] sm:$0xff]   ;;  %v7332_v12 = vld [vmem:[%s9395_s21 + $0x70] sm:$0xff]  }
0x1244   : > { %5323 = vmatprep.subr.bf16.mxu1 %v7245_v62  ;;  %5312 = vmatprep.mubr.bf16.mxu0 %v9341_v24  ;;  %v7299_v24 = vld [vmem:[%s8170_s5 + $0x3ac] ss:$16 sps:$4 sm:$0xff]   ;;  %v7333_v62 = vld [vmem:[%s9395_s21 + $0x30] sm:$0xff]  }
0x1245   : > { %5353 = vmatprep.mubr.bf16.mxu1 %v4533_v7  ;;  %v7302_v7 = vld [vmem:[%s8170_s5 + $0x18c] ss:$16 sps:$4 sm:$0xff]   ;;  %s6312_s5 = sshll.u32 %s7947_s29, 2 }
0x1246   : > { %5283 = vmatpush1.bf16.msra.mxu0 %v7240_v1  ;;  %v7334_v1 = vld [vmem:[%s9395_s21 + $0x68] sm:$0xff]   ;;  %s4535_s27 = scalar_lea.vmem [#allocation20], %s6312_s5 }
0x1247   : > { %5324 = vmatpush1.bf16.msra.mxu1 %v7243_v13  ;;  %5284 = vmatprep.subr.bf16.mxu0 %v7248_v14  ;;  %v7335_v13 = vld [vmem:[%s9395_s21 + $0x28] sm:$0xff]   ;;  %v7336_v14 = vld [vmem:[%s9395_s21 + $0x60] sm:$0xff]  }
0x1248   : > { %5325 = vmatprep.subr.bf16.mxu1 %v7251_v23  ;;  %v7337_v23 = vld [vmem:[%s9395_s21 + $0x20] sm:$0xff]  }
0x124a   : > { %5285 = vmatpush1.bf16.msra.mxu0 %v7246_v31  ;;  %v7346_v31 = vld [vmem:[%s9395_s21 + $0xf8] sm:$0xff]  }
0x124b   : > { %5326 = vmatpush1.bf16.msra.mxu1 %v7249_v25  ;;  %5286 = vmatprep.subr.bf16.mxu0 %v7254_v26  ;;  %v7348_v25 = vld [vmem:[%s9395_s21 + $0xf0] sm:$0xff]   ;;  %v7339_v26 = vld [vmem:[%s9395_s21 + $0x18] sm:$0xff]  }
0x124c   : > { %5327 = vmatprep.subr.bf16.mxu1 %v7257_v42  ;;  %v7340_v42 = vld [vmem:[%s9395_s21 + $0x50] sm:$0xff]  }
0x124e   : > { %5287 = vmatpush1.bf16.msra.mxu0 %v7252_v33  ;;  %v7349_v33 = vld [vmem:[%s9395_s21 + $0xb0] sm:$0xff]  }
0x124f   : > { %5328 = vmatpush1.bf16.msra.mxu1 %v7255_v35  ;;  %5288 = vmatprep.subr.bf16.mxu0 %v7260_v2  ;;  %v7350_v35 = vld [vmem:[%s9395_s21 + $0xe8] sm:$0xff]   ;;  %v7341_v2 = vld [vmem:[%s9395_s21 + $0x10] sm:$0xff]  }
0x1250   : > { %5329 = vmatprep.subr.bf16.mxu1 %v7263_v5  ;;  %v7342_v5 = vld [vmem:[%s9395_s21 + $0x48] sm:$0xff]  }
0x1252   : > { %5289 = vmatpush1.bf16.msra.mxu0 %v7258_v6  ;;  %v7351_v6 = vld [vmem:[%s9395_s21 + $0xa8] sm:$0xff]  }
0x1253   : > { %5330 = vmatpush1.bf16.msra.mxu1 %v7261_v30  ;;  %5290 = vmatprep.subr.bf16.mxu0 %v7266_v34  ;;  %v7352_v30 = vld [vmem:[%s9395_s21 + $0xe0] sm:$0xff]   ;;  %v7343_v34 = vld [vmem:[%s9395_s21 + $0x8] sm:$0xff]  }
0x1254   : > { %5331 = vmatprep.subr.bf16.mxu1 %v7269_v48  ;;  %v7344_v48 = vld [vmem:[%s9395_s21 + $0x40] sm:$0xff]  }
0x1256   : > { %5291 = vmatpush1.bf16.msra.mxu0 %v7264_v36  ;;  %v7353_v36 = vld [vmem:[%s9395_s21 + $0xa0] sm:$0xff]  }
0x1257   : > { %5332 = vmatpush1.bf16.msra.mxu1 %v7267_v19  ;;  %5292 = vmatprep.subr.bf16.mxu0 %v7272_v27  ;;  %v7354_v19 = vld [vmem:[%s9395_s21 + $0xd8] sm:$0xff]   ;;  %v7345_v27 = vld [vmem:[%s9395_s21] sm:$0xff]  }
0x1258   : > { %5333 = vmatprep.subr.bf16.mxu1 %v7275_v37  ;;  %v7355_v37 = vld [vmem:[%s9395_s21 + $0x98] sm:$0xff]  }
0x125a   : > { %5293 = vmatpush1.bf16.msra.mxu0 %v7270_v41  ;;  %v7356_v41 = vld [vmem:[%s9395_s21 + $0xd0] sm:$0xff]  }
0x125b   : > { %5334 = vmatpush1.bf16.msra.mxu1 %v7273_v49  ;;  %5294 = vmatprep.subr.bf16.mxu0 %v7278_v52  ;;  %v7357_v49 = vld [vmem:[%s9395_s21 + $0x90] sm:$0xff]   ;;  %v7358_v52 = vld [vmem:[%s9395_s21 + $0xc8] sm:$0xff]  }
0x125c   : > { %5335 = vmatprep.subr.bf16.mxu1 %v7281_v0  ;;  %v7359_v0 = vld [vmem:[%s9395_s21 + $0x88] sm:$0xff]  }
0x125e   : > { %5295 = vmatpush1.bf16.msra.mxu0 %v7276_v4  ;;  %v7360_v4 = vld [vmem:[%s9395_s21 + $0xc0] sm:$0xff]  }
0x125f   : > { %5336 = vmatpush1.bf16.msra.mxu1 %v7279_v10  ;;  %5296 = vmatprep.subr.bf16.mxu0 %v7284_v15  ;;  %v7361_v10 = vld [vmem:[%s9395_s21 + $0x80] sm:$0xff]   ;;  %v4538_v15 = vlaneseq }
0x1260   : > { %5337 = vmatprep.subr.bf16.mxu1 %v7287_v20 }
0x1261   : > { %v4539_v20 = vshrl.u32 %v4538_v15, 7 }
0x1262   : > { %5297 = vmatpush2.bf16.msra.mxu0 %v7282_v9 }
0x1263   : > { %5338 = vmatpush2.bf16.msra.mxu1 %v7285_v32  ;;  %5298 = vmatprep.subr.bf16.mxu0 %v7290_v18  ;;  %v4540_v9 = vsub.s32 0, %v4539_v20  ;;  %v4536_v32 = vld [vmem:[%s4535_s27] sm:$0xf]  ;;  %v4544_v18 = vsub.s32 1, %v4539_v20 }
0x1264   : > { %5339 = vmatprep.subr.bf16.mxu1 %v7293_v39 }
0x1265   : > { %v4541_v39 = vrot.slane %v4536_v32, %v4540_v9 }
0x1266   : > { %5299 = vmatpush2.bf16.msra.mxu0 %v7288_v40  ;;  %v4545_v40 = vrot.slane %v4536_v32, %v4544_v18 }
0x1267   : > { %5340 = vmatpush2.bf16.msra.mxu1 %v7291_v46  ;;  %5300 = vmatprep.subr.bf16.mxu0 %v7296_v38 }
0x1268   : > { %5341 = vmatprep.subr.bf16.mxu1 %v7299_v24 }
0x126a   : > { %5301 = vmatpush2.bf16.msra.mxu0 %v7294_v45 }
0x126b   : > { %5342 = vmatpush2.bf16.msra.mxu1 %v7297_v28  ;;  %5302 = vmatprep.subr.bf16.mxu0 %v7302_v7 }
0x126c   : > { %5343 = vmatprep.subr.bf16.mxu1 %v7305_v17 }
0x126e   : > { %5303 = vmatpush2.bf16.msra.mxu0 %v7300_v44 }
0x126f   : > { %5344 = vmatpush2.bf16.msra.mxu1 %v7303_v53  ;;  %5304 = vmatprep.subr.bf16.mxu0 %v7308_v16 }
0x1270   : > { %5345 = vmatprep.subr.bf16.mxu1 %v7311_v51 }
0x1272   : > { %5305 = vmatpush2.bf16.msra.mxu0 %v7306_v63 }
0x1273   : > { %5346 = vmatpush2.bf16.msra.mxu1 %v7309_v50  ;;  %5306 = vmatprep.subr.bf16.mxu0 %v7314_v3 }
0x1274   : > { %5347 = vmatprep.subr.bf16.mxu1 %v7317_v43 }
0x1276   : > { %5307 = vmatpush2.bf16.msra.mxu0 %v7312_v21 }
0x1277   : > { %5348 = vmatpush2.bf16.msra.mxu1 %v7315_v29  ;;  %5308 = vmatprep.subr.bf16.mxu0 %v7320_v47  ;;  %v4548_v29 = vsub.s32 2, %v4539_v20  ;;  %v4552_v47 = vsub.s32 3, %v4539_v20 }
0x1278   : > { %5349 = vmatprep.subr.bf16.mxu1 %v7323_v22 }
0x1279   : > { %v4549_v22 = vrot.slane %v4536_v32, %v4548_v29 }
0x127a   : > { %5309 = vmatpush2.bf16.msra.mxu0 %v7318_v54  ;;  %v4553_v54 = vrot.slane %v4536_v32, %v4552_v47 }
0x127b   : > { %5350 = vmatpush2.bf16.msra.mxu1 %v7321_v55  ;;  %5310 = vmatprep.subr.bf16.mxu0 %v7326_v8 }
0x127c   : > { %5351 = vmatprep.subr.bf16.mxu1 %v7329_v56 }
0x127e   : > { %5311 = vmatpush2.bf16.msra.mxu0 %v7324_v57 }
0x127f   : > { %5352 = vmatpush2.bf16.msra.mxu1 %v7327_v58  ;;  %6499 = vmatprep.subr.bf16.mxu0 %v7330_v60 }
0x1280   : > { %6521 = vmatprep.subr.bf16.mxu1 %v7346_v31 }
0x1281   : > { %5313 = vmatmul.mubr.bf16.vlgmr.msra.gmra.mxu0 %v9362_v11  ;;  %v7338_v11 = vld [vmem:[%s9395_s21 + $0x58] sm:$0xff]  }
0x1282   : > { %5354 = vmatmul.mubr.bf16.vlgmr.msra.gmra.mxu1 %v9364_v59  ;;  %6500 = vmatpush3.bf16.msra.mxu0 %v7331_v61  ;;  %v7347_v59 = vld [vmem:[%s9395_s21 + $0xb8] sm:$0xff]  }
0x1283   : > { %6501 = vmatprep.subr.bf16.mxu0 %v7332_v12  ;;  %6522 = vmatpush3.bf16.msra.mxu1 %v7347_v59 }
0x1284   : > { %6523 = vmatprep.subr.bf16.mxu1 %v7348_v25 }
0x1286   : > { %6502 = vmatpush3.bf16.msra.mxu0 %v7333_v62 }
0x1287   : > { %6503 = vmatprep.subr.bf16.mxu0 %v7334_v1  ;;  %6524 = vmatpush3.bf16.msra.mxu1 %v7349_v33 }
0x1288   : > { %6525 = vmatprep.subr.bf16.mxu1 %v7350_v35 }
0x128a   : > { %6504 = vmatpush3.bf16.msra.mxu0 %v7335_v13 }
0x128b   : > { %6505 = vmatprep.subr.bf16.mxu0 %v7336_v14  ;;  %6526 = vmatpush3.bf16.msra.mxu1 %v7351_v6 }
0x128c   : > { %6527 = vmatprep.subr.bf16.mxu1 %v7352_v30 }
0x128e   : > { %6506 = vmatpush3.bf16.msra.mxu0 %v7337_v23 }
0x128f   : > { %6507 = vmatprep.subr.bf16.mxu0 %v7338_v11  ;;  %6528 = vmatpush3.bf16.msra.mxu1 %v7353_v36 }
0x1290   : > { %6529 = vmatprep.subr.bf16.mxu1 %v7354_v19 }
0x1292   : > { %6508 = vmatpush3.bf16.msra.mxu0 %v7339_v26 }
0x1293   : > { %6509 = vmatprep.subr.bf16.mxu0 %v7340_v42  ;;  %6530 = vmatpush3.bf16.msra.mxu1 %v7355_v37 }
0x1294   : > { %6531 = vmatprep.subr.bf16.mxu1 %v7356_v41 }
0x1296   : > { %6510 = vmatpush3.bf16.msra.mxu0 %v7341_v2 }
0x1297   : > { %6511 = vmatprep.subr.bf16.mxu0 %v7342_v5  ;;  %6532 = vmatpush3.bf16.msra.mxu1 %v7357_v49 }
0x1298   : > { %6533 = vmatprep.subr.bf16.mxu1 %v7358_v52 }
0x129a   : > { %6512 = vmatpush3.bf16.msra.mxu0 %v7343_v34 }
0x129b   : > { %6513 = vmatprep.subr.bf16.mxu0 %v7344_v48  ;;  %6534 = vmatpush3.bf16.msra.mxu1 %v7359_v0 }
0x129c   : > { %6535 = vmatprep.subr.bf16.mxu1 %v7360_v4 }
0x129e   : > { %6514 = vmatpush3.bf16.msra.mxu0 %v7345_v27 }
0x129f   : > { %6536 = vmatpush3.bf16.msra.mxu1 %v7361_v10 }
0x1301   : > { %v5232_v46 = vpop.f32.mrf.mxu0 }
0x1302   : > { %v5273_v38 = vpop.f32.mrf.mxu1  ;;  %v5233_v24 = vadd.f32 %v5232_v46, %v4541_v39 }
0x1303   : > { %v5234_v45 = vpop.f32.mrf.mxu0 }
0x1304   : > { %v5275_v28 = vpop.f32.mrf.mxu1  ;;  %v5274_v7 = vadd.f32 %v5273_v38, %v5233_v24  ;;  %v5235_v17 = vadd.f32 %v5234_v45, %v4545_v40 }
0x1305   : > { %v5236_v44 = vpop.f32.mrf.mxu0 }
0x1306   : > { %v5277_v53 = vpop.f32.mrf.mxu1  ;;  %v5276_v16 = vadd.f32 %v5275_v28, %v5235_v17  ;;  %v5362_v51 = vmax.f32 %v5274_v7, 0.0 }
0x1307   : > { %v5237_v63 = vpop.f32.mrf.mxu0 }
0x1308   : > { %v5278_v50 = vpop.f32.mrf.mxu1  ;;  %v5363_v3 = vmax.f32 %v5276_v16, 0.0  ;;  %v5434_v21 = vpack.c.bf16 %v5362_v51, %v5362_v51 }
0x130a   : > { %v5435_v43 = vpack.c.bf16 %v5363_v3, %v5363_v3 }
0x130c   : > { %5662 = vmatprep.mubr.bf16.mxu0 %v5435_v43 }
0x130d   : > { %5663 = vmatmul.mubr.bf16.vlgmr.msra.gmra.mxu0 %v5434_v21 }
0x1341   : > { %v5314_v55 = vpop.f32.mrf.mxu0 }
0x1342   : > { %v5355_v8 = vpop.f32.mrf.mxu1  ;;  %v5315_v56 = vadd.f32 %v5314_v55, %v4549_v22 }
0x1343   : > { %v5316_v57 = vpop.f32.mrf.mxu0 }
0x1344   : > { %v5357_v58 = vpop.f32.mrf.mxu1  ;;  %v5356_v60 = vadd.f32 %v5355_v8, %v5315_v56  ;;  %v5317_v61 = vadd.f32 %v5316_v57, %v4553_v54 }
0x1345   : > { %v5318_v12 = vpop.f32.mrf.mxu0 }
0x1346   : > { %v5359_v62 = vpop.f32.mrf.mxu1  ;;  %v5358_v1 = vadd.f32 %v5357_v58, %v5317_v61  ;;  %v5364_v13 = vmax.f32 %v5356_v60, 0.0 }
0x1347   : > { %v5319_v14 = vpop.f32.mrf.mxu0 }
0x1348   : > { %v5360_v23 = vpop.f32.mrf.mxu1  ;;  %v5365_v11 = vmax.f32 %v5358_v1, 0.0  ;;  %v5436_v59 = vpack.c.bf16 %v5364_v13, %v5364_v13 }
0x134a   : > { %v5437_v31 = vpack.c.bf16 %v5365_v11, %v5365_v11 }
0x134c   : > { %5702 = vmatprep.mubr.bf16.mxu1 %v5437_v31 }
0x134d   : > { %5703 = vmatmul.mubr.bf16.vlgmr.msra.gmra.mxu1 %v5436_v59 }
0x134e   : > { %7715 = shalt.err (!%p7712_p5)
}
0x134f   : > { %s9706_s22 = sld [smem:[#allocation69_spill]] }
0x1350   : > { %s9707_s2 = sld [smem:[#allocation68_spill]] }
0x1355   : > { %6632 = dma.vmem_to_hbm [thread:$0]  (%p6701_p3), %s5723_s0, 128, %s9706_s22, [#allocation5]  }
0x1356   : > { %v5366_v30 = vld [vmem:[%s9707_s2] sm:$0xff] }
0x13cd   : > { %v6515_v25 = vpop.f32.mrf.mxu0 }
0x13cf   : > { %v6516_v26 = vpop.f32.mrf.mxu0 }
0x13d0   : > { %v6517_v42 = vadd.f32 %v6516_v26, %v6515_v25 }
0x13d1   : > { %v6518_v33 = vpop.f32.mrf.mxu0 }
0x13d3   : > { %v6519_v35 = vpop.f32.mrf.mxu0 }
0x140d   : > { %v6537_v2 = vpop.f32.mrf.mxu1 }
0x140f   : > { %v6538_v5 = vpop.f32.mrf.mxu1 }
0x1410   : > { %v6539_v6 = vadd.f32 %v6538_v5, %v6537_v2 }
0x1411   : > { %v6540_v34 = vpop.f32.mrf.mxu1 }
0x1412   : > { %v5705_v48 = vadd.f32 %v6539_v6, %v6517_v42 }
0x1413   : > { %v6541_v36 = vpop.f32.mrf.mxu1 }
0x1414   : > { %v5710_v19 = vadd.f32 %v5705_v48, %v5366_v30 }
0x1416   : > { %5711 = vst [vmem:[%s9707_s2] sm:$0xff] %v5710_v19 }
0x1417   : > { %7775 = dma.done.wait (%p6701_p3), [#allocation5], 128  }
0x1418   : > { %7777 = vsyncadd (%p6701_p3), [#allocation5], 4294967168 }
0x1419 PF: > { %p39_p8 = scmp.ge.s32.totalorder %s8091_s1, 4   ;;  %s9708_s2 = smov %s7784_s25 }
0x141a   : > { %s9709_s25 = smov %s7788_s26  ;;  %s9710_s26 = smov %s8103_s20 }
0x141b   : > { %s9711_s27 = smov %s8091_s1  ;;  %41 = sbr.rel (!%p39_p8) target bundleno = 22 (0x16), region = 200 }
0x1420   :  { %5738 = vsyncpa [#allocation4], 1 }
0x1421   :  { %5740 = vsyncpa [#allocation4 + $0x1], 1 }
0x1422   :  { %5741 = vsyncpa [#allocation7], 1 }
0x1423   :  { %5742 = vsyncpa [#allocation10], 1 }
0x1424   :  { %5743 = vsyncpa [#allocation13], 1 }
0x1425   :  { %5744 = vsyncpa [#allocation16], 1 }
0x1426   :  { %5745 = vsyncpa [#allocation19], 1 }
0x1427   :  { %5747 = vsyncpa [#allocation19 + $0x1], 1 }
0x1428   :  { %5748 = vsyncpa [#allocation22], 1 }
0x1429   :  { %5749 = vsyncpa [#allocation5], 1 }
0x142a   :  { %5751 = vsyncpa [#allocation5 + $0x1], 1 }

</bundles_post_ra>
